<compile_context>
chip_gen: v5e
topology: v5e:2x2
jax: 0.10.0
libtpu: 0.0.40
codegen_flags: <defaults>
</compile_context>

<pallas_src>
import functools
import math

import jax
import jax.numpy as jnp
import numpy as np
from jax.experimental import pallas as pl
from jax.experimental.pallas import tpu as pltpu

_LOG_2PI = math.log(2.0 * math.pi)


# ------------------------------ fused EM kernel ------------------------------

def _make_em_kernel(B, Cww, N, iteration):
    """Per-batch fused EM routing: all iterations, state stays in VMEM/vregs."""

    def kernel(vs_ref, vq_ref, as_ref, beta_a_ref, s_ref, st_ref,
               f_ref, ft_ref, params_ref, mu_ref, act_ref):
        beta_v = params_ref[0, 0]
        lam = params_ref[0, 1]

        Vs = vs_ref[...]          # (B, 16, N)  stats votes, n = (ki,kj,c,x,y)
        Vq = vq_ref[...]          # (16, B, N)  routing votes (negative-index gather)
        a_in = as_ref[...]        # (B, N)      gathered input activations
        beta_a = beta_a_ref[...]  # (1, Cww)
        S = s_ref[...]            # (N, P)      routing column -> input pixel (one-hot)
        ST = st_ref[...]          # (P, N)
        F = f_ref[...]            # (N, Cww)    fold: sum the K*K receptive-field offsets
        FT = ft_ref[...]          # (Cww, N)    tile: repeat per-output-capsule stats over K*K

        # R carried in the flat routing-column layout (B input types x N columns).
        r = jnp.full((B, N), 1.0 / Cww, dtype=jnp.float32)

        mu = a_c = None
        for it in range(iteration):
            # ------------------------------ M-step ------------------------------
            r_hat = jnp.maximum(r * a_in, 0.01)                              # (B, N)
            rsum = jnp.sum(r_hat, axis=0, keepdims=True)                     # (1, N)
            sum_r = jnp.dot(rsum, F, preferred_element_type=jnp.float32)     # (1, Cww)
            inv_sum_r = pl.reciprocal(sum_r, approx=True)

            rw = r_hat[:, None, :]                                           # (B, 1, N)
            mu_n = jnp.sum(rw * Vs, axis=0)                                  # (16, N)
            mu = jnp.dot(mu_n, F, preferred_element_type=jnp.float32) * inv_sum_r   # (16, Cww)

            mu_t = jnp.dot(mu, FT, preferred_element_type=jnp.float32)       # (16, N)
            diff = Vs - mu_t[None, :, :]                                     # (B, 16, N)
            sig_n = jnp.sum(rw * diff * diff, axis=0)                        # (16, N)
            sigma = jnp.dot(sig_n, F, preferred_element_type=jnp.float32) * inv_sum_r
            sigma = jnp.maximum(sigma, 0.01)                                 # (16, Cww)
            log_sigma = jnp.log(sigma)

            cost = (beta_v + log_sigma) * sum_r                              # (16, Cww)
            logit = lam * (beta_a - jnp.sum(cost, axis=0, keepdims=True))
            a_c = jax.nn.sigmoid(logit)                                      # (1, Cww)

            # --------------------- E-step (log-space routing) -------------------
            # Skipped after the final M-step: the reference's last R update never
            # affects the module output.
            if it + 1 < iteration:
                #   prod_t exp(-d_t^2) / sqrt(2*pi*sigma_t)
                # = exp( -sum_t d_t^2 - 0.5 * sum_t log(2*pi*sigma_t) )
                logc = 0.5 * (jnp.sum(log_sigma, axis=0, keepdims=True)
                              + 16.0 * _LOG_2PI)                             # (1, Cww)
                logc_t = jnp.dot(logc, FT, preferred_element_type=jnp.float32)   # (1, N)
                act_t = jnp.dot(a_c, FT, preferred_element_type=jnp.float32)     # (1, N)

                dq = Vq - mu_t[:, None, :]                                   # (16, B, N)
                ssq = jnp.sum(dq * dq, axis=0)                               # (B, N)
                p_hat = act_t * jnp.exp(-ssq - logc_t)                       # (B, N)

                # Normalize over all output capsules covering the same input
                # pixel: denom = p_hat @ (S @ S^T), factorized.
                per_pix = jnp.dot(p_hat, S, preferred_element_type=jnp.float32)   # (B, P)
                denom = jnp.dot(per_pix, ST, preferred_element_type=jnp.float32)  # (B, N)
                r = p_hat * pl.reciprocal(denom, approx=True)                # (B, N)

        mu_ref[...] = mu
        act_ref[...] = a_c

    return kernel


# ------------------------------- forward pass --------------------------------

def convcaps_forward(x, lambda_, beta_v, beta_a, W,
                     *, B, C, K, stride, iteration):
    b = x.shape[0]
    win = x.shape[2]
    w = (win - K) // stride + 1
    KK = K * K
    Cww = C * w * w
    N = KK * Cww
    P = win * win

    # split poses / activations (matches the PyTorch view/permute exactly)
    pose = x[:, :16 * B].reshape(b, 16, B, win, win).transpose(0, 2, 3, 4, 1)  # (b,B,win,win,16)
    activation = x[:, 16 * B:]                                                 # (b,B,win,win)

    # receptive-field gather indices: input coord = stride*out + kernel offset
    idx = np.arange(K)[:, None] + stride * np.arange(w)[None, :]               # (K, w)
    I = idx[:, :, None, None]
    J = idx[None, None, :, :]

    # poses per window, then the reference's raw .view() that reinterprets the
    # trailing (16, w*w) block as (1, w, w, 4, 4) — reproduced verbatim.
    pose_g = pose[:, :, I, J, :]                            # (b,B,ki,x,kj,y,16)
    pose_g = jnp.transpose(pose_g, (0, 1, 2, 4, 6, 3, 5))   # (b,B,ki,kj,16,x,y)
    pose44 = pose_g.reshape(b, B, K, K, w, w, 4, 4)

    # votes = W_hat @ poses: a single tiny batched einsum (no Pallas grid of
    # sub-1%-MXU matmuls; see perf review).
    votes = jnp.einsum('pqrcik,bpqrxykj->bpqrcxyij', W, pose44)   # (b,B,K,K,C,w,w,4,4)

    # TODO(synk): coordinate_add=True and transform_share=True branches not implemented
    # (the module defaults coordinate_add=False, transform_share=False are reproduced).

    # ---- flat routing-column layouts: n = (ki, kj, c, x, y), cww = (c, x, y) ----
    # stats votes (B, 16, N) per batch
    Vs = jnp.transpose(votes, (0, 1, 7, 8, 2, 3, 4, 5, 6)).reshape(b, B, 16, N)
    # routing votes: the reference's negative-index gather
    #   votes[:, :, (stride*x - i) % K, (stride*y - j) % K, ...]
    perm = np.array([(-k) % K for k in range(K)], dtype=np.int32)
    votes_q = jnp.take(jnp.take(votes, perm, axis=2), perm, axis=3)
    Vq = jnp.transpose(votes_q, (0, 7, 8, 1, 2, 3, 4, 5, 6)).reshape(b, 16, B, N)
    # gathered input activations per routing column (independent of c)
    a_g = jnp.transpose(activation[:, :, I, J], (0, 1, 2, 4, 3, 5))            # (b,B,ki,kj,x,y)
    a_s = jnp.broadcast_to(a_g[:, :, :, :, None, :, :],
                           (b, B, K, K, C, w, w)).reshape(b, B, N)

    # ---- small constant matrices (built at trace time, folded as constants) ----
    n_idx = np.arange(N)
    ki_n = n_idx // (K * Cww)
    kj_n = (n_idx // Cww) % K
    x_n = (n_idx // w) % w
    y_n = n_idx % w
    pix = (stride * x_n + ki_n) * win + (stride * y_n + kj_n)                  # (N,)
    S_np = np.zeros((N, P), np.float32)
    S_np[np.arange(N), pix] = 1.0                                              # column -> pixel
    F_np = np.tile(np.eye(Cww, dtype=np.float32), (KK, 1))                     # (N, Cww)

    S = jnp.asarray(S_np)
    ST = jnp.asarray(S_np.T)
    F = jnp.asarray(F_np)
    FT = jnp.asarray(F_np.T)

    beta_a_c = jnp.repeat(beta_a.astype(jnp.float32), w * w)[None, :]          # (1, Cww)
    params_sc = jnp.stack([beta_v.astype(jnp.float32)[0],
                           jnp.asarray(lambda_, jnp.float32)]).reshape(1, 2)

    kernel = _make_em_kernel(B, Cww, N, iteration)
    mus, acts = pl.pallas_call(
        kernel,
        grid=(b,),
        in_specs=[
            pl.BlockSpec((None, B, 16, N), lambda i: (i, 0, 0, 0)),    # Vs
            pl.BlockSpec((None, 16, B, N), lambda i: (i, 0, 0, 0)),    # Vq
            pl.BlockSpec((None, B, N), lambda i: (i, 0, 0)),           # a_s
            pl.BlockSpec((1, Cww), lambda i: (0, 0)),                  # beta_a
            pl.BlockSpec((N, P), lambda i: (0, 0)),                    # S
            pl.BlockSpec((P, N), lambda i: (0, 0)),                    # S^T
            pl.BlockSpec((N, Cww), lambda i: (0, 0)),                  # F (fold)
            pl.BlockSpec((Cww, N), lambda i: (0, 0)),                  # F^T (tile)
            pl.BlockSpec(memory_space=pltpu.MemorySpace.SMEM),         # [beta_v, lambda]
        ],
        out_specs=[
            pl.BlockSpec((None, 16, Cww), lambda i: (i, 0, 0)),
            pl.BlockSpec((None, 1, Cww), lambda i: (i, 0, 0)),
        ],
        out_shape=[
            jax.ShapeDtypeStruct((b, 16, Cww), jnp.float32),
            jax.ShapeDtypeStruct((b, 1, Cww), jnp.float32),
        ],
        compiler_params=pltpu.CompilerParams(
            dimension_semantics=("parallel",)),
    )(Vs, Vq, a_s, beta_a_c, S, ST, F, FT, params_sc)

    # final output: channel layout is (pose_component*C + c) then C activations,
    # exactly as mu.permute(0,4,1,2,3).view(b, C*16, w, w) + cat in the reference.
    mus_out = mus.reshape(b, 16 * C, w, w)
    acts_out = acts.reshape(b, C, w, w)
    return jnp.concatenate([mus_out, acts_out], axis=1)


convcaps_forward_jit = jax.jit(
    convcaps_forward, static_argnames=("B", "C", "K", "stride", "iteration"))


# ----------------------------------- main ------------------------------------

if __name__ == "__main__":
    B, C, K, stride, iteration = 4, 4, 3, 2, 3
    b, win = 2, 7
    lambda_ = 0.9

    key = jax.random.PRNGKey(0)
    k_pose, k_act, k_bv, k_ba, k_w = jax.random.split(key, 5)

    # module parameters (deterministic randn init; shapes from ConvCaps.__init__)
    beta_v = jax.random.normal(k_bv, (1,), jnp.float32)
    beta_a = jax.random.normal(k_ba, (C,), jnp.float32)
    W = jax.random.normal(k_w, (B, K, K, C, 4, 4), jnp.float32)

    # input x: NCHW, first 16*B channels = poses, last B channels = activations
    pose_part = 0.1 * jax.random.normal(k_pose, (b, 16 * B, win, win), jnp.float32)
    act_part = jax.nn.sigmoid(jax.random.normal(k_act, (b, B, win, win), jnp.float32))
    x = jnp.concatenate([pose_part, act_part], axis=1)               # (2, 68, 7, 7)

    out = convcaps_forward_jit(x, lambda_, beta_v, beta_a, W,
                               B=B, C=C, K=K, stride=stride, iteration=iteration)
    out = jax.block_until_ready(out)

    w_out = (win - K) // stride + 1
    assert out.shape == (b, C * 16 + C, w_out, w_out), out.shape
    assert bool(jnp.isfinite(out).all())
    print("KERNEL_OK")
</pallas_src>

<mosaic_0001>
module attributes {stable_mosaic.version = 11 : i64} {
  func.func @kernel(%arg0: i32, %arg1: memref<1x4x16x324xf32, #tpu.memory_space<vmem>>, %arg2: memref<1x16x4x324xf32, #tpu.memory_space<vmem>>, %arg3: memref<1x4x324xf32, #tpu.memory_space<vmem>>, %arg4: memref<1x36xf32, #tpu.memory_space<vmem>>, %arg5: memref<324x49xf32, #tpu.memory_space<vmem>>, %arg6: memref<49x324xf32, #tpu.memory_space<vmem>>, %arg7: memref<324x36xf32, #tpu.memory_space<vmem>>, %arg8: memref<36x324xf32, #tpu.memory_space<vmem>>, %arg9: memref<1x2xf32, #tpu.memory_space<smem>>, %arg10: memref<1x16x36xf32, #tpu.memory_space<vmem>>, %arg11: memref<1x1x36xf32, #tpu.memory_space<vmem>>) attributes {dimension_semantics = [#tpu.dimension_semantics<parallel>], iteration_bounds = array<i64: 2>, scalar_prefetch = 0 : i64, scratch_operands = 0 : i64, tpu.core_type = #tpu.core_type<tc>, window_params = [{transform_indices = @transform_0, window_bounds = array<i64: 1, 4, 16, 324>}, {transform_indices = @transform_1, window_bounds = array<i64: 1, 16, 4, 324>}, {transform_indices = @transform_2, window_bounds = array<i64: 1, 4, 324>}, {pipeline_mode = #tpu.pipeline_mode<synchronous>, transform_indices = @transform_3, window_bounds = array<i64: 1, 36>}, {pipeline_mode = #tpu.pipeline_mode<synchronous>, transform_indices = @transform_4, window_bounds = array<i64: 324, 49>}, {pipeline_mode = #tpu.pipeline_mode<synchronous>, transform_indices = @transform_5, window_bounds = array<i64: 49, 324>}, {pipeline_mode = #tpu.pipeline_mode<synchronous>, transform_indices = @transform_6, window_bounds = array<i64: 324, 36>}, {pipeline_mode = #tpu.pipeline_mode<synchronous>, transform_indices = @transform_7, window_bounds = array<i64: 36, 324>}, {transform_indices = @transform_8, window_bounds = array<i64: 1, 2>}, {transform_indices = @transform_9, window_bounds = array<i64: 1, 16, 36>}, {transform_indices = @transform_10, window_bounds = array<i64: 1, 1, 36>}]} {
    %c0 = arith.constant 0 : index
    %c0_0 = arith.constant 0 : index
    %0 = memref.load %arg9[%c0, %c0_0] : memref<1x2xf32, #tpu.memory_space<smem>>
    %c0_1 = arith.constant 0 : index
    %c1 = arith.constant 1 : index
    %1 = memref.load %arg9[%c0_1, %c1] : memref<1x2xf32, #tpu.memory_space<smem>>
    %c0_2 = arith.constant 0 : index
    %c0_3 = arith.constant 0 : index
    %c0_4 = arith.constant 0 : index
    %c0_5 = arith.constant 0 : index
    %2 = vector.load %arg1[%c0_2, %c0_3, %c0_4, %c0_5] : memref<1x4x16x324xf32, #tpu.memory_space<vmem>>, vector<1x4x16x324xf32>
    %3 = vector.shape_cast %2 : vector<1x4x16x324xf32> to vector<4x16x324xf32>
    %c0_6 = arith.constant 0 : index
    %c0_7 = arith.constant 0 : index
    %c0_8 = arith.constant 0 : index
    %c0_9 = arith.constant 0 : index
    %4 = vector.load %arg2[%c0_6, %c0_7, %c0_8, %c0_9] : memref<1x16x4x324xf32, #tpu.memory_space<vmem>>, vector<1x16x4x324xf32>
    %5 = vector.shape_cast %4 : vector<1x16x4x324xf32> to vector<16x4x324xf32>
    %c0_10 = arith.constant 0 : index
    %c0_11 = arith.constant 0 : index
    %c0_12 = arith.constant 0 : index
    %6 = vector.load %arg3[%c0_10, %c0_11, %c0_12] : memref<1x4x324xf32, #tpu.memory_space<vmem>>, vector<1x4x324xf32>
    %7 = vector.shape_cast %6 : vector<1x4x324xf32> to vector<4x324xf32>
    %c0_13 = arith.constant 0 : index
    %c0_14 = arith.constant 0 : index
    %8 = vector.load %arg4[%c0_13, %c0_14] : memref<1x36xf32, #tpu.memory_space<vmem>>, vector<1x36xf32>
    %c0_15 = arith.constant 0 : index
    %c0_16 = arith.constant 0 : index
    %9 = vector.load %arg5[%c0_15, %c0_16] : memref<324x49xf32, #tpu.memory_space<vmem>>, vector<324x49xf32>
    %c0_17 = arith.constant 0 : index
    %c0_18 = arith.constant 0 : index
    %10 = vector.load %arg6[%c0_17, %c0_18] : memref<49x324xf32, #tpu.memory_space<vmem>>, vector<49x324xf32>
    %c0_19 = arith.constant 0 : index
    %c0_20 = arith.constant 0 : index
    %11 = vector.load %arg7[%c0_19, %c0_20] : memref<324x36xf32, #tpu.memory_space<vmem>>, vector<324x36xf32>
    %c0_21 = arith.constant 0 : index
    %c0_22 = arith.constant 0 : index
    %12 = vector.load %arg8[%c0_21, %c0_22] : memref<36x324xf32, #tpu.memory_space<vmem>>, vector<36x324xf32>
    %cst = arith.constant 0.027777778 : f32
    %13 = vector.broadcast %cst : f32 to vector<4x324xf32>
    %14 = arith.mulf %13, %7 : vector<4x324xf32>
    %cst_23 = arith.constant 0.00999999977 : f32
    %15 = vector.broadcast %cst_23 : f32 to vector<4x324xf32>
    %16 = arith.maximumf %14, %15 : vector<4x324xf32>
    %cst_24 = arith.constant dense<0.000000e+00> : vector<324xf32>
    %17 = vector.multi_reduction <add>, %16, %cst_24 [0] : vector<4x324xf32> to vector<324xf32>
    %18 = vector.shape_cast %17 : vector<324xf32> to vector<1x324xf32>
    %cst_25 = arith.constant dense<0.000000e+00> : vector<1x36xf32>
    %19 = tpu.matmul %18, %11, %cst_25 {dimension_numbers = #tpu.dot_dimension_numbers<[1], [0], [0], [1], [0, 0, 1, 1], [], []>} : vector<1x324xf32>, vector<324x36xf32>, vector<1x36xf32> -> vector<1x36xf32>
    %20 = tpu.reciprocal %19 {approx = true} : vector<1x36xf32> -> vector<1x36xf32>
    %21 = vector.shape_cast %16 : vector<4x324xf32> to vector<4x1x324xf32>
    %22 = vector.broadcast %21 : vector<4x1x324xf32> to vector<4x16x324xf32>
    %23 = arith.mulf %22, %3 : vector<4x16x324xf32>
    %cst_26 = arith.constant dense<0.000000e+00> : vector<16x324xf32>
    %24 = vector.multi_reduction <add>, %23, %cst_26 [0] : vector<4x16x324xf32> to vector<16x324xf32>
    %cst_27 = arith.constant dense<0.000000e+00> : vector<16x36xf32>
    %25 = tpu.matmul %24, %11, %cst_27 {dimension_numbers = #tpu.dot_dimension_numbers<[1], [0], [0], [1], [0, 0, 1, 1], [], []>} : vector<16x324xf32>, vector<324x36xf32>, vector<16x36xf32> -> vector<16x36xf32>
    %26 = vector.broadcast %20 : vector<1x36xf32> to vector<16x36xf32>
    %27 = arith.mulf %25, %26 : vector<16x36xf32>
    %cst_28 = arith.constant dense<0.000000e+00> : vector<16x324xf32>
    %28 = tpu.matmul %27, %12, %cst_28 {dimension_numbers = #tpu.dot_dimension_numbers<[1], [0], [0], [1], [0, 0, 1, 1], [], []>} : vector<16x36xf32>, vector<36x324xf32>, vector<16x324xf32> -> vector<16x324xf32>
    %29 = vector.shape_cast %28 : vector<16x324xf32> to vector<1x16x324xf32>
    %30 = vector.broadcast %29 : vector<1x16x324xf32> to vector<4x16x324xf32>
    %31 = arith.subf %3, %30 : vector<4x16x324xf32>
    %32 = vector.broadcast %21 : vector<4x1x324xf32> to vector<4x16x324xf32>
    %33 = arith.mulf %32, %31 : vector<4x16x324xf32>
    %34 = arith.mulf %33, %31 : vector<4x16x324xf32>
    %cst_29 = arith.constant dense<0.000000e+00> : vector<16x324xf32>
    %35 = vector.multi_reduction <add>, %34, %cst_29 [0] : vector<4x16x324xf32> to vector<16x324xf32>
    %cst_30 = arith.constant dense<0.000000e+00> : vector<16x36xf32>
    %36 = tpu.matmul %35, %11, %cst_30 {dimension_numbers = #tpu.dot_dimension_numbers<[1], [0], [0], [1], [0, 0, 1, 1], [], []>} : vector<16x324xf32>, vector<324x36xf32>, vector<16x36xf32> -> vector<16x36xf32>
    %37 = vector.broadcast %20 : vector<1x36xf32> to vector<16x36xf32>
    %38 = arith.mulf %36, %37 : vector<16x36xf32>
    %cst_31 = arith.constant 0.00999999977 : f32
    %39 = vector.broadcast %cst_31 : f32 to vector<16x36xf32>
    %40 = arith.maximumf %38, %39 : vector<16x36xf32>
    %41 = math.log %40 : vector<16x36xf32>
    %42 = vector.broadcast %0 : f32 to vector<16x36xf32>
    %43 = arith.addf %42, %41 : vector<16x36xf32>
    %44 = vector.broadcast %19 : vector<1x36xf32> to vector<16x36xf32>
    %45 = arith.mulf %43, %44 : vector<16x36xf32>
    %cst_32 = arith.constant dense<0.000000e+00> : vector<36xf32>
    %46 = vector.multi_reduction <add>, %45, %cst_32 [0] : vector<16x36xf32> to vector<36xf32>
    %47 = vector.shape_cast %46 : vector<36xf32> to vector<1x36xf32>
    %48 = arith.subf %8, %47 : vector<1x36xf32>
    %49 = vector.broadcast %1 : f32 to vector<1x36xf32>
    %50 = arith.mulf %49, %48 : vector<1x36xf32>
    %51 = arith.negf %50 : vector<1x36xf32>
    %52 = math.exp %51 : vector<1x36xf32>
    %cst_33 = arith.constant 1.000000e+00 : f32
    %53 = vector.broadcast %cst_33 : f32 to vector<1x36xf32>
    %54 = arith.addf %53, %52 : vector<1x36xf32>
    %55 = arith.divf %53, %54 : vector<1x36xf32>
    %cst_34 = arith.constant dense<0.000000e+00> : vector<36xf32>
    %56 = vector.multi_reduction <add>, %41, %cst_34 [0] : vector<16x36xf32> to vector<36xf32>
    %57 = vector.shape_cast %56 : vector<36xf32> to vector<1x36xf32>
    %cst_35 = arith.constant 29.4060326 : f32
    %58 = vector.broadcast %cst_35 : f32 to vector<1x36xf32>
    %59 = arith.addf %57, %58 : vector<1x36xf32>
    %cst_36 = arith.constant 5.000000e-01 : f32
    %60 = vector.broadcast %cst_36 : f32 to vector<1x36xf32>
    %61 = arith.mulf %60, %59 : vector<1x36xf32>
    %cst_37 = arith.constant dense<0.000000e+00> : vector<1x324xf32>
    %62 = tpu.matmul %61, %12, %cst_37 {dimension_numbers = #tpu.dot_dimension_numbers<[1], [0], [0], [1], [0, 0, 1, 1], [], []>} : vector<1x36xf32>, vector<36x324xf32>, vector<1x324xf32> -> vector<1x324xf32>
    %cst_38 = arith.constant dense<0.000000e+00> : vector<1x324xf32>
    %63 = tpu.matmul %55, %12, %cst_38 {dimension_numbers = #tpu.dot_dimension_numbers<[1], [0], [0], [1], [0, 0, 1, 1], [], []>} : vector<1x36xf32>, vector<36x324xf32>, vector<1x324xf32> -> vector<1x324xf32>
    %64 = vector.shape_cast %28 : vector<16x324xf32> to vector<16x1x324xf32>
    %65 = vector.broadcast %64 : vector<16x1x324xf32> to vector<16x4x324xf32>
    %66 = arith.subf %5, %65 : vector<16x4x324xf32>
    %67 = arith.mulf %66, %66 : vector<16x4x324xf32>
    %cst_39 = arith.constant dense<0.000000e+00> : vector<4x324xf32>
    %68 = vector.multi_reduction <add>, %67, %cst_39 [0] : vector<16x4x324xf32> to vector<4x324xf32>
    %cst_40 = arith.constant 0.000000e+00 : f32
    %69 = vector.broadcast %cst_40 : f32 to vector<4x324xf32>
    %70 = arith.subf %69, %68 : vector<4x324xf32>
    %71 = vector.broadcast %62 : vector<1x324xf32> to vector<4x324xf32>
    %72 = arith.subf %70, %71 : vector<4x324xf32>
    %73 = math.exp %72 : vector<4x324xf32>
    %74 = vector.broadcast %63 : vector<1x324xf32> to vector<4x324xf32>
    %75 = arith.mulf %74, %73 : vector<4x324xf32>
    %cst_41 = arith.constant dense<0.000000e+00> : vector<4x49xf32>
    %76 = tpu.matmul %75, %9, %cst_41 {dimension_numbers = #tpu.dot_dimension_numbers<[1], [0], [0], [1], [0, 0, 1, 1], [], []>} : vector<4x324xf32>, vector<324x49xf32>, vector<4x49xf32> -> vector<4x49xf32>
    %cst_42 = arith.constant dense<0.000000e+00> : vector<4x324xf32>
    %77 = tpu.matmul %76, %10, %cst_42 {dimension_numbers = #tpu.dot_dimension_numbers<[1], [0], [0], [1], [0, 0, 1, 1], [], []>} : vector<4x49xf32>, vector<49x324xf32>, vector<4x324xf32> -> vector<4x324xf32>
    %78 = tpu.reciprocal %77 {approx = true} : vector<4x324xf32> -> vector<4x324xf32>
    %79 = arith.mulf %75, %78 : vector<4x324xf32>
    %80 = arith.mulf %79, %7 : vector<4x324xf32>
    %cst_43 = arith.constant 0.00999999977 : f32
    %81 = vector.broadcast %cst_43 : f32 to vector<4x324xf32>
    %82 = arith.maximumf %80, %81 : vector<4x324xf32>
    %cst_44 = arith.constant dense<0.000000e+00> : vector<324xf32>
    %83 = vector.multi_reduction <add>, %82, %cst_44 [0] : vector<4x324xf32> to vector<324xf32>
    %84 = vector.shape_cast %83 : vector<324xf32> to vector<1x324xf32>
    %cst_45 = arith.constant dense<0.000000e+00> : vector<1x36xf32>
    %85 = tpu.matmul %84, %11, %cst_45 {dimension_numbers = #tpu.dot_dimension_numbers<[1], [0], [0], [1], [0, 0, 1, 1], [], []>} : vector<1x324xf32>, vector<324x36xf32>, vector<1x36xf32> -> vector<1x36xf32>
    %86 = tpu.reciprocal %85 {approx = true} : vector<1x36xf32> -> vector<1x36xf32>
    %87 = vector.shape_cast %82 : vector<4x324xf32> to vector<4x1x324xf32>
    %88 = vector.broadcast %87 : vector<4x1x324xf32> to vector<4x16x324xf32>
    %89 = arith.mulf %88, %3 : vector<4x16x324xf32>
    %cst_46 = arith.constant dense<0.000000e+00> : vector<16x324xf32>
    %90 = vector.multi_reduction <add>, %89, %cst_46 [0] : vector<4x16x324xf32> to vector<16x324xf32>
    %cst_47 = arith.constant dense<0.000000e+00> : vector<16x36xf32>
    %91 = tpu.matmul %90, %11, %cst_47 {dimension_numbers = #tpu.dot_dimension_numbers<[1], [0], [0], [1], [0, 0, 1, 1], [], []>} : vector<16x324xf32>, vector<324x36xf32>, vector<16x36xf32> -> vector<16x36xf32>
    %92 = vector.broadcast %86 : vector<1x36xf32> to vector<16x36xf32>
    %93 = arith.mulf %91, %92 : vector<16x36xf32>
    %cst_48 = arith.constant dense<0.000000e+00> : vector<16x324xf32>
    %94 = tpu.matmul %93, %12, %cst_48 {dimension_numbers = #tpu.dot_dimension_numbers<[1], [0], [0], [1], [0, 0, 1, 1], [], []>} : vector<16x36xf32>, vector<36x324xf32>, vector<16x324xf32> -> vector<16x324xf32>
    %95 = vector.shape_cast %94 : vector<16x324xf32> to vector<1x16x324xf32>
    %96 = vector.broadcast %95 : vector<1x16x324xf32> to vector<4x16x324xf32>
    %97 = arith.subf %3, %96 : vector<4x16x324xf32>
    %98 = vector.broadcast %87 : vector<4x1x324xf32> to vector<4x16x324xf32>
    %99 = arith.mulf %98, %97 : vector<4x16x324xf32>
    %100 = arith.mulf %99, %97 : vector<4x16x324xf32>
    %cst_49 = arith.constant dense<0.000000e+00> : vector<16x324xf32>
    %101 = vector.multi_reduction <add>, %100, %cst_49 [0] : vector<4x16x324xf32> to vector<16x324xf32>
    %cst_50 = arith.constant dense<0.000000e+00> : vector<16x36xf32>
    %102 = tpu.matmul %101, %11, %cst_50 {dimension_numbers = #tpu.dot_dimension_numbers<[1], [0], [0], [1], [0, 0, 1, 1], [], []>} : vector<16x324xf32>, vector<324x36xf32>, vector<16x36xf32> -> vector<16x36xf32>
    %103 = vector.broadcast %86 : vector<1x36xf32> to vector<16x36xf32>
    %104 = arith.mulf %102, %103 : vector<16x36xf32>
    %cst_51 = arith.constant 0.00999999977 : f32
    %105 = vector.broadcast %cst_51 : f32 to vector<16x36xf32>
    %106 = arith.maximumf %104, %105 : vector<16x36xf32>
    %107 = math.log %106 : vector<16x36xf32>
    %108 = vector.broadcast %0 : f32 to vector<16x36xf32>
    %109 = arith.addf %108, %107 : vector<16x36xf32>
    %110 = vector.broadcast %85 : vector<1x36xf32> to vector<16x36xf32>
    %111 = arith.mulf %109, %110 : vector<16x36xf32>
    %cst_52 = arith.constant dense<0.000000e+00> : vector<36xf32>
    %112 = vector.multi_reduction <add>, %111, %cst_52 [0] : vector<16x36xf32> to vector<36xf32>
    %113 = vector.shape_cast %112 : vector<36xf32> to vector<1x36xf32>
    %114 = arith.subf %8, %113 : vector<1x36xf32>
    %115 = vector.broadcast %1 : f32 to vector<1x36xf32>
    %116 = arith.mulf %115, %114 : vector<1x36xf32>
    %117 = arith.negf %116 : vector<1x36xf32>
    %118 = math.exp %117 : vector<1x36xf32>
    %cst_53 = arith.constant 1.000000e+00 : f32
    %119 = vector.broadcast %cst_53 : f32 to vector<1x36xf32>
    %120 = arith.addf %119, %118 : vector<1x36xf32>
    %121 = arith.divf %119, %120 : vector<1x36xf32>
    %cst_54 = arith.constant dense<0.000000e+00> : vector<36xf32>
    %122 = vector.multi_reduction <add>, %107, %cst_54 [0] : vector<16x36xf32> to vector<36xf32>
    %123 = vector.shape_cast %122 : vector<36xf32> to vector<1x36xf32>
    %cst_55 = arith.constant 29.4060326 : f32
    %124 = vector.broadcast %cst_55 : f32 to vector<1x36xf32>
    %125 = arith.addf %123, %124 : vector<1x36xf32>
    %cst_56 = arith.constant 5.000000e-01 : f32
    %126 = vector.broadcast %cst_56 : f32 to vector<1x36xf32>
    %127 = arith.mulf %126, %125 : vector<1x36xf32>
    %cst_57 = arith.constant dense<0.000000e+00> : vector<1x324xf32>
    %128 = tpu.matmul %127, %12, %cst_57 {dimension_numbers = #tpu.dot_dimension_numbers<[1], [0], [0], [1], [0, 0, 1, 1], [], []>} : vector<1x36xf32>, vector<36x324xf32>, vector<1x324xf32> -> vector<1x324xf32>
    %cst_58 = arith.constant dense<0.000000e+00> : vector<1x324xf32>
    %129 = tpu.matmul %121, %12, %cst_58 {dimension_numbers = #tpu.dot_dimension_numbers<[1], [0], [0], [1], [0, 0, 1, 1], [], []>} : vector<1x36xf32>, vector<36x324xf32>, vector<1x324xf32> -> vector<1x324xf32>
    %130 = vector.shape_cast %94 : vector<16x324xf32> to vector<16x1x324xf32>
    %131 = vector.broadcast %130 : vector<16x1x324xf32> to vector<16x4x324xf32>
    %132 = arith.subf %5, %131 : vector<16x4x324xf32>
    %133 = arith.mulf %132, %132 : vector<16x4x324xf32>
    %cst_59 = arith.constant dense<0.000000e+00> : vector<4x324xf32>
    %134 = vector.multi_reduction <add>, %133, %cst_59 [0] : vector<16x4x324xf32> to vector<4x324xf32>
    %cst_60 = arith.constant 0.000000e+00 : f32
    %135 = vector.broadcast %cst_60 : f32 to vector<4x324xf32>
    %136 = arith.subf %135, %134 : vector<4x324xf32>
    %137 = vector.broadcast %128 : vector<1x324xf32> to vector<4x324xf32>
    %138 = arith.subf %136, %137 : vector<4x324xf32>
    %139 = math.exp %138 : vector<4x324xf32>
    %140 = vector.broadcast %129 : vector<1x324xf32> to vector<4x324xf32>
    %141 = arith.mulf %140, %139 : vector<4x324xf32>
    %cst_61 = arith.constant dense<0.000000e+00> : vector<4x49xf32>
    %142 = tpu.matmul %141, %9, %cst_61 {dimension_numbers = #tpu.dot_dimension_numbers<[1], [0], [0], [1], [0, 0, 1, 1], [], []>} : vector<4x324xf32>, vector<324x49xf32>, vector<4x49xf32> -> vector<4x49xf32>
    %cst_62 = arith.constant dense<0.000000e+00> : vector<4x324xf32>
    %143 = tpu.matmul %142, %10, %cst_62 {dimension_numbers = #tpu.dot_dimension_numbers<[1], [0], [0], [1], [0, 0, 1, 1], [], []>} : vector<4x49xf32>, vector<49x324xf32>, vector<4x324xf32> -> vector<4x324xf32>
    %144 = tpu.reciprocal %143 {approx = true} : vector<4x324xf32> -> vector<4x324xf32>
    %145 = arith.mulf %141, %144 : vector<4x324xf32>
    %146 = arith.mulf %145, %7 : vector<4x324xf32>
    %cst_63 = arith.constant 0.00999999977 : f32
    %147 = vector.broadcast %cst_63 : f32 to vector<4x324xf32>
    %148 = arith.maximumf %146, %147 : vector<4x324xf32>
    %cst_64 = arith.constant dense<0.000000e+00> : vector<324xf32>
    %149 = vector.multi_reduction <add>, %148, %cst_64 [0] : vector<4x324xf32> to vector<324xf32>
    %150 = vector.shape_cast %149 : vector<324xf32> to vector<1x324xf32>
    %cst_65 = arith.constant dense<0.000000e+00> : vector<1x36xf32>
    %151 = tpu.matmul %150, %11, %cst_65 {dimension_numbers = #tpu.dot_dimension_numbers<[1], [0], [0], [1], [0, 0, 1, 1], [], []>} : vector<1x324xf32>, vector<324x36xf32>, vector<1x36xf32> -> vector<1x36xf32>
    %152 = tpu.reciprocal %151 {approx = true} : vector<1x36xf32> -> vector<1x36xf32>
    %153 = vector.shape_cast %148 : vector<4x324xf32> to vector<4x1x324xf32>
    %154 = vector.broadcast %153 : vector<4x1x324xf32> to vector<4x16x324xf32>
    %155 = arith.mulf %154, %3 : vector<4x16x324xf32>
    %cst_66 = arith.constant dense<0.000000e+00> : vector<16x324xf32>
    %156 = vector.multi_reduction <add>, %155, %cst_66 [0] : vector<4x16x324xf32> to vector<16x324xf32>
    %cst_67 = arith.constant dense<0.000000e+00> : vector<16x36xf32>
    %157 = tpu.matmul %156, %11, %cst_67 {dimension_numbers = #tpu.dot_dimension_numbers<[1], [0], [0], [1], [0, 0, 1, 1], [], []>} : vector<16x324xf32>, vector<324x36xf32>, vector<16x36xf32> -> vector<16x36xf32>
    %158 = vector.broadcast %152 : vector<1x36xf32> to vector<16x36xf32>
    %159 = arith.mulf %157, %158 : vector<16x36xf32>
    %cst_68 = arith.constant dense<0.000000e+00> : vector<16x324xf32>
    %160 = tpu.matmul %159, %12, %cst_68 {dimension_numbers = #tpu.dot_dimension_numbers<[1], [0], [0], [1], [0, 0, 1, 1], [], []>} : vector<16x36xf32>, vector<36x324xf32>, vector<16x324xf32> -> vector<16x324xf32>
    %161 = vector.shape_cast %160 : vector<16x324xf32> to vector<1x16x324xf32>
    %162 = vector.broadcast %161 : vector<1x16x324xf32> to vector<4x16x324xf32>
    %163 = arith.subf %3, %162 : vector<4x16x324xf32>
    %164 = vector.broadcast %153 : vector<4x1x324xf32> to vector<4x16x324xf32>
    %165 = arith.mulf %164, %163 : vector<4x16x324xf32>
    %166 = arith.mulf %165, %163 : vector<4x16x324xf32>
    %cst_69 = arith.constant dense<0.000000e+00> : vector<16x324xf32>
    %167 = vector.multi_reduction <add>, %166, %cst_69 [0] : vector<4x16x324xf32> to vector<16x324xf32>
    %cst_70 = arith.constant dense<0.000000e+00> : vector<16x36xf32>
    %168 = tpu.matmul %167, %11, %cst_70 {dimension_numbers = #tpu.dot_dimension_numbers<[1], [0], [0], [1], [0, 0, 1, 1], [], []>} : vector<16x324xf32>, vector<324x36xf32>, vector<16x36xf32> -> vector<16x36xf32>
    %169 = vector.broadcast %152 : vector<1x36xf32> to vector<16x36xf32>
    %170 = arith.mulf %168, %169 : vector<16x36xf32>
    %cst_71 = arith.constant 0.00999999977 : f32
    %171 = vector.broadcast %cst_71 : f32 to vector<16x36xf32>
    %172 = arith.maximumf %170, %171 : vector<16x36xf32>
    %173 = math.log %172 : vector<16x36xf32>
    %174 = vector.broadcast %0 : f32 to vector<16x36xf32>
    %175 = arith.addf %174, %173 : vector<16x36xf32>
    %176 = vector.broadcast %151 : vector<1x36xf32> to vector<16x36xf32>
    %177 = arith.mulf %175, %176 : vector<16x36xf32>
    %cst_72 = arith.constant dense<0.000000e+00> : vector<36xf32>
    %178 = vector.multi_reduction <add>, %177, %cst_72 [0] : vector<16x36xf32> to vector<36xf32>
    %179 = vector.shape_cast %178 : vector<36xf32> to vector<1x36xf32>
    %180 = arith.subf %8, %179 : vector<1x36xf32>
    %181 = vector.broadcast %1 : f32 to vector<1x36xf32>
    %182 = arith.mulf %181, %180 : vector<1x36xf32>
    %183 = arith.negf %182 : vector<1x36xf32>
    %184 = math.exp %183 : vector<1x36xf32>
    %cst_73 = arith.constant 1.000000e+00 : f32
    %185 = vector.broadcast %cst_73 : f32 to vector<1x36xf32>
    %186 = arith.addf %185, %184 : vector<1x36xf32>
    %187 = arith.divf %185, %186 : vector<1x36xf32>
    %c0_74 = arith.constant 0 : index
    %c0_75 = arith.constant 0 : index
    %c0_76 = arith.constant 0 : index
    %188 = vector.load %arg10[%c0_74, %c0_75, %c0_76] : memref<1x16x36xf32, #tpu.memory_space<vmem>>, vector<1x16x36xf32>
    %189 = vector.shape_cast %188 : vector<1x16x36xf32> to vector<16x36xf32>
    %190 = vector.shape_cast %159 : vector<16x36xf32> to vector<1x16x36xf32>
    tpu.vector_store %arg10[%c0_74, %c0_75, %c0_76], %190 {strides = array<i32>} : memref<1x16x36xf32, #tpu.memory_space<vmem>>, vector<1x16x36xf32>,
    %c0_77 = arith.constant 0 : index
    %c0_78 = arith.constant 0 : index
    %c0_79 = arith.constant 0 : index
    %191 = vector.load %arg11[%c0_77, %c0_78, %c0_79] : memref<1x1x36xf32, #tpu.memory_space<vmem>>, vector<1x1x36xf32>
    %192 = vector.shape_cast %191 : vector<1x1x36xf32> to vector<1x36xf32>
    %193 = vector.shape_cast %187 : vector<1x36xf32> to vector<1x1x36xf32>
    tpu.vector_store %arg11[%c0_77, %c0_78, %c0_79], %193 {strides = array<i32>} : memref<1x1x36xf32, #tpu.memory_space<vmem>>, vector<1x1x36xf32>,
    return
  }
  func.func @transform_0(%arg0: i32) -> (i32, i32, i32, i32) {
    %c0_i32 = arith.constant 0 : i32
    %c0_i32_0 = arith.constant 0 : i32
    %c0_i32_1 = arith.constant 0 : i32
    %c0_i32_2 = arith.constant 0 : i32
    return %arg0, %c0_i32, %c0_i32_0, %c0_i32_1 : i32, i32, i32, i32
  }
  func.func @transform_1(%arg0: i32) -> (i32, i32, i32, i32) {
    %c0_i32 = arith.constant 0 : i32
    %c0_i32_0 = arith.constant 0 : i32
    %c0_i32_1 = arith.constant 0 : i32
    %c0_i32_2 = arith.constant 0 : i32
    return %arg0, %c0_i32, %c0_i32_0, %c0_i32_1 : i32, i32, i32, i32
  }
  func.func @transform_2(%arg0: i32) -> (i32, i32, i32) {
    %c0_i32 = arith.constant 0 : i32
    %c0_i32_0 = arith.constant 0 : i32
    %c0_i32_1 = arith.constant 0 : i32
    return %arg0, %c0_i32, %c0_i32_0 : i32, i32, i32
  }
  func.func @transform_3(%arg0: i32) -> (i32, i32) {
    %c0_i32 = arith.constant 0 : i32
    %c0_i32_0 = arith.constant 0 : i32
    %c0_i32_1 = arith.constant 0 : i32
    return %c0_i32, %c0_i32_0 : i32, i32
  }
  func.func @transform_4(%arg0: i32) -> (i32, i32) {
    %c0_i32 = arith.constant 0 : i32
    %c0_i32_0 = arith.constant 0 : i32
    %c0_i32_1 = arith.constant 0 : i32
    return %c0_i32, %c0_i32_0 : i32, i32
  }
  func.func @transform_5(%arg0: i32) -> (i32, i32) {
    %c0_i32 = arith.constant 0 : i32
    %c0_i32_0 = arith.constant 0 : i32
    %c0_i32_1 = arith.constant 0 : i32
    return %c0_i32, %c0_i32_0 : i32, i32
  }
  func.func @transform_6(%arg0: i32) -> (i32, i32) {
    %c0_i32 = arith.constant 0 : i32
    %c0_i32_0 = arith.constant 0 : i32
    %c0_i32_1 = arith.constant 0 : i32
    return %c0_i32, %c0_i32_0 : i32, i32
  }
  func.func @transform_7(%arg0: i32) -> (i32, i32) {
    %c0_i32 = arith.constant 0 : i32
    %c0_i32_0 = arith.constant 0 : i32
    %c0_i32_1 = arith.constant 0 : i32
    return %c0_i32, %c0_i32_0 : i32, i32
  }
  func.func @transform_8(%arg0: i32) -> (i32, i32) {
    %c0_i32 = arith.constant 0 : i32
    %c0_i32_0 = arith.constant 0 : i32
    %c0_i32_1 = arith.constant 0 : i32
    return %c0_i32, %c0_i32_0 : i32, i32
  }
  func.func @transform_9(%arg0: i32) -> (i32, i32, i32) {
    %c0_i32 = arith.constant 0 : i32
    %c0_i32_0 = arith.constant 0 : i32
    %c0_i32_1 = arith.constant 0 : i32
    return %arg0, %c0_i32, %c0_i32_0 : i32, i32, i32
  }
  func.func @transform_10(%arg0: i32) -> (i32, i32, i32) {
    %c0_i32 = arith.constant 0 : i32
    %c0_i32_0 = arith.constant 0 : i32
    %c0_i32_1 = arith.constant 0 : i32
    return %arg0, %c0_i32, %c0_i32_0 : i32, i32, i32
  }
}

</mosaic_0001>

<bundles_post_ra>
// kernel: custom-call.4
= control target key start
LH: loop header
LB: loop body
LE: loop exit
PB: predicated region body
PF: predicated region fallthrough
CT: control target
= control target key end

     0   :  { %s6_s0 = inlined_call_operand.vmem [shape: f32[3,2,4,3,4,3,3,4,4], index: 0, kind: output, shape index: {}]  }

// kernel: custom-call.5
= control target key start
LH: loop header
LB: loop body
LE: loop exit
PB: predicated region body
PF: predicated region fallthrough
CT: control target
= control target key end

     0   :  { %s6_s0 = inlined_call_operand.vmem [shape: f32[3,2,4,3,4,3,3,4,4], index: 0, kind: output, shape index: {}]  }

// kernel: convcaps_forward.1
= control target key start
LH: loop header
LB: loop body
LE: loop exit
PB: predicated region body
PF: predicated region fallthrough
CT: control target
= control target key end

     0   :  { %16 = vsyncpa [#allocation3], 0  ;;  %s4536_s13 = smov 0   ;;  %s7956_s0 = inlined_call_operand.vmem [shape: f32[2,4,16,324], index: 0, kind: input, shape index: {}]   ;;  %s7957_s1 = inlined_call_operand.vmem [shape: f32[2,16,4,324], index: 1, kind: input, shape index: {}]   ;;  %s7958_s2 = inlined_call_operand.vmem [shape: f32[2,4,324], index: 2, kind: input, shape index: {}]   ;;  %s7959_s3 = inlined_call_operand.vmem [shape: f32[1,36], index: 3, kind: input, shape index: {}]   ;;  %s7960_s4 = inlined_call_operand.vmem [shape: f32[324,49], index: 4, kind: input, shape index: {}]   ;;  %s7961_s5 = inlined_call_operand.vmem [shape: f32[49,324], index: 5, kind: input, shape index: {}]   ;;  %s7962_s6 = inlined_call_operand.vmem [shape: f32[324,36], index: 6, kind: input, shape index: {}]   ;;  %s7963_s7 = inlined_call_operand.vmem [shape: f32[36,324], index: 7, kind: input, shape index: {}]   ;;  %s7964_s8 = inlined_call_operand.vmem [shape: f32[1,2], index: 8, kind: input, shape index: {}]   ;;  %s7965_s9 = inlined_call_operand.vmem [shape: f32[2,16,36], index: 9, kind: output, shape index: {0}]   ;;  %s7966_s10 = inlined_call_operand.vmem [shape: f32[2,1,36], index: 10, kind: output, shape index: {1}]  }
   0x1 LB: > { %s4006_s14 = sadd.s32 4294967295, %s4478_s13   ;;  %p4008_p0 = scmp.ge.s32.totalorder %s4478_s13, 1  ;;  %s4478_s13 = sphi %s4536_s13, %s22_s13  }
   0x2   : > { %p283_p1 = scmp.lt.s32.totalorder %s4478_s13, 3  ;;  %s310_s17 = sshll.u32 %s7964_s8, 4  ;;  %s311_s17 = int_to_ptr.vmem [resolvable:$true] %s310_s17 }
   0x3   : > { %p4126_p3 = scmp.eq.s32.totalorder %s4006_s14, 0  ;;  %s4480_s18 = smov [#allocation2]  }
   0x4   : > { %p284_p2 = pnand %p4008_p0, %p283_p1 }
   0x6   : > { %p4122_p4 = pneg %p284_p2  ;;  %347 = sbr.rel (%p284_p2) target bundleno = 2512 (0x9d0), region = 56 }
   0x8   : > { %p4123_p5 = pnand %p4126_p3, %p4122_p4 }
   0xa   : > { %4125 = dma.vmem_to_smem (!%p4123_p5), %s311_s17, 16, %s4480_s18, [#allocation3]  }
   0xb   : > { %4473 = dma.done.wait (%p4126_p3), [#allocation3], 16  }
   0xc   : > { %4475 = vsyncadd (%p4126_p3), [#allocation3], 4294967280 }
   0xd   : > { %354 = sfence }
   0xe   : > { %v4550_v0 = vld [vmem:[%s7962_s6 + $0x140] sm:$0xf]  ;;  %vm617_vm0 = vcmask 1043456   ;;  %v4555_v1 = vld [vmem:[%s7962_s6 + $0x138] sm:$0xff]  ;;  %p400_p6 = scmp.lt.s32.totalorder %s4006_s14, 1  ;;  %v4567_v3 = vld [vmem:[%s7962_s6 + $0x130] sm:$0xff] }
   0xf   : > { %4019 = vmatpush.msk.msra.mxu2 %vm617_vm0, %v4550_v0  ;;  %v4562_v2 = vld [vmem:[%s7962_s6 + $0x78] sm:$0xff]  ;;  %v4573_v4 = vld [vmem:[%s7962_s6 + $0x70] sm:$0xff]  ;;  %v4582_v5 = vld [vmem:[%s7962_s6 + $0x68] sm:$0xff]  ;;  %vm717_vm1 = vcmask 1041409   ;;  %vm711_vm2 = vcmask 1040384   ;;  %vm713_vm3 = vcmask 1042434  }
  0x10   : > { %647 = vmatpush.msra.mxu0 %v4562_v2  ;;  %816 = vmatpush.msra.mxu3 %v4562_v2  ;;  %s8402_s14 = smov (!%p400_p6, %s4006_s14), 1  ;;  %v4587_v6 = vld [vmem:[%s7962_s6 + $0xf8] sm:$0xff]  ;;  %v4592_v7 = vld [vmem:[%s7962_s6 + $0x128] sm:$0xff]  ;;  %v4599_v8 = vld [vmem:[%s7962_s6 + $0xf0] sm:$0xff]  ;;  %vm8010_vm4 = vcmask 1041408   ;;  %vm719_vm5 = vcmask 1043459  }
  0x11   : > { %695 = vmatpush.msra.mxu2 %v4555_v1  ;;  %667 = vmatpush.msra.mxu1 %v4587_v6  ;;  %v4605_v9 = vld [vmem:[%s7962_s6 + $0x60] sm:$0xff]  ;;  %v4610_v10 = vld [vmem:[%s7962_s6 + $0xe8] sm:$0xff]  ;;  %s4117_s25 = smul.u32 12, %s8402_s14  ;;  %v4625_v12 = vld [vmem:[%s7962_s6 + $0x58] sm:$0xff]  ;;  %vm8011_vm6 = vcmask 1042433   ;;  %vm725_vm7 = vcmask 1044484  }
  0x12   : > { %648 = vmatpush.msra.mxu0 %v4573_v4  ;;  %817 = vmatpush.msra.mxu3 %v4573_v4  ;;  %v4616_v11 = vld [vmem:[%s7962_s6 + $0x120] sm:$0xff]  ;;  %v4636_v14 = vld [vmem:[%s7962_s6 + $0x118] sm:$0xff]  ;;  %v4644_v15 = vld [vmem:[%s7962_s6 + $0x50] sm:$0xff]  ;;  %s4116_s19 = smul.u32 192, %s8402_s14  ;;  %vm8009_vm8 = vcmask 1043458   ;;  %vm731_vm9 = vcmask 1045509  }
  0x13   : > { %696 = vmatpush.msra.mxu2 %v4567_v3  ;;  %668 = vmatpush.msra.mxu1 %v4599_v8  ;;  %v4630_v13 = vld [vmem:[%s7962_s6 + $0xe0] sm:$0xff]  ;;  %v4649_v16 = vld [vmem:[%s7962_s6 + $0xd8] sm:$0xff]  ;;  %v4655_v17 = vld [vmem:[%s7962_s6 + $0x110] sm:$0xff]  ;;  %s414_s22 = scalar_lea.vmem %s7958_s2, %s4117_s25  ;;  %vm733_vm10 = vcmask 1044483   ;;  %vm8007_vm11 = vcmask 551936   ;;  %vm640_vm12 = vcmask 556032   ;;  %s422_s25 = scalar_lea.vmem %s7966_s10, %s8402_s14 }
  0x14   : > { %649 = vmatpush.msra.mxu0 %v4582_v5  ;;  %818 = vmatpush.msra.mxu3 %v4582_v5  ;;  %v4666_v18 = vld [vmem:[%s7962_s6 + $0x48] sm:$0xff]  ;;  %v4671_v19 = vld [vmem:[%s7962_s6 + $0xd0] sm:$0xff]  ;;  %v4684_v21 = vld [vmem:[%s7962_s6 + $0x40] sm:$0xff]  ;;  %s4747_s30 = scalar_lea.vmem %s7956_s0, %s4116_s19  ;;  %vm8008_vm13 = vcmask 293888   ;;  %vm8019_vm14 = vcmask 1046534   ;;  %vm8017_vm15 = vcmask 1046528  }
  0x15   : > { %697 = vmatpush.msra.mxu2 %v4592_v7  ;;  %669 = vmatpush.msra.mxu1 %v4610_v10  ;;  %8092 = vst [vmem:[#allocation5_spill] sm:$0xff] %v4666_v18  ;;  %v4677_v20 = vld [vmem:[%s7962_s6 + $0x108] sm:$0xff]  ;;  %v4693_v23 = vld [vmem:[%s414_s22] sm:$0xff]  ;;  %v4710_v28 = vld [vmem:[%s7962_s6 + $0x38] sm:$0xff]  ;;  %s4018_s23 = sld [smem:[#allocation2 + $0x1]]  ;;  %s4115_s21 = sshll.u32 %s8402_s14, 4 }
  0x16   : > { %650 = vmatpush.msra.mxu0 %v4605_v9  ;;  %819 = vmatpush.msra.mxu3 %v4605_v9  ;;  %8093 = vst [vmem:[#allocation6_spill] sm:$0xff] %v4684_v21  ;;  %v4690_v22 = vld [vmem:[%s7962_s6 + $0xc8] sm:$0xff]  ;;  %v4700_v25 = vld [vmem:[%s7962_s6 + $0x100] sm:$0xff]  ;;  %v602_v26 = vmul.f32 0.027777778, %v4693_v23  ;;  %v4725_v32 = vld [vmem:[%s7962_s6 + $0x30] sm:$0xff]  ;;  %s419_s24 = scalar_lea.vmem %s7965_s9, %s4115_s21 }
  0x17   : > { %698 = vmatpush.msra.mxu2 %v4616_v11  ;;  %670 = vmatpush.msra.mxu1 %v4630_v13  ;;  %8094 = vst [vmem:[#allocation7_spill] sm:$0xff] %v4693_v23  ;;  %v4695_v24 = vld [vmem:[%s414_s22 + $0x8] sm:$0xf]  ;;  %v4719_v29 = vld [vmem:[%s7962_s6 + $0xc0] sm:$0xff]  ;;  %v4733_v33 = vld [vmem:[%s7962_s6 + $0xb8] sm:$0xff]  ;;  %s5282_s22 = scalar_lea.vmem %s7957_s1, %s4116_s19  ;;  %s423_s19 = sld [smem:[#allocation2]] }
  0x18   : > { %651 = vmatpush.msra.mxu0 %v4625_v12  ;;  %820 = vmatpush.msra.mxu3 %v4625_v12  ;;  %8095 = vst [vmem:[#allocation8_spill] sm:$0xff] %v4695_v24  ;;  %v603_v27 = vmul.f32 0.027777778, %v4695_v24  ;;  %v604_v30 = vmax.f32 %v602_v26, 0.01  ;;  %v4739_v37 = vld [vmem:[%s7962_s6 + $0x28] sm:$0xff] }
  0x19   : > { %699 = vmatpush.msra.mxu2 %v4636_v14  ;;  %671 = vmatpush.msra.mxu1 %v4649_v16  ;;  %8096 = vst [vmem:[#allocation9_spill] sm:$0xff] %v4710_v28  ;;  %v4754_v38 = vld [vmem:[%s7962_s6 + $0xb0] sm:$0xff]  ;;  %v4763_v42 = vld [vmem:[%s7962_s6 + $0x20] sm:$0xff]  ;;  %v4776_v46 = vld [vmem:[%s7962_s6 + $0x18] sm:$0xff] }
  0x1a   : > { %652 = vmatpush.msra.mxu0 %v4644_v15  ;;  %821 = vmatpush.msra.mxu3 %v4644_v15  ;;  %v605_v31 = vmax.f32 %v603_v27, 0.01  ;;  %8097 = vst [vmem:[#allocation10_spill] sm:$0xff] %v4725_v32  ;;  %v708_v34 = vrot.slane %v604_v30, 3  ;;  %v4781_v47 = vld [vmem:[%s7962_s6 + $0xa8] sm:$0xff]  ;;  %v4784_v48 = vld [vmem:[%s4747_s30] sm:$0xff] }
  0x1b   : > { %700 = vmatpush.msra.mxu2 %v4655_v17  ;;  %672 = vmatpush.msra.mxu1 %v4671_v19  ;;  %8098 = vst [vmem:[#allocation11_spill] sm:$0xff] %v4739_v37  ;;  %v4796_v53 = vld [vmem:[%s7962_s6 + $0x10] sm:$0xff]  ;;  %v4801_v54 = vld [vmem:[%s7962_s6 + $0xa0] sm:$0xff]  ;;  %v4809_v58 = vld [vmem:[%s4747_s30 + $0x18] sm:$0xff] }
  0x1c   : > { %653 = vmatpush.msra.mxu0 %v4666_v18  ;;  %822 = vmatpush.msra.mxu3 %v4666_v18  ;;  %610 = vst [vmem:[#allocation1 + $0x10] ss:$2 sm:$0xff] %v605_v31  ;;  %v709_v35 = vrot.slane %v605_v31, 6  ;;  %v710_v36 = vrot.slane %v605_v31, 1  ;;  %v712_v39 = vsel %vm711_vm2, %v604_v30, %v708_v34  ;;  %v718_v41 = vsel %vm717_vm1, %v604_v30, %v708_v34  ;;  %v4816_v59 = vld [vmem:[%s7962_s6 + $0x98] sm:$0xff]  ;;  %v4819_v60 = vld [vmem:[%s4747_s30 + $0x30] sm:$0xff] }
  0x1d   : > { %701 = vmatpush.msra.mxu2 %v4677_v20  ;;  %673 = vmatpush.msra.mxu1 %v4690_v22  ;;  %608 = vst [vmem:[#allocation1] ss:$2 sm:$0xff] %v604_v30  ;;  %v724_v45 = vsel %vm713_vm3, %v604_v30, %v708_v34  ;;  %v730_v51 = vsel %vm719_vm5, %v604_v30, %v708_v34  ;;  %v4822_v61 = vld [vmem:[%s4747_s30 + $0x60] sm:$0xff]  ;;  %v4825_v62 = vld [vmem:[%s4747_s30 + $0x90] sm:$0xff]  ;;  %v4834_v27 = vld [vmem:[%s7962_s6 + $0x8] sm:$0xff] }
  0x1e   : > { %654 = vmatpush.msra.mxu0 %v4684_v21  ;;  %823 = vmatpush.msra.mxu3 %v4684_v21  ;;  %v714_v40 = vsel %vm713_vm3, %v709_v35, %v710_v36  ;;  %8099 = vst [vmem:[#allocation12_spill] sm:$0xff] %v4763_v42  ;;  %v720_v44 = vsel %vm719_vm5, %v709_v35, %v710_v36  ;;  %v4877_v23 = vld [vmem:[%s7962_s6 + $0x90] sm:$0xff] }
  0x1f   : > { %702 = vmatpush.msra.mxu2 %v4700_v25  ;;  %674 = vmatpush.msra.mxu1 %v4719_v29  ;;  %v4767_v43 = vsel %vm8010_vm4, %v712_v39, %v714_v40  ;;  %8100 = vst [vmem:[#allocation13_spill] sm:$0xff] %v4776_v46  ;;  %v722_v49 = vsel %vm8011_vm6, %v718_v41, %v720_v44  ;;  %v4848_v39 = vld [vmem:[%s4747_s30 + $0x38] sm:$0xff] }
  0x20   : > { %655 = vmatpush.msra.mxu0 %v4710_v28  ;;  %824 = vmatpush.msra.mxu3 %v4710_v28  ;;  %8101 = vst [vmem:[#allocation14_spill] sm:$0xff] %v4784_v48  ;;  %v726_v50 = vsel %vm725_vm7, %v709_v35, %v710_v36  ;;  %v4790_v52 = vperm.slane %v4767_v43, 0  ;;  %v4804_v55 = vrot.slane %v722_v49, 1  ;;  %v732_v57 = vsel %vm731_vm9, %v709_v35, %v710_v36  ;;  %v4845_v36 = vld [vmem:[%s4747_s30 + $0x8] sm:$0xff] }
  0x21   : > { %839 = vmatpush.msrb.mxu2 %v4587_v6  ;;  %675 = vmatpush.msra.mxu1 %v4733_v33  ;;  %8103 = vst [vmem:[#allocation16_spill] sm:$0xff] %v4796_v53  ;;  %v728_v56 = vsel %vm8009_vm8, %v724_v45, %v726_v50  ;;  %v734_v26 = vsel %vm733_vm10, %v730_v51, %v732_v57  ;;  %v4851_v40 = vperm.slane %v4767_v43, 1 }
  0x22   : > { %656 = vmatpush.msra.mxu0 %v4725_v32  ;;  %825 = vmatpush.msra.mxu3 %v4725_v32  ;;  %8102 = vst [vmem:[#allocation15_spill] sm:$0xff] %v4790_v52  ;;  %v4827_v63 = vrot.slane %v728_v56, 2  ;;  %v4837_v31 = vrot.slane %v734_v26, 3  ;;  %v4840_v34 = vperm.slane %v4804_v55, 0  ;;  %v760_v35 = vmul.f32 %v4790_v52, %v4784_v48 }
  0x23   : > { %840 = vmatpush.msrb.mxu2 %v4599_v8  ;;  %676 = vmatpush.msra.mxu1 %v4754_v38  ;;  %8104 = vst [vmem:[#allocation17_spill] sm:$0xff] %v4809_v58  ;;  %v613_v30 = vld.sshfl [vmem:[#allocation1 + $0x10] sm:$0xff pattern:$0x75316420]  ;;  %v4860_v49 = vperm.slane %v4804_v55, 1  ;;  %v763_v50 = vmul.f32 %v4790_v52, %v4809_v58 }
  0x24   : > { %657 = vmatpush.msra.mxu0 %v4739_v37  ;;  %826 = vmatpush.msra.mxu3 %v4739_v37  ;;  %8105 = vst [vmem:[#allocation18_spill] sm:$0xff] %v4819_v60  ;;  %v633_v41 = vsel %vm8007_vm11, %v613_v30, 0.0  ;;  %v611_v44 = vld.sshfl [vmem:[#allocation1] sm:$0xff pattern:$0x75316420]  ;;  %v4857_v45 = vperm.slane %v4827_v63, 0  ;;  %v766_v30 = vmul.f32 %v4840_v34, %v4819_v60 }
  0x25   : > { %841 = vmatpush.msrb.mxu2 %v4610_v10  ;;  %8106 = vst [vmem:[#allocation19_spill] sm:$0xff] %v4822_v61  ;;  %677 = vmatpush.msra.mxu1 %v4781_v47  ;;  %v634_v51 = vrot.slane %v633_v41, 4  ;;  %v618_v56 = vsel %vm617_vm0, %v611_v44, 0.0  ;;  %v612_v57 = vld.sshfl [vmem:[#allocation1 + $0x8] sm:$0xff pattern:$0x75316420] }
  0x26   : > { %658 = vmatpush.msra.mxu0 %v4763_v42  ;;  %8107 = vst [vmem:[#allocation20_spill] sm:$0xff] %v4825_v62  ;;  %827 = vmatpush.msra.mxu3 %v4763_v42  ;;  %v4868_v26 = vperm.slane %v4837_v31, 0  ;;  %v619_v24 = vrot.slane %v618_v56, 4  ;;  %v625_v44 = vsel %vm617_vm0, %v612_v57, 0.0  ;;  %v772_v58 = vmul.f32 %v4857_v45, %v4822_v61  ;;  %v4889_v60 = vld [vmem:[%s7962_s6] sm:$0xff]  ;;  %v4895_v37 = vld [vmem:[%s4747_s30 + $0x48] sm:$0xff] }
  0x27   : > { %842 = vmatpush.msrb.mxu2 %v4630_v13  ;;  %8108 = vst [vmem:[#allocation21_spill] sm:$0xff] %v4834_v27  ;;  %678 = vmatpush.msra.mxu1 %v4801_v54  ;;  %v4883_v52 = vperm.slane %v4827_v63, 1  ;;  %v635_v48 = vadd.f32 %v634_v51, %v633_v41  ;;  %v784_v42 = vadd.f32 %v766_v30, %v760_v35  ;;  %v4898_v61 = vld [vmem:[%s4747_s30 + $0x78] sm:$0xff]  ;;  %v4905_v41 = vld [vmem:[%s7962_s6 + $0x88] sm:$0xff]  ;;  %vm8018_vm11 = vcmask 1045508  }
  0x28   : > { %8109 = vst [vmem:[#allocation22_spill] sm:$0xff] %v4845_v36  ;;  %659 = vmatpush.msra.mxu0 %v4776_v46  ;;  %828 = vmatpush.msra.mxu3 %v4776_v46  ;;  %v626_v46 = vrot.slane %v625_v44, 4  ;;  %v778_v57 = vmul.f32 %v4868_v26, %v4825_v62  ;;  %v620_v51 = vadd.f32 %v619_v24, %v618_v56  ;;  %v4921_v24 = vld [vmem:[%s7962_s6 + $0x80] sm:$0xff] }
  0x29   : > { %8110 = vst [vmem:[#allocation23_spill] sm:$0xff] %v4848_v39  ;;  %843 = vmatpush.msrb.mxu2 %v4649_v16  ;;  %679 = vmatpush.msra.mxu1 %v4816_v59  ;;  %v761_v35 = vmul.f32 %v4851_v40, %v4845_v36  ;;  %v767_v30 = vmul.f32 %v4860_v49, %v4848_v39  ;;  %v636_v62 = vrot.slane %v635_v48, 2  ;;  %v4924_v39 = vperm.slane %v4837_v31, 1  ;;  %v4927_v36 = vld [vmem:[%s4747_s30 + $0xa8] sm:$0xff] }
  0x2a   : > { %8111 = vst [vmem:[#allocation24_spill] sm:$0xff] %v4857_v45  ;;  %660 = vmatpush.msra.mxu0 %v4796_v53  ;;  %829 = vmatpush.msra.mxu3 %v4796_v53  ;;  %v4908_v53 = vld [vmem:[%s4747_s30 + $0x68] sm:$0xff]  ;;  %v627_v32 = vadd.f32 %v626_v46, %v625_v44  ;;  %v785_v28 = vadd.f32 %v784_v42, %v772_v58  ;;  %v621_v56 = vrot.slane %v620_v51, 2 }
  0x2b   : > { %8112 = vst [vmem:[#allocation25_spill] sm:$0xff] %v4868_v26  ;;  %844 = vmatpush.msrb.mxu2 %v4671_v19  ;;  %680 = vmatpush.msra.mxu1 %v4877_v23  ;;  %v769_v46 = vmul.f32 %v4840_v34, %v4895_v37  ;;  %v775_v42 = vmul.f32 %v4857_v45, %v4898_v61 }
  0x2c   : > { %8113 = vst [vmem:[#allocation26_spill] sm:$0xff] %v4895_v37  ;;  %661 = vmatpush.msra.mxu0 %v4834_v27  ;;  %830 = vmatpush.msra.mxu3 %v4834_v27  ;;  %v637_v58 = vadd.f32 %v636_v62, %v635_v48  ;;  %v628_v44 = vrot.slane %v627_v32, 2  ;;  %v786_v27 = vadd.f32 %v785_v28, %v778_v57  ;;  %v4941_v37 = vperm.slane %v4767_v43, 2 }
  0x2d   : > { %8114 = vst [vmem:[#allocation27_spill] sm:$0xff] %v4898_v61  ;;  %845 = vmatpush.msrb.mxu2 %v4690_v22  ;;  %681 = vmatpush.msra.mxu1 %v4905_v41  ;;  %v773_v21 = vmul.f32 %v4883_v52, %v4908_v53  ;;  %v622_v18 = vadd.f32 %v621_v56, %v620_v51  ;;  %v4944_v61 = vld [vmem:[%s4747_s30 + $0x98] sm:$0xff]  ;;  %v4951_v51 = vld [vmem:[%s4747_s30 + $0x10] sm:$0xff]  ;;  %v4954_v43 = vperm.slane %v4804_v55, 2 }
  0x2e   : > { %8115 = vst [vmem:[#allocation28_spill] sm:$0xff] %v4908_v53  ;;  %662 = vmatpush.msra.mxu0 %v4889_v60  ;;  %831 = vmatpush.msra.mxu3 %v4889_v60  ;;  %v787_v48 = vadd.f32 %v767_v30, %v761_v35  ;;  %v797_v62 = vadd.f32 %v769_v46, %v763_v50  ;;  %v638_v45 = vrot.slane %v637_v58, 1  ;;  %v4958_v30 = vld [vmem:[%s4747_s30 + $0x40] sm:$0xff] }
  0x2f   : > { %846 = vmatpush.msrb.mxu2 %v4719_v29  ;;  %8116 = vst [vmem:[#allocation29_spill] sm:$0xff] %v4927_v36  ;;  %682 = vmatpush.msra.mxu1 %v4921_v24  ;;  %v629_v28 = vadd.f32 %v628_v44, %v627_v32  ;;  %v781_v57 = vmul.f32 %v4868_v26, %v4927_v36  ;;  %v623_v50 = vrot.slane %v622_v18, 1  ;;  %v4961_v32 = vperm.slane %v4827_v63, 2  ;;  %v4967_v44 = vld [vmem:[%s4747_s30 + $0x70] sm:$0xff]  ;;  %v4970_v36 = vld [vmem:[%s4747_s30 + $0xa0] sm:$0xff]  ;;  %v4973_v26 = vld [vmem:[%s4747_s30 + $0x28] sm:$0xff] }
  0x30   : > { %4021 = vmatpush.msk.msrb.mxu0 %vm617_vm0, %v4550_v0  ;;  %8117 = vst [vmem:[#allocation30_spill] sm:$0xff] %v4941_v37  ;;  %832 = vmatmul.f32.vlgmr.msra.gmra.mxu3 %v786_v27  ;;  %v798_v35 = vadd.f32 %v797_v62, %v775_v42  ;;  %v639_v56 = vadd.f32 %v638_v45, %v637_v58  ;;  %v4977_v63 = vld [vmem:[%s4747_s30 + $0x20] sm:$0xff]  ;;  %v4980_v45 = vld [vmem:[%s4747_s30 + $0x50] sm:$0xff]  ;;  %v4983_v58 = vperm.slane %v4837_v31, 2 }
  0x31   : > { %847 = vmatpush.msrb.mxu2 %v4733_v33  ;;  %8118 = vst [vmem:[#allocation31_spill] sm:$0xff] %v4944_v61  ;;  %v630_v46 = vrot.slane %v629_v28, 1  ;;  %v779_v55 = vmul.f32 %v4924_v39, %v4944_v61  ;;  %v624_v27 = vadd.f32 %v623_v50, %v622_v18  ;;  %v788_v42 = vadd.f32 %v787_v48, %v773_v21  ;;  %v4988_v61 = vld [vmem:[%s4747_s30 + $0x58] sm:$0xff] }
  0x32   : > { %870 = vmatpush.msrb.mxu0 %v4555_v1  ;;  %8119 = vst [vmem:[#allocation32_spill] sm:$0xff] %v4954_v43  ;;  %v762_v62 = vmul.f32 %v4941_v37, %v4951_v51  ;;  %4020 = vmatmul.msk.f32.vlgmr.msra.gmra.mxu2 %vm640_vm12, %v639_v56  ;;  %v799_v18 = vadd.f32 %v798_v35, %v781_v57  ;;  %v5001_v56 = vld [vmem:[%s4747_s30 + $0x88] sm:$0xff] }
  0x33   : > { %848 = vmatpush.msrb.mxu2 %v4754_v38  ;;  %8120 = vst [vmem:[#allocation33_spill] sm:$0xff] %v4973_v26  ;;  %v631_v53 = vadd.f32 %v630_v46, %v629_v28  ;;  %v768_v21 = vmul.f32 %v4954_v43, %v4958_v30  ;;  %663 = vmatmul.f32.vlgmr.msra.gmra.mxu0 %v624_v27 }
  0x34   : > { %871 = vmatpush.msrb.mxu0 %v4567_v3  ;;  %8121 = vst [vmem:[#allocation34_spill] sm:$0xff] %v4977_v63  ;;  %v774_v31 = vmul.f32 %v4961_v32, %v4967_v44  ;;  %v780_v48 = vmul.f32 %v4983_v58, %v4970_v36  ;;  %v790_v50 = vsel %vm640_vm12, %v762_v62, 0.0  ;;  %v765_v28 = vmul.f32 %v4941_v37, %v4973_v26  ;;  %v5015_v62 = vld [vmem:[%s4747_s30 + $0x80] sm:$0xff] }
  0x35   : > { %849 = vmatpush.msrb.mxu2 %v4781_v47  ;;  %8122 = vst [vmem:[#allocation35_spill] sm:$0xff] %v4980_v45  ;;  %683 = vmatmul.f32.vlgmr.msra.gmra.mxu1 %v631_v53  ;;  %v764_v57 = vmul.f32 %v4851_v40, %v4977_v63  ;;  %v770_v35 = vmul.f32 %v4860_v49, %v4980_v45  ;;  %v791_v46 = vsel %vm640_vm12, %v768_v21, 0.0 }
  0x36   : > { %8123 = vst [vmem:[#allocation36_spill] sm:$0xff] %v4988_v61  ;;  %872 = vmatpush.msrb.mxu0 %v4592_v7  ;;  %v771_v27 = vmul.f32 %v4954_v43, %v4988_v61  ;;  %v792_v26 = vadd.f32 %v791_v46, %v790_v50  ;;  %v793_v53 = vsel %vm640_vm12, %v774_v31, 0.0  ;;  %v795_v63 = vsel %vm640_vm12, %v780_v48, 0.0  ;;  %v5026_v43 = vld [vmem:[%s4747_s30 + $0xb8] sm:$0xff]  ;;  %v5033_v46 = vld [vmem:[%s4747_s30 + $0xb0] sm:$0xff] }
  0x37   : > { %850 = vmatpush.msrb.mxu2 %v4801_v54  ;;  %8124 = vst [vmem:[#allocation37_spill] sm:$0xff] %v5001_v56  ;;  %v777_v45 = vmul.f32 %v4961_v32, %v5001_v56  ;;  %v803_v21 = vsel %vm640_vm12, %v765_v28, 0.0  ;;  %v789_v50 = vadd.f32 %v788_v42, %v779_v55  ;;  %v776_v31 = vmul.f32 %v4883_v52, %v5015_v62 }
  0x38   : > { %873 = vmatpush.msrb.mxu0 %v4616_v11  ;;  %v804_v37 = vsel %vm640_vm12, %v771_v27, 0.0  ;;  %835 = vmatmul.f32.gmra.mxu3 %v799_v18  ;;  %v794_v61 = vadd.f32 %v793_v53, %v792_v26  ;;  %v800_v48 = vadd.f32 %v770_v35, %v764_v57  ;;  %v783_v26 = vmul.f32 %v4983_v58, %v5026_v43  ;;  %v8132_v35 = vld [vmem:[#allocation16_spill] sm:$0xff]  ;;  %v8133_v53 = vld [vmem:[#allocation21_spill] sm:$0xff] }
  0x39   : > { %851 = vmatpush.msrb.mxu2 %v4816_v59  ;;  %v805_v56 = vadd.f32 %v804_v37, %v803_v21  ;;  %v806_v18 = vsel %vm640_vm12, %v777_v45, 0.0  ;;  %v782_v55 = vmul.f32 %v4924_v39, %v5033_v46 }
  0x3a   : > { %874 = vmatpush.msrb.mxu0 %v4636_v14  ;;  %v796_v28 = vadd.f32 %v795_v63, %v794_v61  ;;  %v801_v42 = vadd.f32 %v800_v48, %v776_v31  ;;  %v808_v37 = vsel %vm640_vm12, %v783_v26, 0.0 }
  0x3b   : > { %852 = vmatpush.msrb.mxu2 %v4877_v23  ;;  %v807_v61 = vadd.f32 %v806_v18, %v805_v56 }
  0x3c   : > { %875 = vmatpush.msrb.mxu0 %v4655_v17  ;;  %v802_v63 = vadd.f32 %v801_v42, %v782_v55  ;;  %v8134_v55 = vld [vmem:[#allocation14_spill] sm:$0xff] }
  0x3d   : > { %853 = vmatpush.msrb.mxu2 %v4905_v41  ;;  %v809_v45 = vadd.f32 %v808_v37, %v807_v61  ;;  %v8135_v61 = vld [vmem:[#allocation18_spill] sm:$0xff] }
  0x3e   : > { %876 = vmatpush.msrb.mxu0 %v4677_v20 }
  0x3f   : > { %854 = vmatpush.msrb.mxu2 %v4921_v24 }
  0x40   : > { %855 = vmatmul.f32.vlgmr.msrb.gmra.mxu2 %v789_v50  ;;  %877 = vmatpush.msrb.mxu0 %v4700_v25 }
  0x41   : > { %4022 = vmatmul.msk.f32.vlgmr.msrb.gmra.mxu0 %vm640_vm12, %v796_v28  ;;  %4033 = vmatpush.msk.msra.mxu2 %vm617_vm0, %v4550_v0  ;;  %v5075_v0 = vld [vmem:[%s7963_s7 + $0x60] sm:$0xf] }
  0x42   : > { %1100 = vmatpush.msra.mxu0 %v4587_v6  ;;  %4024 = vmatpush.msk.msrb.mxu1 %vm617_vm0, %v5075_v0  ;;  %v5094_v6 = vld [vmem:[%s7963_s7 + $0x50] sm:$0xff] }
  0x43   : > { %1131 = vmatpush.msra.mxu2 %v4555_v1  ;;  %v5080_v1 = vld [vmem:[%s7963_s7 + $0x68] sm:$0xf] }
  0x44   : > { %1101 = vmatpush.msra.mxu0 %v4599_v8  ;;  %4027 = vmatpush.msk.msrb.mxu3 %vm617_vm0, %v5080_v1  ;;  %v5108_v8 = vld [vmem:[%s7963_s7 + $0x38] sm:$0xff] }
  0x45   : > { %1132 = vmatpush.msra.mxu2 %v4567_v3  ;;  %v5089_v3 = vld [vmem:[%s7963_s7 + $0x48] sm:$0xff] }
  0x46   : > { %1102 = vmatpush.msra.mxu0 %v4610_v10  ;;  %916 = vmatpush.msrb.mxu1 %v5089_v3  ;;  %v5116_v10 = vld [vmem:[%s7963_s7 + $0x18] sm:$0xff] }
  0x47   : > { %1133 = vmatpush.msra.mxu2 %v4592_v7  ;;  %939 = vmatpush.msrb.mxu3 %v5094_v6  ;;  %v5103_v7 = vld [vmem:[%s7963_s7 + $0x30] sm:$0xff] }
  0x48   : > { %858 = vmatmul.f32.gmra.mxu2 %v802_v63  ;;  %1103 = vmatpush.msra.mxu0 %v4630_v13  ;;  %v5129_v13 = vld [vmem:[%s7963_s7] sm:$0xff]  ;;  %v8136_v63 = vld [vmem:[#allocation19_spill] sm:$0xff] }
  0x49   : > { %4023 = vmatmul.msk.f32.gmra.mxu0 %vm640_vm12, %v809_v45  ;;  %1134 = vmatpush.msra.mxu2 %v4616_v11  ;;  %v5121_v11 = vld [vmem:[%s7963_s7 + $0x20] sm:$0xff] }
  0x4a   : > { %1104 = vmatpush.msra.mxu0 %v4649_v16  ;;  %917 = vmatpush.msrb.mxu1 %v5103_v7  ;;  %v5142_v16 = vld [vmem:[%s7963_s7 + $0x70] sm:$0xf] }
  0x4b   : > { %1135 = vmatpush.msra.mxu2 %v4636_v14  ;;  %940 = vmatpush.msrb.mxu3 %v5108_v8  ;;  %v5134_v14 = vld [vmem:[%s7963_s7 + $0x8] sm:$0xff] }
  0x4c   : > { %1105 = vmatpush.msra.mxu0 %v4671_v19  ;;  %918 = vmatpush.msrb.mxu1 %v5116_v10  ;;  %v5158_v19 = vld [vmem:[%s7963_s7 + $0x40] sm:$0xff] }
  0x4d   : > { %1136 = vmatpush.msra.mxu2 %v4655_v17  ;;  %941 = vmatpush.msrb.mxu3 %v5121_v11  ;;  %v5153_v17 = vld [vmem:[%s7963_s7 + $0x58] sm:$0xff] }
  0x4e   : > { %1106 = vmatpush.msra.mxu0 %v4690_v22  ;;  %919 = vmatpush.msrb.mxu1 %v5129_v13  ;;  %v8125_v22 = vld [vmem:[#allocation5_spill] sm:$0xff] }
  0x4f   : > { %1137 = vmatpush.msra.mxu2 %v4677_v20  ;;  %942 = vmatpush.msrb.mxu3 %v5134_v14 }
  0x50   : > { %1107 = vmatpush.msra.mxu0 %v4719_v29  ;;  %4030 = vmatpush.msk.msra.mxu1 %vm617_vm0, %v5142_v16  ;;  %v8127_v29 = vld [vmem:[#allocation9_spill] sm:$0xff] }
  0x51   : > { %1138 = vmatpush.msra.mxu2 %v4700_v25  ;;  %1077 = vmatpush.msra.mxu3 %v4562_v2  ;;  %v5165_v2 = vld [vmem:[%s7963_s7 + $0x28] sm:$0xff] }
  0x52   : > { %1108 = vmatpush.msra.mxu0 %v4733_v33  ;;  %962 = vmatpush.msra.mxu1 %v5153_v17  ;;  %v8128_v33 = vld [vmem:[#allocation10_spill] sm:$0xff] }
  0x53   : > { %4037 = vmatpush.msk.msrb.mxu2 %vm617_vm0, %v5075_v0  ;;  %1078 = vmatpush.msra.mxu3 %v4573_v4 }
  0x54   : > { %1109 = vmatpush.msra.mxu0 %v4754_v38  ;;  %963 = vmatpush.msra.mxu1 %v5158_v19 }
  0x55   : > { %1217 = vmatpush.msrb.mxu2 %v5089_v3  ;;  %1079 = vmatpush.msra.mxu3 %v4582_v5  ;;  %v5172_v5 = vld [vmem:[%s7963_s7 + $0x10] sm:$0xff] }
  0x56   : > { %1110 = vmatpush.msra.mxu0 %v4781_v47  ;;  %964 = vmatpush.msra.mxu1 %v5165_v2  ;;  %v8130_v47 = vld [vmem:[#allocation12_spill] sm:$0xff] }
  0x57   : > { %1218 = vmatpush.msrb.mxu2 %v5103_v7  ;;  %1080 = vmatpush.msra.mxu3 %v4605_v9 }
  0x58   : > { %1111 = vmatpush.msra.mxu0 %v4801_v54  ;;  %965 = vmatpush.msra.mxu1 %v5172_v5 }
  0x59   : > { %1219 = vmatpush.msrb.mxu2 %v5116_v10  ;;  %1081 = vmatpush.msra.mxu3 %v4625_v12 }
  0x5a   : > { %1112 = vmatpush.msra.mxu0 %v4816_v59 }
  0x5b   : > { %1220 = vmatpush.msrb.mxu2 %v5129_v13  ;;  %1082 = vmatpush.msra.mxu3 %v4644_v15  ;;  %v8129_v15 = vld [vmem:[#allocation11_spill] sm:$0xff] }
  0x5c   : > { %1113 = vmatpush.msra.mxu0 %v4877_v23  ;;  %v8126_v23 = vld [vmem:[#allocation6_spill] sm:$0xff] }
  0x5d   : > { %1083 = vmatpush.msra.mxu3 %v8125_v22 }
  0x5e   : > { %1114 = vmatpush.msra.mxu0 %v4905_v41  ;;  %v8131_v41 = vld [vmem:[#allocation13_spill] sm:$0xff] }
  0x5f   : > { %1084 = vmatpush.msra.mxu3 %v8126_v23  ;;  %v8142_v23 = vld [vmem:[#allocation28_spill] sm:$0xff] }
  0x60   : > { %1115 = vmatpush.msra.mxu0 %v4921_v24 }
  0x61   : > { %1085 = vmatpush.msra.mxu3 %v8127_v29 }
  0x63   : > { %1086 = vmatpush.msra.mxu3 %v8128_v33  ;;  %v8143_v33 = vld [vmem:[#allocation25_spill] sm:$0xff] }
  0x65   : > { %1087 = vmatpush.msra.mxu3 %v8129_v15 }
  0x67   : > { %1088 = vmatpush.msra.mxu3 %v8130_v47 }
  0x69   : > { %1089 = vmatpush.msra.mxu3 %v8131_v41 }
  0x6b   : > { %1090 = vmatpush.msra.mxu3 %v8132_v35 }
  0x6d   : > { %1091 = vmatpush.msra.mxu3 %v8133_v53 }
  0x6f   : > { %1092 = vmatpush.msra.mxu3 %v4889_v60 }
  0xb0   : > { %v664_v4 = vpop.f32.mrf.mxu0 }
  0xb2   : > { %v684_v9 = vpop.f32.mrf.mxu1 }
  0xb3   : > { %v685_v20 = vadd.f32 %v684_v9, %v664_v4  ;;  %v833_v38 = vpop.f32.mrf.mxu3  ;;  %v8140_v4 = vld [vmem:[#allocation22_spill] sm:$0xff] }
  0xb5   : > { %v704_v12 = vpop.f32.mrf.mxu2 }
  0xb6   : > { %v5179_v25 = vadd.f32 %v704_v12, %v685_v20  ;;  %v8141_v20 = vld [vmem:[#allocation23_spill] sm:$0xff] }
  0xb8   : > { %4137 = vrcp.f32 %v5179_v25 }
  0xbb   : > { %v836_v50 = vpop.f32.mrf.mxu3 }
  0xbe   : > { %v879_v54 = vpop.f32.mrf.mxu0  ;;  %v4138_v59 = vpop.eup %4137 }
  0xbf   : > { %v5187_v56 = vperm.slane %v4138_v59, 0  ;;  %v8144_v59 = vld [vmem:[#allocation31_spill] sm:$0xff] }
  0xc3   : > { %v856_v24 = vpop.f32.mrf.mxu2 }
  0xc4   : > { %v857_v57 = vadd.f32 %v856_v24, %v833_v38 }
  0xc6   : > { %v880_v27 = vadd.f32 %v879_v54, %v857_v57  ;;  %v882_v48 = vpop.f32.mrf.mxu0 }
  0xc8   : > { %v886_v21 = vmul.f32 %v5187_v56, %v880_v27 }
  0xca   : > { %4025 = vmatmul.msk.f32.vlgmr.msrb.gmra.mxu1 %vm8008_vm13, %v886_v21  ;;  %4028 = vmatmul.msk.f32.vlgmr.msrb.gmra.mxu3 %vm8008_vm13, %v886_v21 }
  0xcb   : > { %v859_v31 = vpop.f32.mrf.mxu2  ;;  %4039 = vmatpush.msk.msrb.mxu1 %vm617_vm0, %v5080_v1  ;;  %4047 = vmatpush.msk.msrb.mxu3 %vm617_vm0, %v5142_v16 }
  0xcc   : > { %v860_v28 = vadd.f32 %v859_v31, %v836_v50 }
  0xcd   : > { %1237 = vmatpush.msrb.mxu1 %v5094_v6  ;;  %1320 = vmatpush.msrb.mxu3 %v5153_v17  ;;  %v8138_v6 = vld [vmem:[#allocation20_spill] sm:$0xff] }
  0xce   : > { %v883_v26 = vadd.f32 %v882_v48, %v860_v28 }
  0xcf   : > { %1238 = vmatpush.msrb.mxu1 %v5108_v8  ;;  %1321 = vmatpush.msrb.mxu3 %v5158_v19 }
  0xd0   : > { %v887_v60 = vmul.f32 %v5187_v56, %v883_v26 }
  0xd1   : > { %1239 = vmatpush.msrb.mxu1 %v5121_v11  ;;  %1322 = vmatpush.msrb.mxu3 %v5165_v2 }
  0xd2   : > { %4026 = vmatmul.msk.f32.gmra.mxu1 %vm8008_vm13, %v887_v60  ;;  %4029 = vmatmul.msk.f32.gmra.mxu3 %vm8008_vm13, %v887_v60 }
  0xd3   : > { %1240 = vmatpush.msrb.mxu1 %v5134_v14  ;;  %1323 = vmatpush.msrb.mxu3 %v5172_v5 }
  0xda   : > { %4031 = vmatmul.msk.f32.vlgmr.msra.gmra.mxu1 %vm8008_vm13, %v886_v21 }
  0xdb   : > { %4043 = vmatpush.msk.msra.mxu1 %vm617_vm0, %v5075_v0  ;;  %v8137_v0 = vld [vmem:[#allocation15_spill] sm:$0xff] }
  0xdd   : > { %1280 = vmatpush.msra.mxu1 %v5089_v3 }
  0xdf   : > { %1281 = vmatpush.msra.mxu1 %v5103_v7 }
  0xe1   : > { %1282 = vmatpush.msra.mxu1 %v5116_v10 }
  0xe2   : > { %4032 = vmatmul.msk.f32.gmra.mxu1 %vm8008_vm13, %v887_v60  ;;  %vm8014_vm13 = vcmask 1046533  }
  0xe3   : > { %1283 = vmatpush.msra.mxu1 %v5129_v13  ;;  %v8139_v13 = vld [vmem:[#allocation24_spill] sm:$0xff] }
 0x147   : > { %v5218_v18 = vpop.f32.mrf.mxu1 }
 0x148   : > { %v973_v42 = vsub.f32 %v8134_v55, %v5218_v18  ;;  %v979_v37 = vsub.f32 %v8135_v61, %v5218_v18  ;;  %v985_v45 = vsub.f32 %v8136_v63, %v5218_v18  ;;  %v991_v7 = vsub.f32 %v8138_v6, %v5218_v18 }
 0x14a   : > { %v997_v1 = vmul.f32 %v973_v42, %v8137_v0  ;;  %v1003_v3 = vmul.f32 %v979_v37, %v4840_v34  ;;  %v1009_v14 = vmul.f32 %v985_v45, %v8139_v13  ;;  %v1015_v15 = vmul.f32 %v991_v7, %v8143_v33 }
 0x14c   : > { %v1021_v8 = vmul.f32 %v997_v1, %v973_v42  ;;  %v1027_v10 = vmul.f32 %v1003_v3, %v979_v37  ;;  %v1033_v57 = vmul.f32 %v1009_v14, %v985_v45  ;;  %v1039_v53 = vmul.f32 %v1015_v15, %v991_v7  ;;  %v8145_v14 = vld [vmem:[#allocation17_spill] sm:$0xff] }
 0x14d   : > { %v944_v11 = vpop.f32.mrf.mxu3 }
 0x14e   : > { %v974_v9 = vsub.f32 %v8140_v4, %v944_v11  ;;  %v980_v22 = vsub.f32 %v8141_v20, %v944_v11  ;;  %v986_v12 = vsub.f32 %v8142_v23, %v944_v11  ;;  %v1045_v38 = vadd.f32 %v1027_v10, %v1021_v8 }
 0x14f   : > { %v5234_v29 = vpop.f32.mrf.mxu1  ;;  %v992_v41 = vsub.f32 %v8144_v59, %v944_v11  ;;  %v1334_v55 = vrot.slane %v944_v11, 7  ;;  %v8147_v59 = vld [vmem:[#allocation30_spill] sm:$0xff] }
 0x150   : > { %v998_v47 = vmul.f32 %v974_v9, %v4851_v40  ;;  %v1004_v54 = vmul.f32 %v980_v22, %v4860_v49  ;;  %v1010_v24 = vmul.f32 %v986_v12, %v4883_v52  ;;  %v1046_v21 = vadd.f32 %v1045_v38, %v1033_v57  ;;  %v8148_v57 = vld [vmem:[#allocation32_spill] sm:$0xff] }
 0x151   : > { %v1016_v31 = vmul.f32 %v992_v41, %v4924_v39  ;;  %v1340_v63 = vsel %vm717_vm1, %v5218_v18, %v1334_v55  ;;  %v1338_v1 = vsel %vm711_vm2, %v5218_v18, %v1334_v55  ;;  %v1343_v6 = vsel %vm713_vm3, %v5218_v18, %v1334_v55 }
 0x152   : > { %v1022_v35 = vmul.f32 %v998_v47, %v974_v9  ;;  %v1028_v27 = vmul.f32 %v1004_v54, %v980_v22  ;;  %v1034_v48 = vmul.f32 %v1010_v24, %v986_v12  ;;  %v1047_v28 = vadd.f32 %v1046_v21, %v1039_v53  ;;  %v8146_v22 = vld [vmem:[#allocation26_spill] sm:$0xff] }
 0x153   : > { %v1040_v42 = vmul.f32 %v1016_v31, %v992_v41  ;;  %v976_v4 = vsub.f32 %v8145_v14, %v5234_v29  ;;  %v1346_v9 = vsel %vm719_vm5, %v5218_v18, %v1334_v55  ;;  %v982_v23 = vsub.f32 %v8146_v22, %v5234_v29  ;;  %v8150_v22 = vld [vmem:[#allocation29_spill] sm:$0xff] }
 0x154   : > { %v1048_v50 = vadd.f32 %v1028_v27, %v1022_v35  ;;  %1093 = vmatmul.f32.vlgmr.msra.gmra.mxu3 %v1047_v28  ;;  %v1358_v47 = vsel %vm8019_vm14, %v5218_v18, %v1334_v55  ;;  %v1363_v24 = vsel %vm8017_vm15, %v1334_v55, %v5218_v18 }
 0x155   : > { %v1000_v53 = vmul.f32 %v976_v4, %v8137_v0 }
 0x156   : > { %v1049_v26 = vadd.f32 %v1048_v50, %v1034_v48  ;;  %v1006_v48 = vmul.f32 %v982_v23, %v4840_v34 }
 0x157   : > { %v967_v60 = vpop.f32.mrf.mxu1 }
 0x158   : > { %v5242_v61 = vrot.slane %v967_v60, 6  ;;  %v1050_v37 = vadd.f32 %v1049_v26, %v1040_v42  ;;  %v975_v7 = vsub.f32 %v4951_v51, %v967_v60  ;;  %v981_v10 = vsub.f32 %v4958_v30, %v967_v60  ;;  %v450_v42 = vld [vmem:[%s5282_s22 + $0x8] sm:$0xf] }
 0x159   : > { %v1349_v51 = vsel %vm725_vm7, %v5218_v18, %v1334_v55  ;;  %v987_v20 = vsub.f32 %v4967_v44, %v967_v60  ;;  %v1353_v30 = vsel %vm731_vm9, %v5218_v18, %v1334_v55  ;;  %v993_v54 = vsub.f32 %v4970_v36, %v967_v60  ;;  %v8149_v36 = vld [vmem:[#allocation27_spill] sm:$0xff]  ;;  %v449_v55 = vld [vmem:[%s5282_s22] sm:$0xff] }
 0x15a   : > { %1116 = vmatmul.f32.vlgmr.msra.gmra.mxu0 %v1050_v37  ;;  %v1341_v45 = vsel %vm8011_vm6, %v1340_v63, %v5242_v61  ;;  %v1339_v8 = vsel %vm8010_vm4, %v1338_v1, %v5242_v61  ;;  %v1344_v11 = vsel %vm8009_vm8, %v1343_v6, %v5242_v61  ;;  %v1347_v12 = vsel %vm733_vm10, %v1346_v9, %v5242_v61  ;;  %v451_v37 = vld [vmem:[%s5282_s22 + $0xc] sm:$0xff]  ;;  %v452_v6 = vld [vmem:[%s5282_s22 + $0x14] sm:$0xf] }
 0x15b   : > { %v1342_v3 = vrot.slane %v1341_v45, 1  ;;  %vm8013_vm8 = vcmask 1045504   ;;  %vm8012_vm4 = vcmask 1046529   ;;  %v1391_v15 = vperm.slane %v1339_v8, 1 }
 0x15c   : > { %v999_v44 = vmul.f32 %v975_v7, %v8147_v59  ;;  %v5275_v41 = vrot.slane %v1344_v11, 2  ;;  %v1005_v35 = vmul.f32 %v981_v10, %v8148_v57  ;;  %v5289_v27 = vsub.f32 %v8149_v36, %v5234_v29 }
 0x15d   : > { %v1394_v38 = vperm.slane %v1342_v3, 1  ;;  %v1011_v21 = vmul.f32 %v987_v20, %v4961_v32  ;;  %v5293_v50 = vrot.slane %v1347_v12, 3  ;;  %v1390_v31 = vperm.slane %v1339_v8, 0 }
 0x15e   : > { %v1392_v28 = vperm.slane %v1339_v8, 2  ;;  %v1393_v26 = vperm.slane %v1342_v3, 0  ;;  %v1454_v60 = vrot.slane %v1391_v15, 4  ;;  %v1017_v63 = vmul.f32 %v993_v54, %v4983_v58 }
 0x15f   : > { %v1455_v18 = vrot.slane %v1394_v38, 4  ;;  %v1023_v45 = vmul.f32 %v999_v44, %v975_v7  ;;  %v1395_v1 = vperm.slane %v1342_v3, 2  ;;  %v1397_v0 = vperm.slane %v5275_v41, 1 }
 0x160   : > { %v1029_v11 = vmul.f32 %v1005_v35, %v981_v10  ;;  %v1351_v14 = vsel %vm8018_vm11, %v1349_v51, %v5242_v61  ;;  %v1470_v34 = vsel %vm617_vm0, %v1390_v31, %v1454_v60  ;;  %v1355_v9 = vsel %vm8014_vm13, %v1353_v30, %v5242_v61 }
 0x161   : > { %v1471_v8 = vsel %vm617_vm0, %v1393_v26, %v1455_v18  ;;  %v994_v12 = vsub.f32 %v8150_v22, %v5234_v29  ;;  %v1012_v3 = vmul.f32 %v5289_v27, %v8139_v13  ;;  %v1024_v7 = vmul.f32 %v1000_v53, %v976_v4 }
 0x162   : > { %v1400_v15 = vperm.slane %v5293_v50, 1  ;;  %v1502_v10 = vsub.f32 %v449_v55, %v1470_v34  ;;  %v1503_v38 = vsub.f32 %v450_v42, %v1392_v28  ;;  %v1504_v44 = vsub.f32 %v451_v37, %v1471_v8  ;;  %v455_v34 = vld [vmem:[%s5282_s22 + $0x24] sm:$0xff]  ;;  %v456_v8 = vld [vmem:[%s5282_s22 + $0x2c] sm:$0xf] }
 0x163   : > { %v5313_v51 = vrot.slane %v1351_v14, 4  ;;  %v1456_v35 = vrot.slane %v1397_v0, 4  ;;  %v1505_v36 = vsub.f32 %v452_v6, %v1395_v1  ;;  %v1030_v31 = vmul.f32 %v1006_v48, %v982_v23 }
 0x164   : > { %v1035_v30 = vmul.f32 %v1011_v21, %v987_v20  ;;  %v1041_v26 = vmul.f32 %v1017_v63, %v993_v54  ;;  %v1051_v60 = vsel %vm640_vm12, %v1023_v45, 0.0  ;;  %v1052_v18 = vsel %vm640_vm12, %v1029_v11, 0.0  ;;  %v453_v20 = vld [vmem:[%s5282_s22 + $0x18] sm:$0xff]  ;;  %v454_v54 = vld [vmem:[%s5282_s22 + $0x20] sm:$0xf] }
 0x165   : > { %v5317_v13 = vrot.slane %v1355_v9, 5  ;;  %v1360_v4 = vsel %vm8013_vm8, %v5242_v61, %v1358_v47  ;;  %v1365_v53 = vsel %vm8012_vm4, %v5242_v61, %v1363_v24  ;;  %v1396_v28 = vperm.slane %v5275_v41, 0 }
 0x166   : > { %v1457_v55 = vrot.slane %v1400_v15, 4  ;;  %v1534_v42 = vmul.f32 %v1502_v10, %v1502_v10  ;;  %v1535_v37 = vmul.f32 %v1503_v38, %v1503_v38  ;;  %v1536_v23 = vmul.f32 %v1504_v44, %v1504_v44 }
 0x167   : > { %v1053_v21 = vadd.f32 %v1052_v18, %v1051_v60  ;;  %v1403_v48 = vperm.slane %v5313_v51, 1  ;;  %v1472_v63 = vsel %vm617_vm0, %v1396_v28, %v1456_v35  ;;  %v1537_v45 = vmul.f32 %v1505_v36, %v1505_v36 }
 0x168   : > { %v5328_v47 = vrot.slane %v1360_v4, 6  ;;  %v1398_v61 = vperm.slane %v5275_v41, 2  ;;  %v1399_v24 = vperm.slane %v5293_v50, 0  ;;  %1598 = vst [vmem:[#allocation1] ss:$2 sm:$0xff] %v1534_v42  ;;  %v1018_v1 = vmul.f32 %v994_v12, %v8143_v33 }
 0x169   : > { %v1054_v0 = vsel %vm640_vm12, %v1035_v30, 0.0  ;;  %v5334_v6 = vrot.slane %v1365_v53, 7  ;;  %v1401_v11 = vperm.slane %v5293_v50, 2  ;;  %v1406_v14 = vperm.slane %v5317_v13, 1  ;;  %1600 = vst [vmem:[#allocation1 + $0x10] ss:$2 sm:$0xff] %v1535_v37 }
 0x16a   : > { %v1473_v9 = vsel %vm617_vm0, %v1399_v24, %v1457_v55  ;;  %v1506_v22 = vsub.f32 %v453_v20, %v1472_v63  ;;  %1605 = vst [vmem:[#allocation1 + $0x20] ss:$2 sm:$0xff] %v1536_v23  ;;  %v1036_v41 = vmul.f32 %v1012_v3, %v5289_v27  ;;  %v1058_v15 = vadd.f32 %v1030_v31, %v1024_v7  ;;  %v457_v7 = vld [vmem:[%s5282_s22 + $0x30] sm:$0xff]  ;;  %v458_v37 = vld [vmem:[%s5282_s22 + $0x38] sm:$0xf] }
 0x16b   : > { %v1055_v33 = vadd.f32 %v1054_v0, %v1053_v21  ;;  %v1056_v10 = vsel %vm640_vm12, %v1041_v26, 0.0  ;;  %v1402_v38 = vperm.slane %v5313_v51, 0  ;;  %v1458_v44 = vrot.slane %v1403_v48, 4  ;;  %1607 = vst [vmem:[#allocation1 + $0x30] ss:$2 sm:$0xff] %v1537_v45 }
 0x16c   : > { %v1409_v50 = vperm.slane %v5328_v47, 1  ;;  %v1507_v35 = vsub.f32 %v454_v54, %v1398_v61  ;;  %v1042_v36 = vmul.f32 %v1018_v1, %v994_v12  ;;  %v1059_v30 = vadd.f32 %v1058_v15, %v1036_v41  ;;  %v5354_v12 = vpop.f32.mrf.mxu3  ;;  %v5365_v1 = vpop.f32.mrf.mxu1  ;;  %v460_v15 = vld [vmem:[%s5282_s22 + $0x44] sm:$0xf] }
 0x16d   : > { %v1404_v60 = vperm.slane %v5313_v51, 2  ;;  %v1405_v18 = vperm.slane %v5317_v13, 0  ;;  %v1412_v27 = vperm.slane %v5334_v6, 1  ;;  %v1508_v3 = vsub.f32 %v455_v34, %v1473_v9 }
 0x16e   : > { %v1459_v31 = vrot.slane %v1406_v14, 4  ;;  %v1509_v26 = vsub.f32 %v456_v8, %v1401_v11  ;;  %v1538_v4 = vmul.f32 %v1506_v22, %v1506_v22  ;;  %v1060_v53 = vadd.f32 %v1059_v30, %v1042_v36  ;;  %v459_v14 = vld [vmem:[%s5282_s22 + $0x3c] sm:$0xff]  ;;  %v8151_v22 = vld [vmem:[#allocation34_spill] sm:$0xff] }
 0x16f   : > { %v1474_v28 = vsel %vm617_vm0, %v1402_v38, %v1458_v44  ;;  %v5350_v55 = vld.sshfl [vmem:[#allocation1] sm:$0xff pattern:$0x75316420]  ;;  %v5352_v42 = vld.sshfl [vmem:[#allocation1 + $0x8] sm:$0xff pattern:$0x75316420]  ;;  %v1539_v23 = vmul.f32 %v1507_v35, %v1507_v35  ;;  %v1540_v54 = vmul.f32 %v1508_v3, %v1508_v3  ;;  %v1057_v0 = vadd.f32 %v1056_v10, %v1055_v33 }
 0x170   : > { %v1460_v51 = vrot.slane %v1409_v50, 4  ;;  %v5357_v20 = vld.sshfl [vmem:[#allocation1 + $0x10] sm:$0xff pattern:$0x75316420]  ;;  %1611 = vst [vmem:[#allocation1] ss:$2 sm:$0xff] %v1538_v4  ;;  %1096 = vmatmul.f32.gmra.mxu3 %v1060_v53  ;;  %v1510_v45 = vsub.f32 %v457_v7, %v1474_v28  ;;  %v1541_v61 = vmul.f32 %v1509_v26, %v1509_v26  ;;  %v1475_v9 = vsel %vm617_vm0, %v1405_v18, %v1459_v31 }
 0x171   : > { %v5359_v21 = vld.sshfl [vmem:[#allocation1 + $0x20] sm:$0xff pattern:$0x75316420]  ;;  %v5361_v48 = vld.sshfl [vmem:[#allocation1 + $0x28] sm:$0xff pattern:$0x75316420]  ;;  %v5376_v41 = vsub.f32 %v8151_v22, %v5354_v12  ;;  %4034 = vmatmul.msk.f32.vlgmr.msra.gmra.mxu2 %vm640_vm12, %v1057_v0  ;;  %v1511_v44 = vsub.f32 %v458_v37, %v1404_v60  ;;  %v1512_v3 = vsub.f32 %v459_v14, %v1475_v9 }
 0x172   : > { %v1461_v63 = vrot.slane %v1412_v27, 4  ;;  %v5363_v24 = vld.sshfl [vmem:[#allocation1 + $0x30] sm:$0xff pattern:$0x75316420]  ;;  %1612 = vst [vmem:[#allocation1 + $0x10] ss:$2 sm:$0xff] %v1539_v23  ;;  %4041 = vmatpush.msk.msra.mxu2 %vm617_vm0, %v5142_v16  ;;  %v1542_v7 = vmul.f32 %v1510_v45, %v1510_v45 }
 0x173   : > { %v5368_v11 = vrot.slane %v5354_v12, 7  ;;  %v1407_v34 = vperm.slane %v5317_v13, 2  ;;  %v1408_v8 = vperm.slane %v5328_v47, 0  ;;  %1616 = vst [vmem:[#allocation1 + $0x20] ss:$2 sm:$0xff] %v1540_v54  ;;  %v1411_v33 = vperm.slane %v5334_v6, 0 }
 0x174   : > { %1617 = vst [vmem:[#allocation1 + $0x30] ss:$2 sm:$0xff] %v1541_v61  ;;  %v461_v10 = vld [vmem:[%s5282_s22 + $0x48] sm:$0xff]  ;;  %v1410_v13 = vperm.slane %v5328_v47, 2  ;;  %v5385_v50 = vrot.slane %v5365_v1, 6  ;;  %v463_v36 = vld [vmem:[%s5282_s22 + $0x54] sm:$0xff]  ;;  %1257 = vmatpush.msra.mxu2 %v5153_v17  ;;  %v1543_v45 = vmul.f32 %v1511_v44, %v1511_v44 }
 0x175   : > { %v1476_v38 = vsel %vm617_vm0, %v1408_v8, %v1460_v51  ;;  %v462_v35 = vld [vmem:[%s5282_s22 + $0x50] sm:$0xf]  ;;  %v464_v30 = vld [vmem:[%s5282_s22 + $0x5c] sm:$0xf]  ;;  %v1413_v18 = vperm.slane %v5334_v6, 2  ;;  %v1477_v27 = vsel %vm617_vm0, %v1411_v33, %v1461_v63  ;;  %v1367_v60 = vsel %vm711_vm2, %v5234_v29, %v5368_v11  ;;  %v8153_v51 = vld [vmem:[#allocation33_spill] sm:$0xff] }
 0x176   : > { %v8152_v47 = vld [vmem:[#allocation35_spill] sm:$0xff]  ;;  %v1369_v16 = vsel %vm717_vm1, %v5234_v29, %v5368_v11  ;;  %v1513_v26 = vsub.f32 %v460_v15, %v1407_v34  ;;  %v1372_v53 = vsel %vm713_vm3, %v5234_v29, %v5368_v11  ;;  %v1375_v28 = vsel %vm719_vm5, %v5234_v29, %v5368_v11  ;;  %1258 = vmatpush.msra.mxu2 %v5158_v19  ;;  %v8154_v19 = vld [vmem:[#allocation36_spill] sm:$0xff]  ;;  %v8156_v44 = vld [vmem:[#allocation37_spill] sm:$0xff] }
 0x177   : > { %v5396_v31 = vsub.f32 %v8152_v47, %v5354_v12  ;;  %v5404_v4 = vld.sshfl [vmem:[#allocation1] sm:$0xff pattern:$0x75316420]  ;;  %v5406_v6 = vld.sshfl [vmem:[#allocation1 + $0x8] sm:$0xff pattern:$0x75316420]  ;;  %v1514_v37 = vsub.f32 %v461_v10, %v1476_v38  ;;  %v978_v23 = vsub.f32 %v8153_v51, %v5365_v1  ;;  %v1515_v54 = vsub.f32 %v462_v35, %v1410_v13 }
 0x178   : > { %1621 = vst [vmem:[#allocation1] ss:$2 sm:$0xff] %v1542_v7  ;;  %v1516_v63 = vsub.f32 %v463_v36, %v1477_v27  ;;  %v1370_v17 = vsel %vm8011_vm6, %v1369_v16, %v5385_v50  ;;  %v1378_v0 = vsel %vm725_vm7, %v5234_v29, %v5368_v11  ;;  %v1381_v14 = vsel %vm731_vm9, %v5234_v29, %v5368_v11  ;;  %v466_v51 = vld [vmem:[%s5282_s22 + $0x68] sm:$0xf] }
 0x179   : > { %v5417_v61 = vld.sshfl [vmem:[#allocation1 + $0x10] sm:$0xff pattern:$0x75316420]  ;;  %v1517_v34 = vsub.f32 %v464_v30, %v1413_v18  ;;  %v1544_v8 = vmul.f32 %v1512_v3, %v1512_v3  ;;  %v1545_v15 = vmul.f32 %v1513_v26, %v1513_v26  ;;  %v984_v10 = vsub.f32 %v8154_v19, %v5365_v1  ;;  %1259 = vmatpush.msra.mxu2 %v5165_v2 }
 0x17a   : > { %v5428_v9 = vld.sshfl [vmem:[#allocation1 + $0x20] sm:$0xff pattern:$0x75316420]  ;;  %v5430_v22 = vld.sshfl [vmem:[#allocation1 + $0x28] sm:$0xff pattern:$0x75316420]  ;;  %v1546_v38 = vmul.f32 %v1514_v37, %v1514_v37  ;;  %v990_v35 = vsub.f32 %v8156_v44, %v5365_v1  ;;  %v1002_v36 = vmul.f32 %v978_v23, %v8147_v59  ;;  %v1547_v18 = vmul.f32 %v1515_v54, %v1515_v54 }
 0x17b   : > { %v5432_v33 = vld.sshfl [vmem:[#allocation1 + $0x30] sm:$0xff pattern:$0x75316420]  ;;  %1622 = vst [vmem:[#allocation1 + $0x10] ss:$2 sm:$0xff] %v1543_v45  ;;  %vm8155_vm6 = vcmask 1041408   ;;  %v1548_v27 = vmul.f32 %v1516_v63, %v1516_v63  ;;  %v996_v3 = vsub.f32 %v5026_v43, %v5365_v1  ;;  %1260 = vmatpush.msra.mxu2 %v5172_v5  ;;  %v1376_v7 = vsel %vm733_vm10, %v1375_v28, %v5385_v50 }
 0x17c   : > { %v1368_v13 = vsel %vm8155_vm6, %v1367_v60, %v5385_v50  ;;  %1626 = vst [vmem:[#allocation1 + $0x20] ss:$2 sm:$0xff] %v1544_v8  ;;  %v1371_v30 = vrot.slane %v1370_v17, 1  ;;  %vm8157_vm6 = vcmask 1043458   ;;  %v989_v59 = vsub.f32 %v5015_v62, %v5354_v12 }
 0x17d   : > { %1627 = vst [vmem:[#allocation1 + $0x30] ss:$2 sm:$0xff] %v1545_v15  ;;  %v1373_v2 = vsel %vm8157_vm6, %v1372_v53, %v5385_v50  ;;  %v1415_v47 = vperm.slane %v1368_v13, 1  ;;  %v1008_v26 = vmul.f32 %v984_v10, %v8148_v57  ;;  %v995_v43 = vsub.f32 %v5033_v46, %v5354_v12 }
 0x17e   : > { %v1001_v5 = vmul.f32 %v5376_v41, %v4851_v40  ;;  %v1007_v1 = vmul.f32 %v5396_v31, %v4860_v49  ;;  %v1014_v53 = vmul.f32 %v990_v35, %v4961_v32  ;;  %v1026_v62 = vmul.f32 %v1002_v36, %v978_v23 }
 0x17f   : > { %v5451_v60 = vld.sshfl [vmem:[#allocation1] sm:$0xff pattern:$0x75316420]  ;;  %v5453_v16 = vld.sshfl [vmem:[#allocation1 + $0x8] sm:$0xff pattern:$0x75316420]  ;;  %v1379_v28 = vsel %vm8018_vm11, %v1378_v0, %v5385_v50  ;;  %v1382_v40 = vsel %vm8014_vm13, %v1381_v14, %v5385_v50  ;;  %v1013_v23 = vmul.f32 %v989_v59, %v4883_v52  ;;  %v1032_v8 = vmul.f32 %v1008_v26, %v984_v10 }
 0x180   : > { %1631 = vst [vmem:[#allocation1] ss:$2 sm:$0xff] %v1546_v38  ;;  %v1418_v37 = vperm.slane %v1371_v30, 1  ;;  %v5466_v57 = vrot.slane %v1373_v2, 2  ;;  %v5468_v54 = vrot.slane %v1376_v7, 3  ;;  %v1414_v46 = vperm.slane %v1368_v13, 0 }
 0x181   : > { %v1416_v49 = vperm.slane %v1368_v13, 2  ;;  %v1419_v63 = vperm.slane %v1371_v30, 2  ;;  %v1462_v32 = vrot.slane %v1415_v47, 4  ;;  %v468_v0 = vld [vmem:[%s5282_s22 + $0x74] sm:$0xf]  ;;  %v1025_v15 = vmul.f32 %v1001_v5, %v5376_v41  ;;  %v465_v41 = vld [vmem:[%s5282_s22 + $0x60] sm:$0xff] }
 0x182   : > { %v5472_v12 = vld.sshfl [vmem:[#allocation1 + $0x10] sm:$0xff pattern:$0x75316420]  ;;  %v1031_v19 = vmul.f32 %v1007_v1, %v5396_v31  ;;  %v1020_v14 = vmul.f32 %v996_v3, %v4983_v58  ;;  %v1549_v38 = vmul.f32 %v1517_v34, %v1517_v34  ;;  %v1463_v13 = vrot.slane %v1418_v37, 4 }
 0x183   : > { %v5475_v45 = vld.sshfl [vmem:[#allocation1 + $0x20] sm:$0xff pattern:$0x75316420]  ;;  %v5477_v17 = vld.sshfl [vmem:[#allocation1 + $0x28] sm:$0xff pattern:$0x75316420]  ;;  %v1019_v52 = vmul.f32 %v995_v43, %v4924_v39  ;;  %v1038_v7 = vmul.f32 %v1014_v53, %v990_v35  ;;  %v1478_v58 = vsel %vm617_vm0, %v1414_v46, %v1462_v32  ;;  %v1519_v34 = vsub.f32 %v466_v51, %v1416_v49 }
 0x184   : > { %v5483_v44 = vld.sshfl [vmem:[#allocation1 + $0x30] sm:$0xff pattern:$0x75316420]  ;;  %1632 = vst [vmem:[#allocation1 + $0x10] ss:$2 sm:$0xff] %v1547_v18  ;;  %v5486_v36 = vrot.slane %v1379_v28, 4  ;;  %v1037_v18 = vmul.f32 %v1013_v23, %v989_v59  ;;  %v1061_v47 = vadd.f32 %v1031_v19, %v1025_v15  ;;  %v1044_v26 = vmul.f32 %v1020_v14, %v996_v3 }
 0x185   : > { %1636 = vst [vmem:[#allocation1 + $0x20] ss:$2 sm:$0xff] %v1548_v27  ;;  %v5488_v2 = vrot.slane %v1382_v40, 5  ;;  %v1417_v10 = vperm.slane %v1371_v30, 0  ;;  %v1421_v31 = vperm.slane %v5466_v57, 1  ;;  %v1064_v39 = vsel %vm640_vm12, %v1026_v62, 0.0 }
 0x186   : > { %1637 = vst [vmem:[#allocation1 + $0x30] ss:$2 sm:$0xff] %v1549_v38  ;;  %v1065_v27 = vsel %vm640_vm12, %v1032_v8, 0.0  ;;  %v467_v5 = vld [vmem:[%s5282_s22 + $0x6c] sm:$0xff]  ;;  %v1424_v30 = vperm.slane %v5468_v54, 1  ;;  %v1521_v1 = vsub.f32 %v468_v0, %v1419_v63  ;;  %v1518_v28 = vsub.f32 %v465_v41, %v1478_v58 }
 0x187   : > { %v1479_v35 = vsel %vm617_vm0, %v1417_v10, %v1463_v13  ;;  %v1066_v53 = vadd.f32 %v1065_v27, %v1064_v39  ;;  %v1043_v37 = vmul.f32 %v1019_v52, %v995_v43  ;;  %v1062_v40 = vadd.f32 %v1061_v47, %v1037_v18  ;;  %v470_v59 = vld [vmem:[%s5282_s22 + $0x80] sm:$0xf]  ;;  %v472_v23 = vld [vmem:[%s5282_s22 + $0x8c] sm:$0xf]  ;;  %v469_v18 = vld [vmem:[%s5282_s22 + $0x78] sm:$0xff] }
 0x188   : > { %v1067_v51 = vsel %vm640_vm12, %v1038_v7, 0.0  ;;  %v1422_v3 = vperm.slane %v5466_v57, 2  ;;  %v1425_v62 = vperm.slane %v5468_v54, 2  ;;  %v1551_v46 = vmul.f32 %v1519_v34, %v1519_v34  ;;  %v5506_v0 = vld.sshfl [vmem:[#allocation1] sm:$0xff pattern:$0x75316420] }
 0x189   : > { %v1068_v49 = vadd.f32 %v1067_v51, %v1066_v53  ;;  %v1464_v8 = vrot.slane %v1421_v31, 4  ;;  %v1520_v15 = vsub.f32 %v467_v5, %v1479_v35  ;;  %v1063_v19 = vadd.f32 %v1062_v40, %v1043_v37  ;;  %v5514_v31 = vld.sshfl [vmem:[#allocation1 + $0x8] sm:$0xff pattern:$0x75316420]  ;;  %v474_v37 = vld [vmem:[%s5282_s22 + $0x98] sm:$0xf] }
 0x18a   : > { %v1069_v63 = vsel %vm640_vm12, %v1044_v26, 0.0  ;;  %v1465_v43 = vrot.slane %v1424_v30, 4  ;;  %v1553_v14 = vmul.f32 %v1521_v1, %v1521_v1  ;;  %v1550_v52 = vmul.f32 %v1518_v28, %v1518_v28  ;;  %v471_v27 = vld [vmem:[%s5282_s22 + $0x84] sm:$0xff] }
 0x18b   : > { %v5502_v32 = vld.sshfl [vmem:[#allocation1 + $0x10] sm:$0xff pattern:$0x75316420]  ;;  %v1070_v38 = vadd.f32 %v1069_v63, %v1068_v49  ;;  %1119 = vmatmul.f32.gmra.mxu0 %v1063_v19  ;;  %v1420_v7 = vperm.slane %v5466_v57, 0  ;;  %v1523_v41 = vsub.f32 %v470_v59, %v1422_v3  ;;  %v1423_v58 = vperm.slane %v5468_v54, 0 }
 0x18c   : > { %1642 = vst [vmem:[#allocation1 + $0x10] ss:$2 sm:$0xff] %v1551_v46  ;;  %v5508_v13 = vld.sshfl [vmem:[#allocation1 + $0x20] sm:$0xff pattern:$0x75316420]  ;;  %v1552_v34 = vmul.f32 %v1520_v15, %v1520_v15  ;;  %v1525_v26 = vsub.f32 %v472_v23, %v1425_v62  ;;  %v1384_v57 = vsel %vm8019_vm14, %v5234_v29, %v5368_v11  ;;  %v1427_v5 = vperm.slane %v5486_v36, 1 }
 0x18d   : > { %v5510_v10 = vld.sshfl [vmem:[#allocation1 + $0x30] sm:$0xff pattern:$0x75316420]  ;;  %4035 = vmatmul.msk.f32.gmra.mxu2 %vm640_vm12, %v1070_v38  ;;  %1641 = vst [vmem:[#allocation1] ss:$2 sm:$0xff] %v1550_v52  ;;  %v1480_v47 = vsel %vm617_vm0, %v1420_v7, %v1464_v8  ;;  %v1481_v30 = vsel %vm617_vm0, %v1423_v58, %v1465_v43  ;;  %v1385_v54 = vsel %vm8013_vm8, %v5385_v50, %v1384_v57  ;;  %v1428_v35 = vperm.slane %v5486_v36, 2 }
 0x18e   : > { %1647 = vst [vmem:[#allocation1 + $0x30] ss:$2 sm:$0xff] %v1553_v14  ;;  %v5519_v39 = vld.sshfl [vmem:[#allocation1 + $0x28] sm:$0xff pattern:$0x75316420]  ;;  %v1430_v1 = vperm.slane %v5488_v2, 1  ;;  %v1555_v53 = vmul.f32 %v1523_v41, %v1523_v41  ;;  %v1387_v28 = vsel %vm8017_vm15, %v5368_v11, %v5234_v29  ;;  %v1522_v40 = vsub.f32 %v469_v18, %v1480_v47 }
 0x18f   : > { %1646 = vst [vmem:[#allocation1 + $0x20] ss:$2 sm:$0xff] %v1552_v34  ;;  %v476_v59 = vld [vmem:[%s5282_s22 + $0xa4] sm:$0xf]  ;;  %v1388_v3 = vsel %vm8012_vm4, %v5385_v50, %v1387_v28  ;;  %v1431_v62 = vperm.slane %v5488_v2, 2  ;;  %v1524_v46 = vsub.f32 %v471_v27, %v1481_v30  ;;  %v1557_v49 = vmul.f32 %v1525_v26, %v1525_v26  ;;  %v473_v34 = vld [vmem:[%s5282_s22 + $0x90] sm:$0xff] }
 0x190   : > { %v1386_v23 = vrot.slane %v1385_v54, 6  ;;  %v1466_v8 = vrot.slane %v1427_v5, 4  ;;  %v1467_v19 = vrot.slane %v1430_v1, 4  ;;  %v1527_v29 = vsub.f32 %v474_v37, %v1428_v35  ;;  %v475_v47 = vld [vmem:[%s5282_s22 + $0x9c] sm:$0xff]  ;;  %v478_v27 = vld [vmem:[%s5282_s22 + $0xb0] sm:$0xf] }
 0x191   : > { %v1389_v63 = vrot.slane %v1388_v3, 7  ;;  %v1426_v43 = vperm.slane %v5486_v36, 0  ;;  %v1429_v50 = vperm.slane %v5488_v2, 0  ;;  %v1554_v14 = vmul.f32 %v1522_v40, %v1522_v40 }
 0x192   : > { %v1529_v52 = vsub.f32 %v476_v59, %v1431_v62  ;;  %v1556_v7 = vmul.f32 %v1524_v46, %v1524_v46  ;;  %v1433_v26 = vperm.slane %v1386_v23, 1  ;;  %v1434_v36 = vperm.slane %v1386_v23, 2 }
 0x193   : > { %v5535_v51 = vld.sshfl [vmem:[#allocation1 + $0x10] sm:$0xff pattern:$0x75316420]  ;;  %v1482_v18 = vsel %vm617_vm0, %v1426_v43, %v1466_v8  ;;  %v1483_v2 = vsel %vm617_vm0, %v1429_v50, %v1467_v19  ;;  %v1559_v57 = vmul.f32 %v1527_v29, %v1527_v29  ;;  %v1436_v5 = vperm.slane %v1389_v63, 1 }
 0x194   : > { %1652 = vst [vmem:[#allocation1 + $0x10] ss:$2 sm:$0xff] %v1555_v53  ;;  %v5543_v11 = vld.sshfl [vmem:[#allocation1] sm:$0xff pattern:$0x75316420]  ;;  %v1437_v54 = vperm.slane %v1389_v63, 2  ;;  %v1526_v35 = vsub.f32 %v473_v34, %v1482_v18  ;;  %v1561_v1 = vmul.f32 %v1529_v52, %v1529_v52  ;;  %v1528_v28 = vsub.f32 %v475_v47, %v1483_v2 }
 0x195   : > { %v5541_v15 = vld.sshfl [vmem:[#allocation1 + $0x30] sm:$0xff pattern:$0x75316420]  ;;  %v5547_v38 = vld.sshfl [vmem:[#allocation1 + $0x8] sm:$0xff pattern:$0x75316420]  ;;  %v1531_v59 = vsub.f32 %v478_v27, %v1434_v36 }
 0x196   : > { %1657 = vst [vmem:[#allocation1 + $0x30] ss:$2 sm:$0xff] %v1557_v49  ;;  %v5549_v41 = vld.sshfl [vmem:[#allocation1 + $0x20] sm:$0xff pattern:$0x75316420]  ;;  %v1468_v40 = vrot.slane %v1433_v26, 4  ;;  %v1558_v8 = vmul.f32 %v1526_v35, %v1526_v35  ;;  %v1560_v43 = vmul.f32 %v1528_v28, %v1528_v28 }
 0x197   : > { %v5551_v58 = vld.sshfl [vmem:[#allocation1 + $0x28] sm:$0xff pattern:$0x75316420]  ;;  %1651 = vst [vmem:[#allocation1] ss:$2 sm:$0xff] %v1554_v14  ;;  %v1432_v3 = vperm.slane %v1386_v23, 0  ;;  %v1563_v34 = vmul.f32 %v1531_v59, %v1531_v59 }
 0x198   : > { %1656 = vst [vmem:[#allocation1 + $0x20] ss:$2 sm:$0xff] %v1556_v7  ;;  %v480_v53 = vld [vmem:[%s5282_s22 + $0xbc] sm:$0xf]  ;;  %v1435_v62 = vperm.slane %v1389_v63, 0  ;;  %v1469_v46 = vrot.slane %v1436_v5, 4 }
 0x199   : > { %v1533_v49 = vsub.f32 %v480_v53, %v1437_v54  ;;  %v477_v52 = vld [vmem:[%s5282_s22 + $0xa8] sm:$0xff]  ;;  %v1484_v7 = vsel %vm617_vm0, %v1432_v3, %v1468_v40  ;;  %v479_v18 = vld [vmem:[%s5282_s22 + $0xb4] sm:$0xff]  ;;  %v8160_v28 = vld [vmem:[#allocation8_spill] sm:$0xff]  ;;  %vm8164_vm6 = vcmask 293888   ;;  %vm8171_vm15 = vcmask 293888  }
 0x19a   : > { %v1485_v23 = vsel %vm617_vm0, %v1435_v62, %v1469_v46  ;;  %v1530_v26 = vsub.f32 %v477_v52, %v1484_v7  ;;  %v8162_v3 = vld [vmem:[#allocation7_spill] sm:$0xff]  ;;  %vm8165_vm4 = vmmov %vm8164_vm6 }
 0x19b   : > { %v5558_v30 = vld.sshfl [vmem:[#allocation1 + $0x10] sm:$0xff pattern:$0x75316420]  ;;  %v1565_v47 = vmul.f32 %v1533_v49, %v1533_v49  ;;  %v1532_v2 = vsub.f32 %v479_v18, %v1485_v23  ;;  %vm8166_vm8 = vmmov %vm8165_vm4 }
 0x19c   : > { %1662 = vst [vmem:[#allocation1 + $0x10] ss:$2 sm:$0xff] %v1559_v57  ;;  %v1562_v57 = vmul.f32 %v1530_v26, %v1530_v26  ;;  %vm8167_vm13 = vmmov %vm8165_vm4 }
 0x19d   : > { %v5561_v37 = vld.sshfl [vmem:[#allocation1 + $0x30] sm:$0xff pattern:$0x75316420]  ;;  %v1564_v54 = vmul.f32 %v1532_v2, %v1532_v2  ;;  %vm8172_vm11 = vmmov %vm8171_vm15 }
 0x19e   : > { %1667 = vst [vmem:[#allocation1 + $0x30] ss:$2 sm:$0xff] %v1561_v1  ;;  %v5563_v19 = vld.sshfl [vmem:[#allocation1] sm:$0xff pattern:$0x75316420]  ;;  %vm8173_vm14 = vmmov %vm8172_vm11 }
 0x19f   : > { %v5565_v29 = vld.sshfl [vmem:[#allocation1 + $0x8] sm:$0xff pattern:$0x75316420]  ;;  %v5567_v50 = vld.sshfl [vmem:[#allocation1 + $0x20] sm:$0xff pattern:$0x75316420] }
 0x1a0   : > { %v5569_v14 = vld.sshfl [vmem:[#allocation1 + $0x28] sm:$0xff pattern:$0x75316420]  ;;  %1661 = vst [vmem:[#allocation1] ss:$2 sm:$0xff] %v1558_v8 }
 0x1a1   : > { %1666 = vst [vmem:[#allocation1 + $0x20] ss:$2 sm:$0xff] %v1560_v43 }
 0x1a3   : > { %v5575_v63 = vld.sshfl [vmem:[#allocation1 + $0x10] sm:$0xff pattern:$0x75316420] }
 0x1a4   : > { %1672 = vst [vmem:[#allocation1 + $0x10] ss:$2 sm:$0xff] %v1563_v34 }
 0x1a5   : > { %v5577_v36 = vld.sshfl [vmem:[#allocation1 + $0x30] sm:$0xff pattern:$0x75316420] }
 0x1a6   : > { %8158 = vst [vmem:[#allocation5_spill] sm:$0xff] %v5577_v36 }
 0x1a7   : > { %1677 = vst [vmem:[#allocation1 + $0x30] ss:$2 sm:$0xff] %v1565_v47  ;;  %v5579_v27 = vld.sshfl [vmem:[#allocation1] sm:$0xff pattern:$0x75316420] }
 0x1a8   : > { %v5581_v5 = vld.sshfl [vmem:[#allocation1 + $0x8] sm:$0xff pattern:$0x75316420]  ;;  %v5583_v35 = vld.sshfl [vmem:[#allocation1 + $0x20] sm:$0xff pattern:$0x75316420] }
 0x1a9   : > { %v5585_v1 = vld.sshfl [vmem:[#allocation1 + $0x28] sm:$0xff pattern:$0x75316420]  ;;  %1671 = vst [vmem:[#allocation1] ss:$2 sm:$0xff] %v1562_v57 }
 0x1aa   : > { %1676 = vst [vmem:[#allocation1 + $0x20] ss:$2 sm:$0xff] %v1564_v54 }
 0x1ab   : > { %v5587_v53 = vld.sshfl [vmem:[#allocation1 + $0x10] sm:$0xff pattern:$0x75316420] }
 0x1ac   : > { %8159 = vst [vmem:[#allocation6_spill] sm:$0xff] %v5587_v53 }
 0x1ad   : > { %1992 = vst [vmem:[#allocation1 + $0x10] ss:$2 sm:$0xff] %v8160_v28 }
 0x1b0   : > { %v5590_v40 = vld.sshfl [vmem:[#allocation1 + $0x8] sm:$0xff pattern:$0x75316420]  ;;  %v5592_v59 = vld.sshfl [vmem:[#allocation1] sm:$0xff pattern:$0x75316420] }
 0x1b1   : > { %8161 = vst [vmem:[#allocation9_spill] sm:$0xff] %v5590_v40 }
 0x1b2   : > { %1990 = vst [vmem:[#allocation1] ss:$2 sm:$0xff] %v8162_v3  ;;  %v5597_v3 = vstv %s423_s19 }
 0x1b3   : > { %8163 = vst [vmem:[#allocation10_spill] sm:$0xff] %v5597_v3 }
 0x1d7   : > { %v1094_v62 = vpop.f32.mrf.mxu3  ;;  %v1117_v46 = vpop.f32.mrf.mxu0 }
 0x1d8   : > { %v1118_v8 = vadd.f32 %v1117_v46, %v1094_v62 }
 0x1f3   : > { %v1097_v34 = vpop.f32.mrf.mxu3 }
 0x1f4   : > { %v1140_v49 = vpop.f32.mrf.mxu2 }
 0x1f5   : > { %v1141_v43 = vadd.f32 %v1140_v49, %v1118_v8  ;;  %v1157_v49 = vperm.slane %v5179_v25, 0 }
 0x1f7   : > { %v1146_v52 = vmul.f32 %v1141_v43, %v5187_v56 }
 0x1f9   : > { %v1148_v7 = vmax.f32 %v1146_v52, 0.01 }
 0x1fb   : > { %4139 = vlog2.f32 %v1148_v7 }
 0x201   : > { %v4140_v57 = vpop.eup %4139 }
 0x202   : > { %v1151_v28 = vmul.f32 0.6931472, %v4140_v57 }
 0x204   : > { %v1155_v62 = vadd.f32 %v5597_v3, %v1151_v28  ;;  %v1191_v52 = vsel %vm8164_vm6, %v1151_v28, 0.0 }
 0x206   : > { %v1158_v43 = vmul.f32 %v1157_v49, %v1155_v62 }
 0x208   : > { %v1120_v18 = vpop.f32.mrf.mxu0 }
 0x209   : > { %v1121_v23 = vadd.f32 %v1120_v18, %v1097_v34 }
 0x210   : > { %v1143_v47 = vpop.f32.mrf.mxu2 }
 0x211   : > { %v1144_v26 = vadd.f32 %v1143_v47, %v1121_v23  ;;  %v1160_v47 = vsel %vm8166_vm8, %v1158_v43, 0.0  ;;  %vm8169_vm8 = vmmov %vm8165_vm4 }
 0x213   : > { %v1147_v2 = vmul.f32 %v1144_v26, %v5187_v56 }
 0x215   : > { %v1149_v54 = vmax.f32 %v1147_v2, 0.01 }
 0x217   : > { %4141 = vlog2.f32 %v1149_v54 }
 0x21d   : > { %v4142_v46 = vpop.eup %4141 }
 0x21e   : > { %v1153_v8 = vmul.f32 0.6931472, %v4142_v46 }
 0x220   : > { %v1156_v7 = vadd.f32 %v5597_v3, %v1153_v8  ;;  %v1192_v34 = vsel %vm8165_vm4, %v1153_v8, 0.0 }
 0x221   : > { %v1193_v56 = vadd.f32 %v1192_v34, %v1191_v52 }
 0x222   : > { %v1159_v18 = vmul.f32 %v1157_v49, %v1156_v7  ;;  %v483_v49 = vld [vmem:[%s7959_s3] sm:$0x1]  ;;  %v5609_v7 = vstv %s4018_s23 }
 0x223   : > { %v1194_v23 = vrot.slane %v1193_v56, 4  ;;  %8168 = vst [vmem:[#allocation11_spill] sm:$0xff] %v5609_v7 }
 0x224   : > { %v1161_v26 = vsel %vm8167_vm13, %v1159_v18, 0.0  ;;  %v5636_v18 = vld [vmem:[%s7963_s7 + $0x20] sm:$0xff]  ;;  %vm8170_vm13 = vmmov %vm8165_vm4 }
 0x225   : > { %v1162_v2 = vadd.f32 %v1161_v26, %v1160_v47  ;;  %v1195_v57 = vadd.f32 %v1194_v23, %v1193_v56  ;;  %v5630_v56 = vld [vmem:[%s7963_s7 + $0x38] sm:$0xff]  ;;  %v5643_v23 = vld [vmem:[%s7963_s7 + $0x8] sm:$0xff] }
 0x227   : > { %v1163_v54 = vrot.slane %v1162_v2, 4  ;;  %v1196_v53 = vrot.slane %v1195_v57, 2 }
 0x229   : > { %v1164_v25 = vadd.f32 %v1163_v54, %v1162_v2  ;;  %v1197_v46 = vadd.f32 %v1196_v53, %v1195_v57  ;;  %v5616_v53 = vld [vmem:[%s7963_s7 + $0x68] sm:$0xf] }
 0x22b   : > { %v1165_v62 = vrot.slane %v1164_v25, 2  ;;  %v1198_v28 = vrot.slane %v1197_v46, 1 }
 0x22d   : > { %v1166_v40 = vadd.f32 %v1165_v62, %v1164_v25  ;;  %v1199_v3 = vadd.f32 %v1198_v28, %v1197_v46 }
 0x22f   : > { %v1167_v36 = vrot.slane %v1166_v40, 1  ;;  %v1200_v8 = vadd.f32 29.406033, %v1199_v3 }
 0x231   : > { %v1168_v43 = vadd.f32 %v1167_v36, %v1166_v40  ;;  %v1201_v52 = vmul.f32 0.5, %v1200_v8  ;;  %v5624_v36 = vld [vmem:[%s7963_s7 + $0x50] sm:$0xff] }
 0x233   : > { %v1169_v34 = vsub.f32 %v483_v49, %v1168_v43  ;;  %4038 = vmatmul.msk.f32.vlgmr.msrb.gmra.mxu2 %vm8165_vm4, %v1201_v52  ;;  %4040 = vmatmul.msk.f32.vlgmr.msrb.gmra.mxu1 %vm8169_vm8, %v1201_v52 }
 0x234   : > { %4045 = vmatpush.msk.msrb.mxu2 %vm617_vm0, %v5616_v53 }
 0x235   : > { %v1171_v3 = vmul.f32 %v5609_v7, %v1169_v34  ;;  %v1729_v34 = vsel %vm617_vm0, %v5350_v55, 0.0  ;;  %v1763_v55 = vsel %vm617_vm0, %v5406_v6, 0.0  ;;  %v1738_v6 = vsel %vm617_vm0, %v5475_v45, 0.0  ;;  %v538_v7 = vld [vmem:[%s7961_s5 + $0x68] sm:$0xff] }
 0x236   : > { %1300 = vmatpush.msrb.mxu2 %v5624_v36  ;;  %v1767_v45 = vsel %vm617_vm0, %v5453_v16, 0.0 }
 0x237   : > { %v4036_v40 = vmul.f32 -1.442695, %v1171_v3  ;;  %v1732_v3 = vsel %vm617_vm0, %v5404_v4, 0.0  ;;  %v1736_v4 = vsel %vm617_vm0, %v5451_v60, 0.0  ;;  %v499_v60 = vld [vmem:[%s7960_s4 + $0x78] sm:$0xff] }
 0x238   : > { %1301 = vmatpush.msrb.mxu2 %v5630_v56  ;;  %1849 = vmatpush.msrb.mxu0 %v499_v60 }
 0x239   : > { %4143 = vpow2.f32 %v4036_v40 }
 0x23a   : > { %1302 = vmatpush.msrb.mxu2 %v5636_v18 }
 0x23b   : > { %4042 = vmatmul.msk.f32.vlgmr.msra.gmra.mxu2 %vm8170_vm13, %v1201_v52  ;;  %v1730_v52 = vsel %vm617_vm0, %v5359_v21, 0.0  ;;  %v1760_v21 = vsel %vm617_vm0, %v5352_v42, 0.0  ;;  %v1765_v42 = vsel %vm617_vm0, %v5430_v22, 0.0 }
 0x23c   : > { %1303 = vmatpush.msrb.mxu2 %v5643_v23  ;;  %v1731_v40 = vadd.f32 %v1730_v52, %v1729_v34 }
 0x23f   : > { %v4144_v47 = vpop.eup %4143 }
 0x240   : > { %v1175_v26 = vadd.f32 1.0, %v4144_v47  ;;  %v1733_v47 = vadd.f32 %v1732_v3, %v1731_v40 }
 0x242   : > { %4145 = vrcp.f32 %v1175_v26  ;;  %v1187_v25 = vand.u32 2147483648, %v1175_v26  ;;  %v1185_v62 = vand.u32 2147483647, %v1175_v26  ;;  %vm1181_vm4 = vweird.f32 %v1175_v26 }
 0x244   : > { %v1188_v8 = vor.u32 1.1754944e-38, %v1187_v25  ;;  %vm1186_vm13 = vcmp.eq.f32.partialorder %v1185_v62, 8.507059e+37 }
 0x248   : > { %v4146_v2 = vpop.eup %4145 }
 0x249   : > { %v1177_v57 = vmul.f32 %v4146_v2, %v1175_v26  ;;  %vm1182_vm6 = vweird.f32 %v4146_v2  ;;  %v1761_v26 = vsel %vm617_vm0, %v5361_v48, 0.0 }
 0x24a   : > { %vm1183_vm8 = vmor %vm1181_vm4, %vm1182_vm6 }
 0x24b   : > { %v1178_v54 = vsub.f32 1.0, %v1177_v57 }
 0x24d   : > { %v1179_v46 = vmul.f32 %v4146_v2, %v1178_v54  ;;  %v1762_v54 = vadd.f32 %v1761_v26, %v1760_v21  ;;  %v495_v21 = vld [vmem:[%s7960_s4 + $0x58] sm:$0xff] }
 0x24f   : > { %v1180_v28 = vadd.f32 %v4146_v2, %v1179_v46  ;;  %v1764_v62 = vadd.f32 %v1763_v55, %v1762_v54  ;;  %v493_v54 = vld [vmem:[%s7960_s4 + $0x48] sm:$0xff] }
 0x251   : > { %v1184_v49 = vsel %vm1183_vm8, %v4146_v2, %v1180_v28  ;;  %v1734_v2 = vsel %vm617_vm0, %v5428_v9, 0.0 }
 0x252   : > { %v1189_v43 = vsel %vm1186_vm13, %v1188_v8, %v1184_v49  ;;  %v1735_v25 = vadd.f32 %v1734_v2, %v1733_v47  ;;  %v1740_v8 = vsel %vm617_vm0, %v5506_v0, 0.0  ;;  %v497_v49 = vld [vmem:[%s7960_s4 + $0x68] sm:$0xff]  ;;  %v1769_v0 = vsel %vm617_vm0, %v5477_v17, 0.0  ;;  %v514_v17 = vld [vmem:[%s7960_s4 + $0xf0] sm:$0xff] }
 0x253   : > { %4044 = vmatmul.msk.f32.vlgmr.msra.gmra.mxu1 %vm8171_vm15, %v1189_v43  ;;  %4046 = vmatmul.msk.f32.vlgmr.msrb.gmra.mxu2 %vm8172_vm11, %v1189_v43  ;;  %vm8174_vm11 = vcmask 551936   ;;  %v1742_v47 = vsel %vm617_vm0, %v5508_v13, 0.0  ;;  %v494_v13 = vld [vmem:[%s7960_s4 + $0x50] sm:$0xff] }
 0x254   : > { %4048 = vmatmul.msk.f32.vlgmr.msrb.gmra.mxu3 %vm8173_vm14, %v1189_v43  ;;  %v1792_v57 = vsel %vm8174_vm11, %v5363_v24, 0.0  ;;  %vm8175_vm14 = vmmov %vm8174_vm11  ;;  %v1737_v24 = vadd.f32 %v1736_v4, %v1735_v25  ;;  %v1766_v43 = vadd.f32 %v1765_v42, %v1764_v62  ;;  %v512_v25 = vld [vmem:[%s7960_s4 + $0xe0] sm:$0xff]  ;;  %v511_v42 = vld [vmem:[%s7960_s4 + $0xd8] sm:$0xff] }
 0x255   : > { %v1791_v48 = vsel %vm8175_vm14, %v5357_v20, 0.0  ;;  %vm8176_vm15 = vmmov %vm8174_vm11  ;;  %v498_v20 = vld [vmem:[%s7960_s4 + $0x70] sm:$0xff] }
 0x256   : > { %v1794_v9 = vsel %vm8176_vm15, %v5417_v61, 0.0  ;;  %v1793_v46 = vadd.f32 %v1792_v57, %v1791_v48  ;;  %v515_v61 = vld [vmem:[%s7960_s4 + $0xf8] sm:$0xff]  ;;  %vm8177_vm6 = vmmov %vm8174_vm11  ;;  %v1739_v52 = vadd.f32 %v1738_v6, %v1737_v24  ;;  %1850 = vmatpush.msrb.mxu0 %v498_v20  ;;  %v1768_v16 = vadd.f32 %v1767_v45, %v1766_v43  ;;  %v492_v24 = vld [vmem:[%s7960_s4 + $0x40] sm:$0xff] }
 0x257   : > { %v1796_v22 = vsel %vm8177_vm6, %v5432_v33, 0.0  ;;  %1869 = vmatpush.msrb.mxu1 %v515_v61  ;;  %vm8178_vm4 = vmmov %vm8177_vm6  ;;  %v496_v33 = vld [vmem:[%s7960_s4 + $0x60] sm:$0xff]  ;;  %v1744_v57 = vsel %vm617_vm0, %v5543_v11, 0.0  ;;  %v513_v11 = vld [vmem:[%s7960_s4 + $0xe8] sm:$0xff]  ;;  %v1748_v20 = vsel %vm617_vm0, %v5563_v19, 0.0 }
 0x258   : > { %v1795_v28 = vadd.f32 %v1794_v9, %v1793_v46  ;;  %v1798_v34 = vsel %vm8178_vm4, %v5472_v12, 0.0  ;;  %v1741_v40 = vadd.f32 %v1740_v8, %v1739_v52  ;;  %1851 = vmatpush.msrb.mxu0 %v497_v49  ;;  %vm8179_vm8 = vmmov %vm8178_vm4  ;;  %v1771_v12 = vsel %vm617_vm0, %v5514_v31, 0.0  ;;  %v524_v6 = vld [vmem:[%s7960_s4 + $0x140] sm:$0xf]  ;;  %v5767_v8 = vld [vmem:[%s7960_s4 + $0x30] sm:$0xff] }
 0x259   : > { %v1800_v2 = vsel %vm8179_vm8, %v5483_v44, 0.0  ;;  %v1770_v55 = vadd.f32 %v1769_v0, %v1768_v16  ;;  %vm8180_vm13 = vmmov %vm8178_vm4  ;;  %1870 = vmatpush.msrb.mxu1 %v514_v17  ;;  %v1746_v46 = vsel %vm617_vm0, %v5549_v41, 0.0  ;;  %v1775_v41 = vsel %vm617_vm0, %v5547_v38, 0.0  ;;  %4049 = vmatpush.msk.msra.mxu2 %vm617_vm0, %v524_v6  ;;  %v522_v38 = vld [vmem:[%s7960_s4 + $0x130] sm:$0xff]  ;;  %8184 = vst [vmem:[#allocation13_spill] sm:$0xff] %v5767_v8  ;;  %v509_v49 = vld [vmem:[%s7960_s4 + $0xc8] sm:$0xff] }
 0x25a   : > { %v1797_v3 = vadd.f32 %v1796_v22, %v1795_v28  ;;  %1852 = vmatpush.msrb.mxu0 %v496_v33  ;;  %v1743_v44 = vadd.f32 %v1742_v47, %v1741_v40  ;;  %v1802_v31 = vsel %vm8180_vm13, %v5502_v32, 0.0  ;;  %v1773_v32 = vsel %vm617_vm0, %v5519_v39, 0.0  ;;  %vm8181_vm11 = vmmov %vm8178_vm4  ;;  %v523_v39 = vld [vmem:[%s7960_s4 + $0x138] sm:$0xff]  ;;  %v508_v16 = vld [vmem:[%s7960_s4 + $0xc0] sm:$0xff] }
 0x25b   : > { %v1772_v48 = vadd.f32 %v1771_v12, %v1770_v55  ;;  %1871 = vmatpush.msrb.mxu1 %v513_v11  ;;  %v1804_v60 = vsel %vm8181_vm11, %v5510_v10, 0.0  ;;  %v5753_v28 = vld [vmem:[%s7960_s4 + $0x38] sm:$0xff]  ;;  %v510_v10 = vld [vmem:[%s7960_s4 + $0xd0] sm:$0xff]  ;;  %vm8183_vm14 = vmmov %vm8178_vm4  ;;  %1897 = vmatpush.msra.mxu2 %v523_v39  ;;  %v1754_v55 = vsel %vm617_vm0, %v5583_v35, 0.0  ;;  %v1783_v35 = vsel %vm617_vm0, %v5581_v5, 0.0 }
 0x25c   : > { %v1799_v26 = vadd.f32 %v1798_v34, %v1797_v3  ;;  %1853 = vmatpush.msrb.mxu0 %v495_v21  ;;  %v1745_v9 = vadd.f32 %v1744_v57, %v1743_v44  ;;  %8182 = vst [vmem:[#allocation12_spill] sm:$0xff] %v5753_v28  ;;  %v1806_v45 = vsel %vm8183_vm14, %v5535_v51, 0.0  ;;  %v1777_v51 = vsel %vm617_vm0, %v5551_v58, 0.0  ;;  %v5780_v3 = vld [vmem:[%s7960_s4 + $0x28] sm:$0xff]  ;;  %vm8186_vm15 = vmmov %vm8178_vm4  ;;  %v5795_v0 = vld [vmem:[%s7960_s4 + $0x20] sm:$0xff] }
 0x25d   : > { %1872 = vmatpush.msrb.mxu1 %v512_v25  ;;  %v1774_v61 = vadd.f32 %v1773_v32, %v1772_v48  ;;  %v1750_v34 = vsel %vm617_vm0, %v5567_v50, 0.0  ;;  %8185 = vst [vmem:[#allocation16_spill] sm:$0xff] %v5780_v3  ;;  %1898 = vmatpush.msra.mxu2 %v522_v38  ;;  %v1808_v40 = vsel %vm8186_vm15, %v5541_v15, 0.0  ;;  %v1779_v58 = vsel %vm617_vm0, %v5565_v29, 0.0  ;;  %v507_v47 = vld [vmem:[%s7960_s4 + $0xb8] sm:$0xff]  ;;  %vm8188_vm6 = vmmov %vm8178_vm4  ;;  %v506_v12 = vld [vmem:[%s7960_s4 + $0xb0] sm:$0xff] }
 0x25e   : > { %v1801_v4 = vadd.f32 %v1800_v2, %v1799_v26  ;;  %1854 = vmatpush.msrb.mxu0 %v494_v13  ;;  %v1747_v22 = vadd.f32 %v1746_v46, %v1745_v9  ;;  %v1752_v50 = vsel %vm617_vm0, %v5579_v27, 0.0  ;;  %8187 = vst [vmem:[#allocation21_spill] sm:$0xff] %v5795_v0  ;;  %v1810_v2 = vsel %vm8188_vm6, %v5558_v30, 0.0  ;;  %v5806_v27 = vld [vmem:[%s7960_s4 + $0x18] sm:$0xff]  ;;  %v521_v57 = vld [vmem:[%s7960_s4 + $0x128] sm:$0xff]  ;;  %v520_v30 = vld [vmem:[%s7960_s4 + $0x120] sm:$0xff] }
 0x25f   : > { %1873 = vmatpush.msrb.mxu1 %v511_v42  ;;  %v1776_v43 = vadd.f32 %v1775_v41, %v1774_v61  ;;  %8189 = vst [vmem:[#allocation14_spill] sm:$0xff] %v5806_v27  ;;  %v1781_v13 = vsel %vm617_vm0, %v5569_v14, 0.0  ;;  %v505_v11 = vld [vmem:[%s7960_s4 + $0xa8] sm:$0xff]  ;;  %1899 = vmatpush.msra.mxu2 %v521_v57  ;;  %v519_v14 = vld [vmem:[%s7960_s4 + $0x118] sm:$0xff]  ;;  %vm8192_vm8 = vmmov %vm8178_vm4  ;;  %vm1909_vm15 = vcmask 400384  }
 0x260   : > { %v1803_v62 = vadd.f32 %v1802_v31, %v1801_v4  ;;  %1855 = vmatpush.msrb.mxu0 %v493_v54  ;;  %v1749_v52 = vadd.f32 %v1748_v20, %v1747_v22  ;;  %v5825_v31 = vld [vmem:[%s7960_s4 + $0x10] sm:$0xff]  ;;  %v1812_v4 = vsel %vm8178_vm4, %v5561_v37, 0.0  ;;  %v1756_v54 = vsel %vm617_vm0, %v5592_v59, 0.0  ;;  %v5843_v25 = vld [vmem:[%s7960_s4 + $0x8] sm:$0xff]  ;;  %v504_v37 = vld [vmem:[%s7960_s4 + $0xa0] sm:$0xff] }
 0x261   : > { %1874 = vmatpush.msrb.mxu1 %v510_v10  ;;  %v1778_v26 = vadd.f32 %v1777_v51, %v1776_v43  ;;  %8190 = vst [vmem:[#allocation18_spill] sm:$0xff] %v5825_v31  ;;  %1900 = vmatpush.msra.mxu2 %v520_v30  ;;  %v1678_v9 = vld.sshfl [vmem:[#allocation1 + $0x20] sm:$0xff pattern:$0x75316420]  ;;  %v1814_v46 = vsel %vm8192_vm8, %v5575_v63, 0.0  ;;  %v518_v63 = vld [vmem:[%s7960_s4 + $0x110] sm:$0xff]  ;;  %vm8195_vm13 = vmmov %vm8178_vm4 }
 0x262   : > { %1856 = vmatpush.msrb.mxu0 %v492_v24  ;;  %v1805_v19 = vadd.f32 %v1804_v60, %v1803_v62  ;;  %v1751_v15 = vadd.f32 %v1750_v34, %v1749_v52  ;;  %8191 = vst [vmem:[#allocation19_spill] sm:$0xff] %v5843_v25  ;;  %v5854_v59 = vld [vmem:[%s7960_s4] sm:$0xff]  ;;  %v503_v62 = vld [vmem:[%s7960_s4 + $0x98] sm:$0xff]  ;;  %v1785_v60 = vsel %vm617_vm0, %v5585_v1, 0.0  ;;  %v1758_v39 = vsel %vm617_vm0, %v1678_v9, 0.0  ;;  %v502_v20 = vld [vmem:[%s7960_s4 + $0x90] sm:$0xff] }
 0x263   : > { %1875 = vmatpush.msrb.mxu1 %v509_v49  ;;  %v1780_v21 = vadd.f32 %v1779_v58, %v1778_v26  ;;  %8193 = vst [vmem:[#allocation15_spill] sm:$0xff] %v5854_v59  ;;  %1901 = vmatpush.msra.mxu2 %v519_v14  ;;  %v517_v10 = vld [vmem:[%s7960_s4 + $0x108] sm:$0xff]  ;;  %v516_v1 = vld [vmem:[%s7960_s4 + $0x100] sm:$0xff]  ;;  %v540_v38 = vld [vmem:[%s7961_s5 + $0x78] sm:$0xff]  ;;  %vm8215_vm8 = vcmask 1042433  }
 0x264   : > { %1857 = vmatpush.msrb.mxu0 %v5753_v28  ;;  %v1807_v33 = vadd.f32 %v1806_v45, %v1805_v19  ;;  %v1753_v17 = vadd.f32 %v1752_v50, %v1751_v15  ;;  %v8194_v61 = vld [vmem:[#allocation5_spill] sm:$0xff]  ;;  %v543_v45 = vld [vmem:[%s7961_s5 + $0x90] sm:$0x1]  ;;  %vm8198_vm11 = vmmov %vm8178_vm4 }
 0x265   : > { %1876 = vmatpush.msrb.mxu1 %v508_v16  ;;  %v1782_v48 = vadd.f32 %v1781_v13, %v1780_v21  ;;  %1902 = vmatpush.msra.mxu2 %v518_v63  ;;  %v1816_v22 = vsel %vm8195_vm13, %v8194_v61, 0.0  ;;  %v8196_v19 = vld [vmem:[#allocation9_spill] sm:$0xff]  ;;  %v1680_v58 = vld.sshfl [vmem:[#allocation1 + $0x30] sm:$0xff pattern:$0x75316420]  ;;  %vm8199_vm14 = vmmov %vm8178_vm4  ;;  %vm8216_vm13 = vcmask 1043458  }
 0x266   : > { %1858 = vmatpush.msrb.mxu0 %v5767_v8  ;;  %v1809_v29 = vadd.f32 %v1808_v40, %v1807_v33  ;;  %v1755_v32 = vadd.f32 %v1754_v55, %v1753_v17  ;;  %v1787_v49 = vsel %vm617_vm0, %v8196_v19, 0.0  ;;  %v501_v43 = vld [vmem:[%s7960_s4 + $0x88] sm:$0xff]  ;;  %4051 = vmatpush.msk.msra.mxu3 %vm711_vm2, %v543_v45  ;;  %v8197_v33 = vld [vmem:[#allocation6_spill] sm:$0xff]  ;;  %v5895_v40 = vld [vmem:[%s7962_s6 + $0x78] sm:$0xff]  ;;  %v1820_v21 = vsel %vm8199_vm14, %v1680_v58, 0.0 }
 0x267   : > { %1877 = vmatpush.msrb.mxu1 %v507_v47  ;;  %v1784_v24 = vadd.f32 %v1783_v35, %v1782_v48  ;;  %1903 = vmatpush.msra.mxu2 %v517_v10  ;;  %v1679_v52 = vld.sshfl [vmem:[#allocation1 + $0x28] sm:$0xff pattern:$0x75316420]  ;;  %v1818_v16 = vsel %vm8198_vm11, %v8197_v33, 0.0  ;;  %v500_v47 = vld [vmem:[%s7960_s4 + $0x80] sm:$0xff]  ;;  %v5931_v35 = vld [vmem:[%s7962_s6 + $0x138] sm:$0xff] }
 0x268   : > { %1859 = vmatpush.msrb.mxu0 %v5780_v3  ;;  %v1811_v44 = vadd.f32 %v1810_v2, %v1809_v29  ;;  %v1757_v6 = vadd.f32 %v1756_v54, %v1755_v32  ;;  %1932 = vmatpush.msra.mxu3 %v540_v38  ;;  %v5904_v2 = vld [vmem:[%s7962_s6 + $0x70] sm:$0xff]  ;;  %v1789_v29 = vsel %vm617_vm0, %v1679_v52, 0.0  ;;  %v5912_v17 = vld [vmem:[%s7962_s6 + $0x68] sm:$0xff]  ;;  %v5918_v13 = vld [vmem:[%s7962_s6 + $0x140] sm:$0xf]  ;;  %vm8250_vm11 = vcmask 293888  }
 0x269   : > { %1878 = vmatpush.msrb.mxu1 %v506_v12  ;;  %v1786_v51 = vadd.f32 %v1785_v60, %v1784_v24  ;;  %1904 = vmatpush.msra.mxu2 %v516_v1  ;;  %v5943_v9 = vld [vmem:[%s7962_s6 + $0x130] sm:$0xff]  ;;  %v5955_v24 = vld [vmem:[%s7962_s6 + $0x128] sm:$0xff]  ;;  %v5967_v60 = vld [vmem:[%s7962_s6 + $0x120] sm:$0xff] }
 0x26a   : > { %1860 = vmatpush.msrb.mxu0 %v5795_v0  ;;  %v1813_v5 = vadd.f32 %v1812_v4, %v1811_v44  ;;  %v1759_v34 = vadd.f32 %v1758_v39, %v1757_v6  ;;  %v5925_v4 = vld [vmem:[%s7962_s6 + $0x60] sm:$0xff]  ;;  %v5961_v6 = vld [vmem:[%s7962_s6 + $0x48] sm:$0xff]  ;;  %v5985_v10 = vld [vmem:[%s7962_s6 + $0x38] sm:$0xff] }
 0x26b   : > { %1879 = vmatpush.msrb.mxu1 %v505_v11  ;;  %v1788_v26 = vadd.f32 %v1787_v49, %v1786_v51  ;;  %v5973_v39 = vld [vmem:[%s7962_s6 + $0x40] sm:$0xff]  ;;  %v5997_v45 = vld [vmem:[%s7962_s6 + $0x30] sm:$0xff]  ;;  %v6003_v19 = vld [vmem:[%s7962_s6 + $0x108] sm:$0xff] }
 0x26c   : > { %1861 = vmatpush.msrb.mxu0 %v5806_v27  ;;  %v1815_v41 = vadd.f32 %v1814_v46, %v1813_v5  ;;  %v1822_v57 = vsub.f32 0.0, %v1759_v34  ;;  %v5949_v5 = vld [vmem:[%s7962_s6 + $0x50] sm:$0xff]  ;;  %v6017_v51 = vld [vmem:[%s7962_s6 + $0x100] sm:$0xff]  ;;  %vm8213_vm6 = vmmov %vm8178_vm4  ;;  %vm8214_vm4 = vcmask 1041408  }
 0x26d   : > { %1880 = vmatpush.msrb.mxu1 %v504_v37  ;;  %v1790_v55 = vadd.f32 %v1789_v29, %v1788_v26  ;;  %v5937_v37 = vld [vmem:[%s7962_s6 + $0x58] sm:$0xff]  ;;  %v6023_v34 = vld [vmem:[%s7962_s6 + $0x20] sm:$0xff]  ;;  %vm8251_vm14 = vmmov %vm8250_vm11 }
 0x26e   : > { %1862 = vmatpush.msrb.mxu0 %v5825_v31  ;;  %v1817_v50 = vadd.f32 %v1816_v22, %v1815_v41  ;;  %v5979_v41 = vld [vmem:[%s7962_s6 + $0x118] sm:$0xff]  ;;  %v5991_v22 = vld [vmem:[%s7962_s6 + $0x110] sm:$0xff]  ;;  %8201 = vst [vmem:[#allocation24_spill] sm:$0xff] %v6023_v34 }
 0x26f   : > { %1881 = vmatpush.msrb.mxu1 %v503_v62  ;;  %v1823_v32 = vsub.f32 0.0, %v1790_v55  ;;  %v6061_v55 = vld [vmem:[%s7962_s6] sm:$0xff] }
 0x270   : > { %1863 = vmatpush.msrb.mxu0 %v5843_v25  ;;  %v1819_v12 = vadd.f32 %v1818_v16, %v1817_v50  ;;  %v6030_v16 = vld [vmem:[%s7962_s6 + $0x18] sm:$0xff]  ;;  %8205 = vst [vmem:[#allocation25_spill] sm:$0xff] %v6061_v55 }
 0x271   : > { %1882 = vmatpush.msrb.mxu1 %v502_v20  ;;  %8202 = vst [vmem:[#allocation22_spill] sm:$0xff] %v6030_v16 }
 0x272   : > { %1864 = vmatpush.msrb.mxu0 %v5854_v59  ;;  %v1821_v14 = vadd.f32 %v1820_v21, %v1819_v12  ;;  %v6046_v21 = vld [vmem:[%s7962_s6 + $0x8] sm:$0xff] }
 0x273   : > { %1883 = vmatpush.msrb.mxu1 %v501_v43  ;;  %v6009_v43 = vld [vmem:[%s7962_s6 + $0x28] sm:$0xff]  ;;  %8204 = vst [vmem:[#allocation28_spill] sm:$0xff] %v6046_v21 }
 0x274   : > { %2029 = vmatpush.msra.mxu0 %v5895_v40  ;;  %v1824_v62 = vsub.f32 0.0, %v1821_v14  ;;  %8200 = vst [vmem:[#allocation20_spill] sm:$0xff] %v6009_v43  ;;  %v6082_v14 = vld [vmem:[%s7962_s6 + $0xe0] sm:$0xff] }
 0x275   : > { %1884 = vmatpush.msrb.mxu1 %v500_v47 }
 0x276   : > { %2030 = vmatpush.msra.mxu0 %v5904_v2 }
 0x277   : > { %4057 = vmatpush.msk.msra.mxu1 %vm617_vm0, %v5918_v13 }
 0x278   : > { %2031 = vmatpush.msra.mxu0 %v5912_v17 }
 0x279   : > { %2077 = vmatpush.msra.mxu1 %v5931_v35 }
 0x27a   : > { %2032 = vmatpush.msra.mxu0 %v5925_v4 }
 0x27b   : > { %2078 = vmatpush.msra.mxu1 %v5943_v9 }
 0x27c   : > { %2033 = vmatpush.msra.mxu0 %v5937_v37 }
 0x27d   : > { %2079 = vmatpush.msra.mxu1 %v5955_v24 }
 0x27e   : > { %2034 = vmatpush.msra.mxu0 %v5949_v5 }
 0x27f   : > { %2080 = vmatpush.msra.mxu1 %v5967_v60 }
 0x280   : > { %2035 = vmatpush.msra.mxu0 %v5961_v6 }
 0x281   : > { %2081 = vmatpush.msra.mxu1 %v5979_v41 }
 0x282   : > { %2036 = vmatpush.msra.mxu0 %v5973_v39 }
 0x283   : > { %2082 = vmatpush.msra.mxu1 %v5991_v22 }
 0x284   : > { %2037 = vmatpush.msra.mxu0 %v5985_v10 }
 0x285   : > { %2083 = vmatpush.msra.mxu1 %v6003_v19 }
 0x286   : > { %2038 = vmatpush.msra.mxu0 %v5997_v45 }
 0x287   : > { %2084 = vmatpush.msra.mxu1 %v6017_v51 }
 0x288   : > { %2039 = vmatpush.msra.mxu0 %v6009_v43 }
 0x28a   : > { %2040 = vmatpush.msra.mxu0 %v6023_v34 }
 0x28c   : > { %2041 = vmatpush.msra.mxu0 %v6030_v16 }
 0x2b0   : > { %v1242_v30 = vpop.f32.mrf.mxu1 }
 0x2b1   : > { %v1826_v54 = vperm.slane %v1242_v30, 0  ;;  %v6055_v30 = vld [vmem:[%s7962_s6 + $0xf8] sm:$0xff] }
 0x2b6   : > { %v1222_v42 = vpop.f32.mrf.mxu2 }
 0x2b7   : > { %v1825_v15 = vperm.slane %v1222_v42, 0  ;;  %v1829_v42 = vsub.f32 %v1823_v32, %v1826_v54  ;;  %v6089_v54 = vld [vmem:[%s7962_s6 + $0xd8] sm:$0xff]  ;;  %v6103_v32 = vld [vmem:[%s7962_s6 + $0xc8] sm:$0xff] }
 0x2b9   : > { %v1828_v44 = vsub.f32 %v1822_v57, %v1825_v15  ;;  %v1833_v20 = vmul.f32 1.442695, %v1829_v42  ;;  %v6036_v15 = vld [vmem:[%s7962_s6 + $0x10] sm:$0xff] }
 0x2ba   : > { %8203 = vst [vmem:[#allocation23_spill] sm:$0xff] %v6036_v15  ;;  %2042 = vmatpush.msra.mxu0 %v6036_v15  ;;  %v6124_v42 = vld [vmem:[%s7962_s6 + $0xb0] sm:$0xff] }
 0x2bb   : > { %v1831_v46 = vmul.f32 1.442695, %v1828_v44  ;;  %v6067_v44 = vld [vmem:[%s7962_s6 + $0xf0] sm:$0xff]  ;;  %8206 = vst [vmem:[#allocation31_spill] sm:$0xff] %v6124_v42 }
 0x2bc   : > { %2043 = vmatpush.msra.mxu0 %v6046_v21 }
 0x2bd   : > { %4147 = vpow2.f32 %v1831_v46  ;;  %v6110_v46 = vld [vmem:[%s7962_s6 + $0xc0] sm:$0xff] }
 0x2be   : > { %v1262_v11 = vpop.f32.mrf.mxu2  ;;  %4149 = vpow2.f32 %v1833_v20  ;;  %2044 = vmatpush.msra.mxu0 %v6061_v55  ;;  %v6137_v20 = vld [vmem:[%s7962_s6 + $0xa0] sm:$0xff] }
 0x2bf   : > { %v1827_v48 = vperm.slane %v1262_v11, 0  ;;  %v6075_v11 = vld [vmem:[%s7962_s6 + $0xe8] sm:$0xff]  ;;  %8208 = vst [vmem:[#allocation26_spill] sm:$0xff] %v6137_v20 }
 0x2c1   : > { %v1830_v63 = vsub.f32 %v1824_v62, %v1827_v48  ;;  %v6096_v48 = vld [vmem:[%s7962_s6 + $0xd0] sm:$0xff]  ;;  %v6117_v62 = vld [vmem:[%s7962_s6 + $0xb8] sm:$0xff] }
 0x2c3   : > { %v1835_v61 = vmul.f32 1.442695, %v1830_v63  ;;  %v4148_v49 = vpop.eup %4147  ;;  %v6131_v63 = vld [vmem:[%s7962_s6 + $0xa8] sm:$0xff] }
 0x2c4   : > { %v4150_v47 = vpop.eup %4149  ;;  %8207 = vst [vmem:[#allocation17_spill] sm:$0xff] %v6131_v63 }
 0x2c5   : > { %4151 = vpow2.f32 %v1835_v61  ;;  %v6143_v61 = vld [vmem:[%s7962_s6 + $0x98] sm:$0xff] }
 0x2c6   : > { %8209 = vst [vmem:[#allocation30_spill] sm:$0xff] %v6143_v61 }
 0x2cb   : > { %v4152_v29 = vpop.eup %4151 }
 0x2d0   : > { %v1285_v1 = vpop.f32.mrf.mxu1 }
 0x2d1   : > { %v1837_v38 = vperm.slane %v1285_v1, 0  ;;  %v6149_v1 = vld [vmem:[%s7962_s6 + $0x90] sm:$0xff] }
 0x2d2   : > { %8210 = vst [vmem:[#allocation32_spill] sm:$0xff] %v6149_v1 }
 0x2d3   : > { %v6012_v52 = vmul.f32 %v4148_v49, %v1837_v38  ;;  %v6155_v38 = vld [vmem:[%s7962_s6 + $0x88] sm:$0xff]  ;;  %v6161_v49 = vld [vmem:[%s7962_s6 + $0x80] sm:$0xff] }
 0x2d4   : > { %8211 = vst [vmem:[#allocation27_spill] sm:$0xff] %v6155_v38 }
 0x2d5   : > { %1865 = vmatmul.f32.vlgmr.msrb.gmra.mxu0 %v6012_v52  ;;  %8212 = vst [vmem:[#allocation29_spill] sm:$0xff] %v6161_v49 }
 0x2d6   : > { %v1305_v33 = vpop.f32.mrf.mxu2  ;;  %4059 = vmatpush.msk.msrb.mxu0 %vm617_vm0, %v5918_v13 }
 0x2d7   : > { %v1838_v58 = vperm.slane %v1305_v33, 0  ;;  %v1325_v50 = vpop.f32.mrf.mxu3  ;;  %v537_v33 = vld [vmem:[%s7961_s5 + $0x60] sm:$0xff] }
 0x2d8   : > { %v1839_v26 = vperm.slane %v1325_v50, 0  ;;  %2240 = vmatpush.msrb.mxu0 %v5931_v35  ;;  %v534_v50 = vld [vmem:[%s7961_s5 + $0x48] sm:$0xff]  ;;  %1933 = vmatpush.msra.mxu3 %v537_v33  ;;  %v528_v33 = vld [vmem:[%s7961_s5 + $0x18] sm:$0xff] }
 0x2d9   : > { %v6039_v12 = vmul.f32 %v4150_v47, %v1838_v58  ;;  %v545_v58 = vld [vmem:[%s7961_s5 + $0xa0] sm:$0x1]  ;;  %v542_v47 = vld [vmem:[%s7961_s5 + $0x88] sm:$0xff] }
 0x2da   : > { %v6041_v57 = vmul.f32 %v4152_v29, %v1839_v26  ;;  %2241 = vmatpush.msrb.mxu0 %v5943_v9  ;;  %4055 = vmatpush.msk.msrb.mxu2 %vm711_vm2, %v545_v58  ;;  %v531_v26 = vld [vmem:[%s7961_s5 + $0x30] sm:$0xff]  ;;  %v536_v58 = vld [vmem:[%s7961_s5 + $0x58] sm:$0xff] }
 0x2db   : > { %1885 = vmatmul.f32.vlgmr.msrb.gmra.mxu1 %v6039_v12  ;;  %1934 = vmatpush.msra.mxu3 %v534_v50  ;;  %v539_v29 = vld [vmem:[%s7961_s5 + $0x70] sm:$0xff]  ;;  %v525_v50 = vld [vmem:[%s7961_s5] sm:$0xff] }
 0x2dc   : > { %4050 = vmatmul.msk.f32.vlgmr.msra.gmra.mxu2 %vm640_vm12, %v6041_v57  ;;  %2209 = vmatpush.msrb.mxu1 %v6055_v30 }
 0x2dd   : > { %2242 = vmatpush.msrb.mxu0 %v5955_v24  ;;  %1972 = vmatpush.msrb.mxu2 %v542_v47  ;;  %v544_v47 = vld [vmem:[%s7961_s5 + $0x98] sm:$0x1] }
 0x2de   : > { %2210 = vmatpush.msrb.mxu1 %v6067_v44  ;;  %1935 = vmatpush.msra.mxu3 %v531_v26  ;;  %v533_v26 = vld [vmem:[%s7961_s5 + $0x40] sm:$0xff] }
 0x2df   : > { %2243 = vmatpush.msrb.mxu0 %v5967_v60  ;;  %1973 = vmatpush.msrb.mxu2 %v539_v29  ;;  %v541_v29 = vld [vmem:[%s7961_s5 + $0x80] sm:$0xff] }
 0x2e0   : > { %2211 = vmatpush.msrb.mxu1 %v6075_v11  ;;  %1936 = vmatpush.msra.mxu3 %v528_v33  ;;  %v530_v33 = vld [vmem:[%s7961_s5 + $0x28] sm:$0xff] }
 0x2e1   : > { %2244 = vmatpush.msrb.mxu0 %v5979_v41  ;;  %1974 = vmatpush.msrb.mxu2 %v536_v58  ;;  %v527_v58 = vld [vmem:[%s7961_s5 + $0x10] sm:$0xff] }
 0x2e2   : > { %2212 = vmatpush.msrb.mxu1 %v6082_v14  ;;  %1937 = vmatpush.msra.mxu3 %v525_v50  ;;  %v535_v50 = vld [vmem:[%s7961_s5 + $0x50] sm:$0xff] }
 0x2e3   : > { %2245 = vmatpush.msrb.mxu0 %v5991_v22  ;;  %1975 = vmatpush.msrb.mxu2 %v533_v26  ;;  %v529_v26 = vld [vmem:[%s7961_s5 + $0x20] sm:$0xff] }
 0x2e4   : > { %2213 = vmatpush.msrb.mxu1 %v6089_v54  ;;  %4053 = vmatpush.msk.msrb.mxu3 %vm711_vm2, %v544_v47  ;;  %v532_v47 = vld [vmem:[%s7961_s5 + $0x38] sm:$0xff] }
 0x2e5   : > { %2246 = vmatpush.msrb.mxu0 %v6003_v19  ;;  %1976 = vmatpush.msrb.mxu2 %v530_v33 }
 0x2e6   : > { %2214 = vmatpush.msrb.mxu1 %v6096_v48  ;;  %1952 = vmatpush.msrb.mxu3 %v541_v29  ;;  %v526_v29 = vld [vmem:[%s7961_s5 + $0x8] sm:$0xff] }
 0x2e7   : > { %2247 = vmatpush.msrb.mxu0 %v6017_v51  ;;  %1977 = vmatpush.msrb.mxu2 %v527_v58 }
 0x2e8   : > { %2215 = vmatpush.msrb.mxu1 %v6103_v32  ;;  %1953 = vmatpush.msrb.mxu3 %v538_v7 }
 0x2e9   : > { %2186 = vmatpush.msra.mxu2 %v5895_v40 }
 0x2ea   : > { %2216 = vmatpush.msrb.mxu1 %v6110_v46  ;;  %1954 = vmatpush.msrb.mxu3 %v535_v50 }
 0x2eb   : > { %2187 = vmatpush.msra.mxu2 %v5904_v2 }
 0x2ec   : > { %2217 = vmatpush.msrb.mxu1 %v6117_v62  ;;  %1955 = vmatpush.msrb.mxu3 %v532_v47 }
 0x2ed   : > { %2188 = vmatpush.msra.mxu2 %v5912_v17 }
 0x2ee   : > { %2218 = vmatpush.msrb.mxu1 %v6124_v42  ;;  %1956 = vmatpush.msrb.mxu3 %v529_v26 }
 0x2ef   : > { %2189 = vmatpush.msra.mxu2 %v5925_v4 }
 0x2f0   : > { %2219 = vmatpush.msrb.mxu1 %v6131_v63  ;;  %1957 = vmatpush.msrb.mxu3 %v526_v29 }
 0x2f1   : > { %2190 = vmatpush.msra.mxu2 %v5937_v37 }
 0x2f2   : > { %2220 = vmatpush.msrb.mxu1 %v6137_v20 }
 0x2f3   : > { %2191 = vmatpush.msra.mxu2 %v5949_v5 }
 0x2f4   : > { %2221 = vmatpush.msrb.mxu1 %v6143_v61 }
 0x2f5   : > { %2192 = vmatpush.msra.mxu2 %v5961_v6 }
 0x2f6   : > { %2222 = vmatpush.msrb.mxu1 %v6149_v1 }
 0x2f7   : > { %2193 = vmatpush.msra.mxu2 %v5973_v39 }
 0x2f8   : > { %2223 = vmatpush.msrb.mxu1 %v6155_v38 }
 0x2f9   : > { %2194 = vmatpush.msra.mxu2 %v5985_v10 }
 0x2fa   : > { %2224 = vmatpush.msrb.mxu1 %v6161_v49 }
 0x2fb   : > { %2195 = vmatpush.msra.mxu2 %v5997_v45 }
 0x2fd   : > { %2196 = vmatpush.msra.mxu2 %v6009_v43  ;;  %v6402_v43 = vld [vmem:[%s4747_s30 + $0x40] sm:$0xff] }
 0x2fe   : > { %8229 = vst [vmem:[#allocation42_spill] sm:$0xff] %v6402_v43 }
 0x2ff   : > { %2197 = vmatpush.msra.mxu2 %v6023_v34 }
 0x301   : > { %2198 = vmatpush.msra.mxu2 %v6030_v16 }
 0x303   : > { %2199 = vmatpush.msra.mxu2 %v6036_v15 }
 0x305   : > { %2200 = vmatpush.msra.mxu2 %v6046_v21 }
 0x307   : > { %2201 = vmatpush.msra.mxu2 %v6061_v55 }
 0x352   : > { %v1866_v33 = vpop.f32.mrf.mxu0 }
 0x358   : > { %v1886_v7 = vpop.f32.mrf.mxu1 }
 0x359   : > { %v1887_v58 = vadd.f32 %v1886_v7, %v1866_v33  ;;  %v1993_v33 = vld.sshfl [vmem:[#allocation1] sm:$0xff pattern:$0x75316420] }
 0x35f   : > { %v1906_v50 = vpop.f32.mrf.mxu2 }
 0x360   : > { %v1907_v47 = vadd.f32 %v1906_v50, %v1887_v58 }
 0x362   : > { %4052 = vmatmul.msk.f32.vlgmr.msra.gmra.mxu3 %vm1909_vm15, %v1907_v47  ;;  %4056 = vmatmul.msk.f32.vlgmr.msrb.gmra.mxu2 %vm1909_vm15, %v1907_v47 }
 0x363   : > { %2049 = vmatpush.msra.mxu3 %v6055_v30  ;;  %4065 = vmatpush.msk.msrb.mxu2 %vm617_vm0, %v5616_v53  ;;  %v6267_v53 = vld [vmem:[%s7963_s7 + $0x60] sm:$0xf] }
 0x365   : > { %2050 = vmatpush.msra.mxu3 %v6067_v44  ;;  %2299 = vmatpush.msrb.mxu2 %v5624_v36  ;;  %v6274_v36 = vld [vmem:[%s7963_s7 + $0x48] sm:$0xff] }
 0x367   : > { %2051 = vmatpush.msra.mxu3 %v6075_v11  ;;  %2300 = vmatpush.msrb.mxu2 %v5630_v56  ;;  %v6280_v56 = vld [vmem:[%s7963_s7 + $0x30] sm:$0xff] }
 0x369   : > { %2052 = vmatpush.msra.mxu3 %v6082_v14  ;;  %2301 = vmatpush.msrb.mxu2 %v5636_v18  ;;  %v6286_v18 = vld [vmem:[%s7963_s7 + $0x18] sm:$0xff] }
 0x36a   : > { %4054 = vmatmul.msk.f32.vlgmr.msrb.gmra.mxu3 %vm1909_vm15, %v1907_v47  ;;  %v1995_v47 = vld.sshfl [vmem:[#allocation1 + $0x10] sm:$0xff pattern:$0x75316420] }
 0x36b   : > { %2053 = vmatpush.msra.mxu3 %v6089_v54  ;;  %2302 = vmatpush.msrb.mxu2 %v5643_v23  ;;  %v6292_v23 = vld [vmem:[%s7963_s7] sm:$0xff] }
 0x36d   : > { %2054 = vmatpush.msra.mxu3 %v6096_v48 }
 0x36f   : > { %2055 = vmatpush.msra.mxu3 %v6103_v32 }
 0x371   : > { %2056 = vmatpush.msra.mxu3 %v6110_v46 }
 0x373   : > { %2057 = vmatpush.msra.mxu3 %v6117_v62 }
 0x375   : > { %2058 = vmatpush.msra.mxu3 %v6124_v42 }
 0x377   : > { %2059 = vmatpush.msra.mxu3 %v6131_v63 }
 0x379   : > { %2060 = vmatpush.msra.mxu3 %v6137_v20  ;;  %v6379_v20 = vld [vmem:[%s4747_s30 + $0x98] sm:$0xff] }
 0x37a   : > { %8227 = vst [vmem:[#allocation40_spill] sm:$0xff] %v6379_v20 }
 0x37b   : > { %2061 = vmatpush.msra.mxu3 %v6143_v61 }
 0x37d   : > { %2062 = vmatpush.msra.mxu3 %v6149_v1 }
 0x37f   : > { %2063 = vmatpush.msra.mxu3 %v6155_v38 }
 0x381   : > { %2064 = vmatpush.msra.mxu3 %v6161_v49 }
 0x383   : > { %4062 = vmatpush.msk.msrb.mxu3 %vm617_vm0, %v6267_v53 }
 0x385   : > { %2276 = vmatpush.msrb.mxu3 %v6274_v36 }
 0x387   : > { %2277 = vmatpush.msrb.mxu3 %v6280_v56 }
 0x389   : > { %2278 = vmatpush.msrb.mxu3 %v6286_v18 }
 0x38b   : > { %2279 = vmatpush.msrb.mxu3 %v6292_v23 }
 0x3e5   : > { %v1939_v26 = vpop.f32.mrf.mxu3  ;;  %v1979_v29 = vpop.f32.mrf.mxu2 }
 0x3e6   : > { %4153 = vrcp.f32 %v1939_v26 }
 0x3e7   : > { %4155 = vrcp.f32 %v1979_v29  ;;  %v1994_v29 = vld.sshfl [vmem:[#allocation1 + $0x8] sm:$0xff pattern:$0x75316420] }
 0x3ec   : > { %v4154_v7 = vpop.eup %4153 }
 0x3ed   : > { %v4156_v58 = vpop.eup %4155  ;;  %v1985_v50 = vmul.f32 %v4154_v7, %v6012_v52  ;;  %v1959_v59 = vpop.f32.mrf.mxu3 }
 0x3ee   : > { %v1987_v25 = vmul.f32 %v4156_v58, %v6041_v57  ;;  %4157 = vrcp.f32 %v1959_v59 }
 0x3ef   : > { %v1999_v31 = vmul.f32 %v1993_v33, %v1985_v50 }
 0x3f0   : > { %v2001_v27 = vmul.f32 %v1995_v47, %v1987_v25 }
 0x3f1   : > { %v2002_v0 = vmax.f32 %v1999_v31, 0.01 }
 0x3f2   : > { %v2004_v3 = vmax.f32 %v2001_v27, 0.01 }
 0x3f3   : > { %v2005_v8 = vsel %vm617_vm0, %v2002_v0, 0.0 }
 0x3f4   : > { %v4158_v28 = vpop.eup %4157  ;;  %v2019_v26 = vsel %vm8213_vm6, %v2004_v3, 0.0  ;;  %v2006_v49 = vrot.slane %v2005_v8, 4  ;;  %v2094_v58 = vrot.slane %v2004_v3, 6  ;;  %vm8252_vm6 = vmmov %vm8250_vm11 }
 0x3f5   : > { %v2020_v55 = vrot.slane %v2019_v26, 4  ;;  %v1986_v38 = vmul.f32 %v4158_v28, %v6039_v12 }
 0x3f6   : > { %v2007_v52 = vadd.f32 %v2006_v49, %v2005_v8 }
 0x3f7   : > { %v2021_v7 = vadd.f32 %v2020_v55, %v2019_v26  ;;  %v2000_v21 = vmul.f32 %v1994_v29, %v1986_v38 }
 0x3f8   : > { %v2008_v1 = vrot.slane %v2007_v52, 2 }
 0x3f9   : > { %v2022_v57 = vrot.slane %v2021_v7, 2  ;;  %v2003_v59 = vmax.f32 %v2000_v21, 0.01 }
 0x3fa   : > { %v2009_v33 = vadd.f32 %v2008_v1, %v2007_v52 }
 0x3fb   : > { %v2012_v31 = vsel %vm617_vm0, %v2003_v59, 0.0  ;;  %v2093_v27 = vrot.slane %v2003_v59, 7  ;;  %v2023_v25 = vadd.f32 %v2022_v57, %v2021_v7 }
 0x3fc   : > { %v2013_v50 = vrot.slane %v2012_v31, 4  ;;  %v2010_v47 = vrot.slane %v2009_v33, 1 }
 0x3fd   : > { %v2095_v15 = vsel %vm711_vm2, %v2002_v0, %v2093_v27  ;;  %v2097_v61 = vsel %vm717_vm1, %v2002_v0, %v2093_v27  ;;  %v2100_v28 = vsel %vm713_vm3, %v2002_v0, %v2093_v27  ;;  %v2103_v8 = vsel %vm719_vm5, %v2002_v0, %v2093_v27  ;;  %v6327_v27 = vld [vmem:[%s4747_s30] sm:$0xff] }
 0x3fe   : > { %v2096_v12 = vsel %vm8214_vm4, %v2095_v15, %v2094_v58  ;;  %v2098_v21 = vsel %vm8215_vm8, %v2097_v61, %v2094_v58  ;;  %v2101_v55 = vsel %vm8216_vm13, %v2100_v28, %v2094_v58  ;;  %v2011_v1 = vadd.f32 %v2010_v47, %v2009_v33  ;;  %v6322_v33 = vld [vmem:[%s7963_s7 + $0x70] sm:$0xf]  ;;  %8220 = vst [vmem:[#allocation36_spill] sm:$0xff] %v6327_v27  ;;  %vm8253_vm4 = vmmov %vm8252_vm6 }
 0x3ff   : > { %v2099_v38 = vrot.slane %v2098_v21, 1  ;;  %v2102_v3 = vrot.slane %v2101_v55, 2  ;;  %v6308_v49 = vperm.slane %v2096_v12, 2  ;;  %v2024_v26 = vrot.slane %v2023_v25, 1  ;;  %v6339_v28 = vld [vmem:[%s4747_s30 + $0x30] sm:$0xff]  ;;  %vm8254_vm8 = vmmov %vm8253_vm4 }
 0x400   : > { %2045 = vmatmul.f32.vlgmr.msra.gmra.mxu0 %v2011_v1  ;;  %v2014_v29 = vadd.f32 %v2013_v50, %v2012_v31  ;;  %v2104_v52 = vsel %vm733_vm10, %v2103_v8, %v2094_v58  ;;  %v6311_v7 = vperm.slane %v2096_v12, 0  ;;  %v6313_v0 = vperm.slane %v2096_v12, 1  ;;  %8221 = vst [vmem:[#allocation37_spill] sm:$0xff] %v6339_v28  ;;  %v6344_v12 = vld [vmem:[%s4747_s30 + $0x60] sm:$0xff]  ;;  %v6353_v1 = vld [vmem:[%s7963_s7 + $0x58] sm:$0xff]  ;;  %vm8255_vm13 = vmmov %vm8253_vm4 }
 0x401   : > { %v2025_v15 = vadd.f32 %v2024_v26, %v2023_v25  ;;  %v2105_v61 = vrot.slane %v2104_v52, 3  ;;  %v6315_v57 = vperm.slane %v2099_v38, 0  ;;  %v6317_v59 = vperm.slane %v2102_v3, 0  ;;  %4068 = vmatpush.msk.msra.mxu0 %vm617_vm0, %v6322_v33  ;;  %8222 = vst [vmem:[#allocation5_spill] sm:$0xff] %v6344_v12  ;;  %v6357_v52 = vld [vmem:[%s4747_s30 + $0x8] sm:$0xff] }
 0x402   : > { %8217 = vst [vmem:[#allocation34_spill] sm:$0xff] %v6311_v7  ;;  %v2015_v31 = vrot.slane %v2014_v29, 2  ;;  %v2130_v25 = vmul.f32 %v6327_v27, %v6311_v7  ;;  %v6331_v58 = vperm.slane %v2099_v38, 1  ;;  %v6333_v50 = vperm.slane %v2102_v3, 1  ;;  %v6367_v27 = vld [vmem:[%s4747_s30 + $0x68] sm:$0xff] }
 0x403   : > { %8218 = vst [vmem:[#allocation35_spill] sm:$0xff] %v6315_v57  ;;  %4058 = vmatmul.msk.f32.vlgmr.msra.gmra.mxu1 %vm640_vm12, %v2025_v15  ;;  %v6336_v47 = vperm.slane %v2105_v61, 0  ;;  %v2136_v8 = vmul.f32 %v6339_v28, %v6315_v57  ;;  %v2142_v21 = vmul.f32 %v6344_v12, %v6317_v59  ;;  %v6348_v55 = vperm.slane %v2105_v61, 1  ;;  %2322 = vmatpush.msra.mxu0 %v6353_v1  ;;  %v6362_v28 = vld [vmem:[%s4747_s30 + $0x38] sm:$0xff] }
 0x404   : > { %8219 = vst [vmem:[#allocation33_spill] sm:$0xff] %v6317_v59  ;;  %v2016_v26 = vadd.f32 %v2015_v31, %v2014_v29  ;;  %v2131_v15 = vmul.f32 %v6357_v52, %v6313_v0  ;;  %v2137_v12 = vmul.f32 %v6362_v28, %v6331_v58  ;;  %v2143_v16 = vmul.f32 %v6367_v27, %v6333_v50  ;;  %v6374_v29 = vld [vmem:[%s4747_s30 + $0x90] sm:$0xff] }
 0x405   : > { %8223 = vst [vmem:[#allocation9_spill] sm:$0xff] %v6357_v52  ;;  %4071 = vmatpush.msk.msra.mxu1 %vm617_vm0, %v5918_v13  ;;  %v2148_v31 = vmul.f32 %v6374_v29, %v6336_v47  ;;  %v2154_v52 = vadd.f32 %v2136_v8, %v2130_v25  ;;  %v6383_v34 = vperm.slane %v2099_v38, 2  ;;  %v6393_v25 = vperm.slane %v2105_v61, 2  ;;  %v6397_v38 = vld [vmem:[%s4747_s30 + $0x10] sm:$0xff] }
 0x406   : > { %8224 = vst [vmem:[#allocation6_spill] sm:$0xff] %v6362_v28  ;;  %v2149_v28 = vmul.f32 %v6379_v20, %v6348_v55  ;;  %v2017_v13 = vrot.slane %v2016_v26, 1  ;;  %v2157_v63 = vadd.f32 %v2137_v12, %v2131_v15  ;;  %v2132_v20 = vmul.f32 %v6397_v38, %v6308_v49  ;;  %v6407_v12 = vld [vmem:[%s4747_s30 + $0x18] sm:$0xff] }
 0x407   : > { %8225 = vst [vmem:[#allocation38_spill] sm:$0xff] %v6367_v27  ;;  %v6388_v27 = vld [vmem:[%s7963_s7 + $0x40] sm:$0xff]  ;;  %2491 = vmatpush.msra.mxu1 %v5931_v35  ;;  %v2155_v8 = vadd.f32 %v2154_v52, %v2142_v21  ;;  %v2138_v42 = vmul.f32 %v6402_v43, %v6383_v34  ;;  %v6414_v35 = vld [vmem:[%s7963_s7 + $0x28] sm:$0xff]  ;;  %v6418_v52 = vld [vmem:[%s4747_s30 + $0x70] sm:$0xff] }
 0x408   : > { %8226 = vst [vmem:[#allocation39_spill] sm:$0xff] %v6374_v29  ;;  %2323 = vmatpush.msra.mxu0 %v6388_v27  ;;  %v6391_v29 = vperm.slane %v2102_v3, 2  ;;  %v2133_v3 = vmul.f32 %v6407_v12, %v6311_v7  ;;  %v2018_v61 = vadd.f32 %v2017_v13, %v2016_v26  ;;  %v2158_v21 = vadd.f32 %v2157_v63, %v2143_v16  ;;  %v6423_v43 = vld [vmem:[%s4747_s30 + $0xa0] sm:$0xff]  ;;  %v6431_v26 = vld [vmem:[%s4747_s30 + $0x48] sm:$0xff]  ;;  %v6438_v63 = vld [vmem:[%s7963_s7 + $0x10] sm:$0xff] }
 0x409   : > { %8228 = vst [vmem:[#allocation41_spill] sm:$0xff] %v6397_v38  ;;  %2492 = vmatpush.msra.mxu1 %v5943_v9  ;;  %v2156_v7 = vadd.f32 %v2155_v8, %v2148_v31  ;;  %v2160_v38 = vsel %vm640_vm12, %v2132_v20, 0.0  ;;  %v2139_v16 = vmul.f32 %v6431_v26, %v6315_v57  ;;  %v6444_v31 = vld [vmem:[%s4747_s30 + $0x78] sm:$0xff] }
 0x40a   : > { %8230 = vst [vmem:[#allocation43_spill] sm:$0xff] %v6407_v12  ;;  %2324 = vmatpush.msra.mxu0 %v6414_v35  ;;  %v2144_v15 = vmul.f32 %v6418_v52, %v6391_v29  ;;  %v2150_v12 = vmul.f32 %v6423_v43, %v6393_v25  ;;  %2065 = vmatmul.f32.vlgmr.msra.gmra.mxu3 %v2018_v61  ;;  %v6450_v61 = vld [vmem:[%s4747_s30 + $0x20] sm:$0xff] }
 0x40b   : > { %8231 = vst [vmem:[#allocation44_spill] sm:$0xff] %v6414_v35  ;;  %v2161_v35 = vsel %vm640_vm12, %v2138_v42, 0.0  ;;  %v2159_v9 = vadd.f32 %v2158_v21, %v2149_v28  ;;  %2493 = vmatpush.msra.mxu1 %v5955_v24  ;;  %2202 = vmatmul.f32.vlgmr.msra.gmra.mxu2 %v2156_v7  ;;  %v2145_v13 = vmul.f32 %v6444_v31, %v6317_v59  ;;  %v6455_v7 = vld [vmem:[%s4747_s30 + $0x50] sm:$0xff]  ;;  %v6460_v21 = vld [vmem:[%s4747_s30 + $0x28] sm:$0xff] }
 0x40c   : > { %8232 = vst [vmem:[#allocation45_spill] sm:$0xff] %v6431_v26  ;;  %2325 = vmatpush.msra.mxu0 %v6438_v63  ;;  %v2162_v20 = vadd.f32 %v2161_v35, %v2160_v38  ;;  %v2163_v42 = vsel %vm640_vm12, %v2144_v15, 0.0  ;;  %v2167_v8 = vadd.f32 %v2139_v16, %v2133_v3  ;;  %v2165_v28 = vsel %vm640_vm12, %v2150_v12, 0.0  ;;  %v6465_v15 = vld [vmem:[%s4747_s30 + $0x58] sm:$0xff]  ;;  %v6470_v16 = vld [vmem:[%s4747_s30 + $0x88] sm:$0xff]  ;;  %2437 = vmatpush.msra.mxu3 %v5895_v40 }
 0x40d   : > { %8233 = vst [vmem:[#allocation46_spill] sm:$0xff] %v6444_v31  ;;  %2225 = vmatmul.f32.vlgmr.msrb.gmra.mxu1 %v2159_v9  ;;  %v2134_v24 = vmul.f32 %v6450_v61, %v6313_v0  ;;  %v2140_v38 = vmul.f32 %v6455_v7, %v6331_v58  ;;  %v2135_v3 = vmul.f32 %v6460_v21, %v6308_v49  ;;  %v6483_v31 = vld [vmem:[%s4747_s30 + $0xa8] sm:$0xff] }
 0x40e   : > { %v2164_v26 = vadd.f32 %v2163_v42, %v2162_v20  ;;  %v2168_v35 = vadd.f32 %v2167_v8, %v2145_v13  ;;  %v2141_v12 = vmul.f32 %v6465_v15, %v6383_v34  ;;  %v2147_v9 = vmul.f32 %v6470_v16, %v6391_v29  ;;  %v6476_v42 = vld [vmem:[%s4747_s30 + $0x80] sm:$0xff]  ;;  %2460 = vmatpush.msra.mxu2 %v6055_v30 }
 0x40f   : > { %v2146_v13 = vmul.f32 %v6476_v42, %v6333_v50  ;;  %v2170_v8 = vadd.f32 %v2140_v38, %v2134_v24  ;;  %2494 = vmatpush.msra.mxu1 %v5967_v60  ;;  %v2151_v59 = vmul.f32 %v6483_v31, %v6336_v47  ;;  %v2173_v57 = vsel %vm640_vm12, %v2135_v3, 0.0  ;;  %2438 = vmatpush.msra.mxu3 %v5904_v2  ;;  %v6498_v38 = vld [vmem:[%s4747_s30 + $0xb8] sm:$0xff] }
 0x410   : > { %v2166_v20 = vadd.f32 %v2165_v28, %v2164_v26  ;;  %v2174_v40 = vsel %vm640_vm12, %v2141_v12, 0.0  ;;  %v6492_v26 = vld [vmem:[%s4747_s30 + $0xb0] sm:$0xff]  ;;  %2461 = vmatpush.msra.mxu2 %v6067_v44  ;;  %v2153_v3 = vmul.f32 %v6498_v38, %v6393_v25  ;;  %v2176_v12 = vsel %vm640_vm12, %v2147_v9, 0.0 }
 0x411   : > { %v2152_v30 = vmul.f32 %v6492_v26, %v6348_v55  ;;  %v2171_v28 = vadd.f32 %v2170_v8, %v2146_v13  ;;  %v2175_v60 = vadd.f32 %v2174_v40, %v2173_v57  ;;  %v2169_v24 = vadd.f32 %v2168_v35, %v2151_v59  ;;  %2439 = vmatpush.msra.mxu3 %v5912_v17 }
 0x412   : > { %4060 = vmatmul.msk.f32.vlgmr.msrb.gmra.mxu0 %vm640_vm12, %v2166_v20  ;;  %2495 = vmatpush.msra.mxu1 %v5979_v41  ;;  %v2178_v44 = vsel %vm640_vm12, %v2153_v3, 0.0  ;;  %v8239_v41 = vld [vmem:[#allocation26_spill] sm:$0xff] }
 0x413   : > { %v2172_v2 = vadd.f32 %v2171_v28, %v2152_v30  ;;  %v2177_v20 = vadd.f32 %v2176_v12, %v2175_v60  ;;  %2462 = vmatpush.msra.mxu2 %v6075_v11  ;;  %4075 = vmatpush.msk.msrb.mxu0 %vm617_vm0, %v6267_v53  ;;  %v8245_v11 = vld [vmem:[#allocation27_spill] sm:$0xff] }
 0x414   : > { %2205 = vmatmul.f32.gmra.mxu2 %v2169_v24  ;;  %2440 = vmatpush.msra.mxu3 %v5925_v4  ;;  %v8234_v4 = vld [vmem:[#allocation31_spill] sm:$0xff] }
 0x415   : > { %2228 = vmatmul.f32.gmra.mxu1 %v2172_v2  ;;  %2463 = vmatpush.msra.mxu2 %v6082_v14  ;;  %v2179_v17 = vadd.f32 %v2178_v44, %v2177_v20  ;;  %v8246_v14 = vld [vmem:[#allocation25_spill] sm:$0xff]  ;;  %v4272_v44 = vld [vmem:[%s7960_s4 + $0x78] sm:$0xff] }
 0x416   : > { %2441 = vmatpush.msra.mxu3 %v5937_v37  ;;  %2496 = vmatpush.msra.mxu1 %v5991_v22  ;;  %v8235_v37 = vld [vmem:[#allocation44_spill] sm:$0xff]  ;;  %v8241_v22 = vld [vmem:[#allocation30_spill] sm:$0xff]  ;;  %v4271_v20 = vld [vmem:[%s7963_s7 + $0x68] sm:$0xf] }
 0x417   : > { %2464 = vmatpush.msra.mxu2 %v6089_v54  ;;  %2575 = vmatpush.msrb.mxu0 %v6274_v36  ;;  %v8247_v54 = vld [vmem:[#allocation29_spill] sm:$0xff] }
 0x418   : > { %2442 = vmatpush.msra.mxu3 %v5949_v5  ;;  %2497 = vmatpush.msra.mxu1 %v6003_v19  ;;  %v8236_v5 = vld [vmem:[#allocation20_spill] sm:$0xff] }
 0x419   : > { %2465 = vmatpush.msra.mxu2 %v6096_v48  ;;  %2576 = vmatpush.msrb.mxu0 %v6280_v56  ;;  %v8243_v19 = vld [vmem:[#allocation32_spill] sm:$0xff] }
 0x41a   : > { %4061 = vmatmul.msk.f32.gmra.mxu0 %vm640_vm12, %v2179_v17  ;;  %2443 = vmatpush.msra.mxu3 %v5961_v6  ;;  %v8237_v6 = vld [vmem:[#allocation17_spill] sm:$0xff]  ;;  %v4273_v17 = vld [vmem:[%s7963_s7 + $0x50] sm:$0xff] }
 0x41b   : > { %2498 = vmatpush.msra.mxu1 %v6017_v51  ;;  %2466 = vmatpush.msra.mxu2 %v6103_v32  ;;  %v8244_v51 = vld [vmem:[#allocation28_spill] sm:$0xff] }
 0x41c   : > { %2444 = vmatpush.msra.mxu3 %v5973_v39  ;;  %2577 = vmatpush.msrb.mxu0 %v6286_v18  ;;  %v8238_v39 = vld [vmem:[#allocation24_spill] sm:$0xff] }
 0x41d   : > { %4079 = vmatpush.msk.msrb.mxu1 %vm617_vm0, %v6322_v33  ;;  %2467 = vmatpush.msra.mxu2 %v6110_v46 }
 0x41e   : > { %2445 = vmatpush.msra.mxu3 %v5985_v10  ;;  %2578 = vmatpush.msrb.mxu0 %v6292_v23  ;;  %v8240_v10 = vld [vmem:[#allocation22_spill] sm:$0xff] }
 0x41f   : > { %2615 = vmatpush.msrb.mxu1 %v6353_v1  ;;  %2468 = vmatpush.msra.mxu2 %v6117_v62 }
 0x420   : > { %2446 = vmatpush.msra.mxu3 %v5997_v45  ;;  %v8242_v45 = vld [vmem:[#allocation23_spill] sm:$0xff] }
 0x421   : > { %2616 = vmatpush.msrb.mxu1 %v6388_v27  ;;  %2469 = vmatpush.msra.mxu2 %v8234_v4 }
 0x422   : > { %2447 = vmatpush.msra.mxu3 %v8236_v5  ;;  %v4275_v5 = vld [vmem:[%s7963_s7 + $0x38] sm:$0xff] }
 0x423   : > { %2617 = vmatpush.msrb.mxu1 %v8235_v37  ;;  %2470 = vmatpush.msra.mxu2 %v8237_v6  ;;  %v4278_v6 = vld [vmem:[%s7960_s4 + $0x60] sm:$0xff] }
 0x424   : > { %2448 = vmatpush.msra.mxu3 %v8238_v39  ;;  %v4280_v39 = vld [vmem:[%s7960_s4 + $0x58] sm:$0xff] }
 0x425   : > { %2618 = vmatpush.msrb.mxu1 %v6438_v63  ;;  %2471 = vmatpush.msra.mxu2 %v8239_v41  ;;  %v4282_v41 = vld [vmem:[%s7960_s4 + $0x48] sm:$0xff] }
 0x426   : > { %2449 = vmatpush.msra.mxu3 %v8240_v10  ;;  %v4283_v10 = vld [vmem:[%s7960_s4 + $0x40] sm:$0xff] }
 0x427   : > { %2472 = vmatpush.msra.mxu2 %v8241_v22  ;;  %v8256_v22 = vld [vmem:[#allocation12_spill] sm:$0xff] }
 0x428   : > { %2450 = vmatpush.msra.mxu3 %v8242_v45  ;;  %v8257_v45 = vld [vmem:[#allocation13_spill] sm:$0xff] }
 0x429   : > { %2473 = vmatpush.msra.mxu2 %v8243_v19  ;;  %v8258_v19 = vld [vmem:[#allocation16_spill] sm:$0xff] }
 0x42a   : > { %2451 = vmatpush.msra.mxu3 %v8244_v51  ;;  %v8259_v51 = vld [vmem:[#allocation21_spill] sm:$0xff] }
 0x42b   : > { %2474 = vmatpush.msra.mxu2 %v8245_v11  ;;  %v8260_v11 = vld [vmem:[#allocation14_spill] sm:$0xff] }
 0x42c   : > { %2452 = vmatpush.msra.mxu3 %v8246_v14  ;;  %v8261_v14 = vld [vmem:[#allocation18_spill] sm:$0xff] }
 0x42d   : > { %2475 = vmatpush.msra.mxu2 %v8247_v54  ;;  %v8262_v54 = vld [vmem:[#allocation19_spill] sm:$0xff] }
 0x47d   : > { %v2046_v32 = vpop.f32.mrf.mxu0 }
 0x480   : > { %v2086_v48 = vpop.f32.mrf.mxu1 }
 0x48a   : > { %v2226_v59 = vpop.f32.mrf.mxu1 }
 0x48d   : > { %v2066_v46 = vpop.f32.mrf.mxu3 }
 0x48e   : > { %v2067_v62 = vadd.f32 %v2066_v46, %v2046_v32  ;;  %v2203_v57 = vpop.f32.mrf.mxu2 }
 0x48f   : > { %v2249_v9 = vpop.f32.mrf.mxu0  ;;  %v2227_v13 = vadd.f32 %v2226_v59, %v2203_v57  ;;  %v8265_v59 = vld [vmem:[#allocation42_spill] sm:$0xff] }
 0x490   : > { %v6549_v35 = vadd.f32 %v2086_v48, %v2067_v62  ;;  %v8263_v48 = vld [vmem:[#allocation15_spill] sm:$0xff]  ;;  %v8264_v62 = vld [vmem:[#allocation41_spill] sm:$0xff] }
 0x491   : > { %v2250_v28 = vadd.f32 %v2249_v9, %v2227_v13 }
 0x492   : > { %8248 = vst [vmem:[#allocation31_spill] sm:$0xff] %v6549_v35  ;;  %4159 = vrcp.f32 %v6549_v35  ;;  %v2229_v60 = vpop.f32.mrf.mxu1 }
 0x497   : > { %v2206_v40 = vpop.f32.mrf.mxu2  ;;  %v2252_v12 = vpop.f32.mrf.mxu0 }
 0x498   : > { %v4160_v8 = vpop.eup %4159  ;;  %v2230_v3 = vadd.f32 %v2229_v60, %v2206_v40 }
 0x499   : > { %v6552_v30 = vperm.slane %v4160_v8, 0 }
 0x49a   : > { %v2253_v2 = vadd.f32 %v2252_v12, %v2230_v3 }
 0x49b   : > { %8249 = vst [vmem:[#allocation44_spill] sm:$0xff] %v6552_v30  ;;  %v2256_v24 = vmul.f32 %v6552_v30, %v2250_v28 }
 0x49c   : > { %v2257_v4 = vmul.f32 %v6552_v30, %v2253_v2 }
 0x49d   : > { %4063 = vmatmul.msk.f32.vlgmr.msrb.gmra.mxu3 %vm8250_vm11, %v2256_v24  ;;  %4066 = vmatmul.msk.f32.vlgmr.msrb.gmra.mxu2 %vm8251_vm14, %v2256_v24  ;;  %vm8266_vm11 = vcmask 1042433   ;;  %vm8267_vm14 = vcmask 1041408  }
 0x49e   : > { %4069 = vmatmul.msk.f32.vlgmr.msra.gmra.mxu0 %vm8252_vm6, %v2256_v24  ;;  %4081 = vmatpush.msk.msrb.mxu3 %vm617_vm0, %v6267_v53  ;;  %v4274_v53 = vld [vmem:[%s7960_s4 + $0x70] sm:$0xff]  ;;  %vm8271_vm6 = vcmask 1046534  }
 0x49f   : > { %4077 = vmatpush.msk.msra.mxu0 %vm617_vm0, %v4271_v20  ;;  %3198 = vmatpush.msrb.mxu2 %v4272_v44 }
 0x4a0   : > { %2638 = vmatpush.msrb.mxu3 %v6274_v36  ;;  %v4276_v36 = vld [vmem:[%s7960_s4 + $0x68] sm:$0xff] }
 0x4a1   : > { %2595 = vmatpush.msra.mxu0 %v4273_v17  ;;  %3199 = vmatpush.msrb.mxu2 %v4274_v53 }
 0x4a2   : > { %2639 = vmatpush.msrb.mxu3 %v6280_v56  ;;  %v4277_v56 = vld [vmem:[%s7963_s7 + $0x20] sm:$0xff] }
 0x4a3   : > { %2596 = vmatpush.msra.mxu0 %v4275_v5  ;;  %3200 = vmatpush.msrb.mxu2 %v4276_v36 }
 0x4a4   : > { %2640 = vmatpush.msrb.mxu3 %v6286_v18  ;;  %v4279_v18 = vld [vmem:[%s7963_s7 + $0x8] sm:$0xff] }
 0x4a5   : > { %4064 = vmatmul.msk.f32.gmra.mxu3 %vm8253_vm4, %v2257_v4  ;;  %4067 = vmatmul.msk.f32.gmra.mxu2 %vm8254_vm8, %v2257_v4  ;;  %vm8273_vm4 = vcmask 1043458   ;;  %vm8274_vm8 = vcmask 1045508  }
 0x4a6   : > { %4070 = vmatmul.msk.f32.gmra.mxu0 %vm8255_vm13, %v2257_v4  ;;  %2641 = vmatpush.msrb.mxu3 %v6292_v23  ;;  %v4281_v23 = vld [vmem:[%s7960_s4 + $0x50] sm:$0xff]  ;;  %vm8275_vm13 = vcmask 1046528  }
 0x4a7   : > { %2597 = vmatpush.msra.mxu0 %v4277_v56  ;;  %3201 = vmatpush.msrb.mxu2 %v4278_v6  ;;  %v8268_v56 = vld [vmem:[#allocation9_spill] sm:$0xff] }
 0x4a9   : > { %2598 = vmatpush.msra.mxu0 %v4279_v18  ;;  %3202 = vmatpush.msrb.mxu2 %v4280_v39  ;;  %v8269_v18 = vld [vmem:[#allocation6_spill] sm:$0xff] }
 0x4ab   : > { %3203 = vmatpush.msrb.mxu2 %v4281_v23 }
 0x4ad   : > { %3204 = vmatpush.msrb.mxu2 %v4282_v41 }
 0x4af   : > { %3205 = vmatpush.msrb.mxu2 %v4283_v10 }
 0x4b1   : > { %3206 = vmatpush.msrb.mxu2 %v8256_v22 }
 0x4b3   : > { %3207 = vmatpush.msrb.mxu2 %v8257_v45  ;;  %v8270_v45 = vld [vmem:[#allocation38_spill] sm:$0xff] }
 0x4b5   : > { %3208 = vmatpush.msrb.mxu2 %v8258_v19 }
 0x4b7   : > { %3209 = vmatpush.msrb.mxu2 %v8259_v51 }
 0x4b9   : > { %3210 = vmatpush.msrb.mxu2 %v8260_v11 }
 0x4bb   : > { %3211 = vmatpush.msrb.mxu2 %v8261_v14 }
 0x4bd   : > { %3212 = vmatpush.msrb.mxu2 %v8262_v54 }
 0x4bf   : > { %3213 = vmatpush.msrb.mxu2 %v8263_v48 }
 0x51b   : > { %v2327_v32 = vpop.f32.mrf.mxu0 }
 0x51c   : > { %v2335_v57 = vsub.f32 %v8264_v62, %v2327_v32  ;;  %v2341_v9 = vsub.f32 %v8265_v59, %v2327_v32  ;;  %v2347_v13 = vsub.f32 %v6418_v52, %v2327_v32  ;;  %v2353_v8 = vsub.f32 %v6423_v43, %v2327_v32  ;;  %v8272_v62 = vld [vmem:[#allocation40_spill] sm:$0xff] }
 0x51d   : > { %v2693_v28 = vrot.slane %v2327_v32, 6 }
 0x51e   : > { %v2359_v24 = vmul.f32 %v2335_v57, %v6308_v49  ;;  %v2365_v12 = vmul.f32 %v2341_v9, %v6383_v34  ;;  %v2371_v2 = vmul.f32 %v2347_v13, %v6391_v29  ;;  %v2377_v43 = vmul.f32 %v2353_v8, %v6393_v25 }
 0x520   : > { %v2304_v46 = vpop.f32.mrf.mxu2  ;;  %v6620_v60 = vpop.f32.mrf.mxu3  ;;  %v2383_v53 = vmul.f32 %v2359_v24, %v2335_v57  ;;  %v2389_v4 = vmul.f32 %v2365_v12, %v2341_v9  ;;  %v2395_v5 = vmul.f32 %v2371_v2, %v2347_v13  ;;  %v2401_v36 = vmul.f32 %v2377_v43, %v2353_v8 }
 0x521   : > { %v2692_v40 = vrot.slane %v2304_v46, 7  ;;  %v6633_v6 = vsub.f32 %v8268_v56, %v2304_v46  ;;  %v6636_v39 = vsub.f32 %v8269_v18, %v2304_v46  ;;  %v2346_v19 = vsub.f32 %v8270_v45, %v2304_v46 }
 0x522   : > { %v2411_v54 = vsel %vm640_vm12, %v2383_v53, 0.0  ;;  %v2412_v48 = vsel %vm640_vm12, %v2389_v4, 0.0  ;;  %v2414_v32 = vsel %vm640_vm12, %v2395_v5, 0.0  ;;  %v6653_v57 = vsub.f32 %v8272_v62, %v2304_v46 }
 0x523   : > { %v2698_v3 = vsel %vm717_vm1, %v6620_v60, %v2692_v40  ;;  %v2696_v20 = vsel %vm711_vm2, %v6620_v60, %v2692_v40  ;;  %v2701_v23 = vsel %vm713_vm3, %v6620_v60, %v2692_v40  ;;  %v2704_v41 = vsel %vm719_vm5, %v6620_v60, %v2692_v40 }
 0x524   : > { %v2699_v52 = vsel %vm8266_vm11, %v2698_v3, %v2693_v28  ;;  %v2697_v44 = vsel %vm8267_vm14, %v2696_v20, %v2693_v28  ;;  %v2707_v10 = vsel %vm725_vm7, %v6620_v60, %v2692_v40  ;;  %v2710_v51 = vsel %vm731_vm9, %v6620_v60, %v2692_v40 }
 0x525   : > { %v2700_v17 = vrot.slane %v2699_v52, 1  ;;  %v2743_v22 = vperm.slane %v2697_v44, 1  ;;  %v2713_v11 = vsel %vm8271_vm6, %v6620_v60, %v2692_v40  ;;  %v2702_v59 = vsel %vm8273_vm4, %v2701_v23, %v2693_v28 }
 0x526   : > { %v2705_v9 = vsel %vm733_vm10, %v2704_v41, %v2693_v28  ;;  %v2708_v13 = vsel %vm8274_vm8, %v2707_v10, %v2693_v28  ;;  %v2716_v8 = vsel %vm8275_vm13, %v2692_v40, %v6620_v60  ;;  %vm8276_vm11 = vcmask 1046533  }
 0x527   : > { %v2746_v14 = vperm.slane %v2700_v17, 1  ;;  %v2711_v24 = vsel %vm8276_vm11, %v2710_v51, %v2693_v28  ;;  %vm8277_vm14 = vcmask 1045504   ;;  %v2742_v12 = vperm.slane %v2697_v44, 0 }
 0x528   : > { %v2714_v3 = vsel %vm8277_vm14, %v2693_v28, %v2713_v11  ;;  %v2806_v2 = vrot.slane %v2743_v22, 4  ;;  %v2744_v20 = vperm.slane %v2697_v44, 2  ;;  %v2745_v52 = vperm.slane %v2700_v17, 0  ;;  %v4284_v22 = vld [vmem:[%s5282_s22] sm:$0xff]  ;;  %v4285_v11 = vld [vmem:[%s5282_s22 + $0x8] sm:$0xf] }
 0x529   : > { %v2747_v46 = vperm.slane %v2700_v17, 2  ;;  %v2807_v43 = vrot.slane %v2746_v14, 4  ;;  %v6662_v53 = vrot.slane %v2702_v59, 2  ;;  %v6664_v4 = vrot.slane %v2705_v9, 3 }
 0x52a   : > { %vm8278_vm6 = vcmask 1046529   ;;  %v2822_v40 = vsel %vm617_vm0, %v2742_v12, %v2806_v2  ;;  %v2413_v56 = vadd.f32 %v2412_v48, %v2411_v54  ;;  %v2416_v18 = vsel %vm640_vm12, %v2401_v36, 0.0  ;;  %v4286_v36 = vld [vmem:[%s5282_s22 + $0xc] sm:$0xff]  ;;  %v4287_v48 = vld [vmem:[%s5282_s22 + $0x14] sm:$0xf] }
 0x52b   : > { %v2717_v5 = vsel %vm8278_vm6, %v2693_v28, %v2716_v8  ;;  %v6669_v23 = vrot.slane %v2708_v13, 4  ;;  %v2823_v44 = vsel %vm617_vm0, %v2745_v52, %v2807_v43  ;;  %v2358_v17 = vmul.f32 %v6633_v6, %v6313_v0  ;;  %v6679_v28 = vpop.f32.mrf.mxu0 }
 0x52c   : > { %v6674_v41 = vrot.slane %v2711_v24, 5  ;;  %v6676_v10 = vrot.slane %v2714_v3, 6  ;;  %v2854_v45 = vsub.f32 %v4284_v22, %v2822_v40  ;;  %v6681_v51 = vrot.slane %v2717_v5, 7 }
 0x52d   : > { %v2855_v14 = vsub.f32 %v4285_v11, %v2744_v20  ;;  %v2856_v54 = vsub.f32 %v4286_v36, %v2823_v44  ;;  %v2857_v62 = vsub.f32 %v4287_v48, %v2747_v46  ;;  %v2364_v59 = vmul.f32 %v6636_v39, %v6331_v58 }
 0x52e   : > { %v2370_v9 = vmul.f32 %v2346_v19, %v6333_v50  ;;  %v2749_v13 = vperm.slane %v6662_v53, 1  ;;  %v2752_v8 = vperm.slane %v6664_v4, 1  ;;  %v6693_v24 = vmul.f32 %v6653_v57, %v6348_v55 }
 0x52f   : > { %v2755_v3 = vperm.slane %v6669_v23, 1  ;;  %v6698_v12 = vsub.f32 %v6460_v21, %v6679_v28  ;;  %v6702_v2 = vsub.f32 %v6465_v15, %v6679_v28  ;;  %v2415_v20 = vadd.f32 %v2414_v32, %v2413_v56 }
 0x530   : > { %v2758_v52 = vperm.slane %v6674_v41, 1  ;;  %v2761_v46 = vperm.slane %v6676_v10, 1  ;;  %v2886_v43 = vmul.f32 %v2854_v45, %v2854_v45  ;;  %v2764_v5 = vperm.slane %v6681_v51, 1 }
 0x531   : > { %v2887_v40 = vmul.f32 %v2855_v14, %v2855_v14  ;;  %v2888_v44 = vmul.f32 %v2856_v54, %v2856_v54  ;;  %v2889_v22 = vmul.f32 %v2857_v62, %v2857_v62  ;;  %v6708_v11 = vmul.f32 %v2358_v17, %v6633_v6  ;;  %v6717_v14 = vpop.f32.mrf.mxu2 }
 0x532   : > { %v6711_v21 = vmul.f32 %v2364_v59, %v6636_v39  ;;  %v2808_v36 = vrot.slane %v2749_v13, 4  ;;  %v2809_v15 = vrot.slane %v2752_v8, 4  ;;  %2950 = vst [vmem:[#allocation1] ss:$2 sm:$0xff] %v2886_v43  ;;  %v6713_v32 = vmul.f32 %v2370_v9, %v2346_v19 }
 0x533   : > { %v2748_v56 = vperm.slane %v6662_v53, 0  ;;  %v2750_v45 = vperm.slane %v6662_v53, 2  ;;  %v2810_v48 = vrot.slane %v2755_v3, 4  ;;  %2952 = vst [vmem:[#allocation1 + $0x10] ss:$2 sm:$0xff] %v2887_v40  ;;  %v2751_v54 = vperm.slane %v6664_v4, 0 }
 0x534   : > { %v2753_v6 = vperm.slane %v6664_v4, 2  ;;  %v2811_v17 = vrot.slane %v2758_v52, 4  ;;  %v2812_v39 = vrot.slane %v2761_v46, 4  ;;  %2957 = vst [vmem:[#allocation1 + $0x20] ss:$2 sm:$0xff] %v2888_v44  ;;  %v2754_v62 = vperm.slane %v6669_v23, 0 }
 0x535   : > { %v2756_v19 = vperm.slane %v6669_v23, 2  ;;  %v2757_v59 = vperm.slane %v6674_v41, 0  ;;  %v2813_v9 = vrot.slane %v2764_v5, 4  ;;  %2959 = vst [vmem:[#allocation1 + $0x30] ss:$2 sm:$0xff] %v2889_v22  ;;  %v2760_v53 = vperm.slane %v6676_v10, 0 }
 0x536   : > { %v2824_v13 = vsel %vm617_vm0, %v2748_v56, %v2808_v36  ;;  %v2825_v4 = vsel %vm617_vm0, %v2751_v54, %v2809_v15  ;;  %v2694_v8 = vrot.slane %v6717_v14, 7  ;;  %v2759_v3 = vperm.slane %v6674_v41, 2  ;;  %v4288_v36 = vld [vmem:[%s5282_s22 + $0x18] sm:$0xff]  ;;  %v4289_v15 = vld [vmem:[%s5282_s22 + $0x20] sm:$0xf]  ;;  %v4290_v54 = vld [vmem:[%s5282_s22 + $0x24] sm:$0xff] }
 0x537   : > { %v2763_v52 = vperm.slane %v6681_v51, 0  ;;  %v2826_v23 = vsel %vm617_vm0, %v2754_v62, %v2810_v48  ;;  %v2417_v46 = vadd.f32 %v2416_v18, %v2415_v20  ;;  %v2762_v43 = vperm.slane %v6676_v10, 2  ;;  %v6739_v18 = vpop.f32.mrf.mxu3  ;;  %v4291_v10 = vld [vmem:[%s5282_s22 + $0x2c] sm:$0xf]  ;;  %v4292_v20 = vld [vmem:[%s5282_s22 + $0x30] sm:$0xff] }
 0x538   : > { %v2765_v5 = vperm.slane %v6681_v51, 2  ;;  %v2827_v40 = vsel %vm617_vm0, %v2757_v59, %v2811_v17  ;;  %v2828_v44 = vsel %vm617_vm0, %v2760_v53, %v2812_v39  ;;  %v2858_v41 = vsub.f32 %v4288_v36, %v2824_v13  ;;  %v4293_v62 = vld [vmem:[%s5282_s22 + $0x38] sm:$0xf]  ;;  %v4297_v36 = vld [vmem:[%s5282_s22 + $0x50] sm:$0xf] }
 0x539   : > { %v2829_v22 = vsel %vm617_vm0, %v2763_v52, %v2813_v9  ;;  %v2859_v56 = vsub.f32 %v4289_v15, %v2750_v45  ;;  %v2860_v48 = vsub.f32 %v4290_v54, %v2825_v4  ;;  %4072 = vmatmul.msk.f32.vlgmr.msra.gmra.mxu1 %vm640_vm12, %v2417_v46  ;;  %v2861_v51 = vsub.f32 %v4291_v10, %v2753_v6  ;;  %v4294_v9 = vld [vmem:[%s5282_s22 + $0x3c] sm:$0xff]  ;;  %v4295_v4 = vld [vmem:[%s5282_s22 + $0x44] sm:$0xf]  ;;  %v4298_v54 = vld [vmem:[%s5282_s22 + $0x54] sm:$0xff] }
 0x53a   : > { %v2862_v17 = vsub.f32 %v4292_v20, %v2826_v23  ;;  %v2721_v39 = vsel %vm717_vm1, %v6739_v18, %v2694_v8  ;;  %v2724_v45 = vsel %vm713_vm3, %v6739_v18, %v2694_v8  ;;  %4085 = vmatpush.msk.msra.mxu1 %vm617_vm0, %v6322_v33  ;;  %v2863_v59 = vsub.f32 %v4293_v62, %v2756_v19  ;;  %v4296_v23 = vld [vmem:[%s5282_s22 + $0x48] sm:$0xff]  ;;  %v4299_v33 = vld [vmem:[%s5282_s22 + $0x5c] sm:$0xf] }
 0x53b   : > { %v2864_v53 = vsub.f32 %v4294_v9, %v2827_v40  ;;  %v2695_v6 = vrot.slane %v6679_v28, 6  ;;  %v2719_v13 = vsel %vm711_vm2, %v6739_v18, %v2694_v8  ;;  %v2865_v52 = vsub.f32 %v4295_v4, %v2759_v3 }
 0x53c   : > { %v2866_v46 = vsub.f32 %v4296_v23, %v2828_v44  ;;  %v2867_v15 = vsub.f32 %v4297_v36, %v2762_v43  ;;  %v2868_v10 = vsub.f32 %v4298_v54, %v2829_v22  ;;  %2678 = vmatpush.msra.mxu1 %v6353_v1  ;;  %v2869_v20 = vsub.f32 %v4299_v33, %v2765_v5 }
 0x53d   : > { %vm8279_vm4 = vcmask 1042433   ;;  %vm8280_vm8 = vcmask 1043458   ;;  %v2727_v62 = vsel %vm719_vm5, %v6739_v18, %v2694_v8  ;;  %vm8281_vm13 = vcmask 1041408  }
 0x53e   : > { %v2722_v19 = vsel %vm8279_vm4, %v2721_v39, %v2695_v6  ;;  %v2725_v40 = vsel %vm8280_vm8, %v2724_v45, %v2695_v6  ;;  %v6766_v9 = vsel %vm8281_vm13, %v2719_v13, %v2695_v6  ;;  %v2730_v3 = vsel %vm725_vm7, %v6739_v18, %v2694_v8  ;;  %2679 = vmatpush.msra.mxu1 %v6388_v27 }
 0x53f   : > { %v2733_v43 = vsel %vm731_vm9, %v6739_v18, %v2694_v8  ;;  %vm8282_vm11 = vcmask 1046534   ;;  %v2890_v5 = vmul.f32 %v2858_v41, %v2858_v41  ;;  %v2891_v44 = vmul.f32 %v2859_v56, %v2859_v56 }
 0x540   : > { %v2736_v1 = vsel %vm8282_vm11, %v6739_v18, %v2694_v8  ;;  %v2892_v22 = vmul.f32 %v2860_v48, %v2860_v48  ;;  %vm8283_vm14 = vcmask 1046528   ;;  %v2893_v45 = vmul.f32 %v2861_v51, %v2861_v51  ;;  %2680 = vmatpush.msra.mxu1 %v8235_v37 }
 0x541   : > { %v2739_v39 = vsel %vm8283_vm14, %v2694_v8, %v6739_v18  ;;  %v6777_v13 = vrot.slane %v2722_v19, 1  ;;  %v6779_v4 = vrot.slane %v2725_v40, 2  ;;  %v2728_v23 = vsel %vm733_vm10, %v2727_v62, %v2695_v6 }
 0x542   : > { %vm8285_vm7 = vcmask 1045508   ;;  %vm8286_vm9 = vcmask 1046533   ;;  %vm8287_vm6 = vcmask 1045504   ;;  %v2767_v41 = vperm.slane %v6766_v9, 1  ;;  %2681 = vmatpush.msra.mxu1 %v6438_v63 }
 0x543   : > { %8284 = vst [vmem:[#allocation20_spill] sm:$0xff] %v6779_v4  ;;  %v2731_v36 = vsel %vm8285_vm7, %v2730_v3, %v2695_v6  ;;  %v2734_v54 = vsel %vm8286_vm9, %v2733_v43, %v2695_v6  ;;  %v2737_v27 = vsel %vm8287_vm6, %v2695_v6, %v2736_v1  ;;  %v6787_v56 = vmul.f32 %v2862_v17, %v2862_v17  ;;  %v6817_v3 = vld.sshfl [vmem:[#allocation1] sm:$0xff pattern:$0x75316420] }
 0x544   : > { %v6789_v8 = vmul.f32 %v2863_v59, %v2863_v59  ;;  %v6791_v48 = vmul.f32 %v2864_v53, %v2864_v53  ;;  %vm8288_vm4 = vcmask 1046529   ;;  %v6797_v37 = vsub.f32 %v6470_v16, %v6679_v28 }
 0x545   : > { %v2740_v51 = vsel %vm8288_vm4, %v2695_v6, %v2739_v39  ;;  %v2362_v33 = vmul.f32 %v6698_v12, %v6308_v49  ;;  %v2368_v19 = vmul.f32 %v6702_v2, %v6383_v34  ;;  %v6803_v17 = vrot.slane %v2728_v23, 3  ;;  %v6827_v23 = vld.sshfl [vmem:[#allocation1 + $0x8] sm:$0xff pattern:$0x75316420] }
 0x546   : > { %v6805_v59 = vrot.slane %v2731_v36, 4  ;;  %v6807_v53 = vrot.slane %v2734_v54, 5  ;;  %v6809_v40 = vrot.slane %v2737_v27, 6  ;;  %v2770_v63 = vperm.slane %v6777_v13, 1  ;;  %2963 = vst [vmem:[#allocation1] ss:$2 sm:$0xff] %v2890_v5 }
 0x547   : > { %v6812_v6 = vmul.f32 %v2865_v52, %v2865_v52  ;;  %v6814_v16 = vrot.slane %v2740_v51, 7  ;;  %v2773_v62 = vperm.slane %v6779_v4, 1  ;;  %v2814_v49 = vrot.slane %v2767_v41, 4  ;;  %v6829_v36 = vld.sshfl [vmem:[#allocation1 + $0x10] sm:$0xff pattern:$0x75316420] }
 0x548   : > { %8289 = vst [vmem:[#allocation17_spill] sm:$0xff] %v6807_v53  ;;  %v6819_v34 = vmul.f32 %v2866_v46, %v2866_v46  ;;  %v6821_v43 = vmul.f32 %v2867_v15, %v2867_v15  ;;  %v6823_v1 = vmul.f32 %v2868_v10, %v2868_v10  ;;  %v6825_v39 = vmul.f32 %v2869_v20, %v2869_v20  ;;  %v6845_v10 = vld.sshfl [vmem:[#allocation1 + $0x20] sm:$0xff pattern:$0x75316420]  ;;  %v8294_v5 = vld [vmem:[#allocation37_spill] sm:$0xff] }
 0x549   : > { %8290 = vst [vmem:[#allocation24_spill] sm:$0xff] %v6809_v40  ;;  %v6833_v52 = vsub.f32 %v6498_v38, %v6679_v28  ;;  %v2374_v54 = vmul.f32 %v6797_v37, %v6391_v29  ;;  %v6839_v46 = vsub.f32 %v6450_v61, %v6717_v14  ;;  %v6843_v15 = vsub.f32 %v6455_v7, %v6717_v14  ;;  %v6847_v20 = vld.sshfl [vmem:[#allocation1 + $0x28] sm:$0xff pattern:$0x75316420]  ;;  %v8292_v29 = vld [vmem:[#allocation36_spill] sm:$0xff] }
 0x54a   : > { %8291 = vst [vmem:[#allocation26_spill] sm:$0xff] %v6814_v16  ;;  %v2386_v27 = vmul.f32 %v2362_v33, %v6698_v12  ;;  %v6851_v38 = vmul.f32 %v2368_v19, %v6702_v2  ;;  %v2815_v28 = vrot.slane %v2770_v63, 4  ;;  %v2333_v41 = vsub.f32 %v8292_v29, %v6620_v60  ;;  %v6855_v61 = vld.sshfl [vmem:[#allocation1 + $0x30] sm:$0xff pattern:$0x75316420] }
 0x54b   : > { %v2766_v51 = vperm.slane %v6766_v9, 0  ;;  %v2768_v7 = vperm.slane %v6766_v9, 2  ;;  %v2769_v35 = vperm.slane %v6777_v13, 0  ;;  %v2771_v30 = vperm.slane %v6777_v13, 2  ;;  %2968 = vst [vmem:[#allocation1 + $0x20] ss:$2 sm:$0xff] %v2892_v22 }
 0x54c   : > { %v2772_v12 = vperm.slane %v6779_v4, 0  ;;  %v2776_v33 = vperm.slane %v6803_v17, 1  ;;  %v2816_v19 = vrot.slane %v2773_v62, 4  ;;  %2964 = vst [vmem:[#allocation1 + $0x10] ss:$2 sm:$0xff] %v2891_v44  ;;  %v4300_v13 = vld [vmem:[%s5282_s22 + $0x60] sm:$0xff]  ;;  %v2408_v40 = vadd.f32 %v6711_v21, %v6708_v11 }
 0x54d   : > { %v2830_v29 = vsel %vm617_vm0, %v2766_v51, %v2814_v49  ;;  %2969 = vst [vmem:[#allocation1 + $0x30] ss:$2 sm:$0xff] %v2893_v45  ;;  %v2831_v44 = vsel %vm617_vm0, %v2769_v35, %v2815_v28  ;;  %v4301_v62 = vld [vmem:[%s5282_s22 + $0x68] sm:$0xf]  ;;  %v4302_v28 = vld [vmem:[%s5282_s22 + $0x6c] sm:$0xff]  ;;  %v2339_v45 = vsub.f32 %v8294_v5, %v6620_v60  ;;  %v8300_v5 = vld [vmem:[#allocation35_spill] sm:$0xff]  ;;  %v2398_v4 = vmul.f32 %v2374_v54, %v6797_v37 }
 0x54e   : > { %v6877_v49 = vrot.slane %v2776_v33, 4  ;;  %v6880_v51 = vsel %vm617_vm0, %v2772_v12, %v2816_v19  ;;  %v6883_v22 = vsub.f32 %v4300_v13, %v2830_v29  ;;  %v6886_v35 = vsub.f32 %v4301_v62, %v2768_v7  ;;  %v4303_v63 = vld [vmem:[%s5282_s22 + $0x74] sm:$0xf]  ;;  %v6896_v33 = vld.sshfl [vmem:[#allocation1] sm:$0xff pattern:$0x75316420] }
 0x54f   : > { %8293 = vst [vmem:[#allocation22_spill] sm:$0xff] %v6880_v51  ;;  %v6889_v2 = vsub.f32 %v4302_v28, %v2831_v44  ;;  %v6892_v9 = vsub.f32 %v4303_v63, %v2771_v30  ;;  %v6898_v16 = vld.sshfl [vmem:[#allocation1 + $0x8] sm:$0xff pattern:$0x75316420]  ;;  %v8297_v29 = vld [vmem:[#allocation39_spill] sm:$0xff]  ;;  %v8298_v13 = vld [vmem:[#allocation34_spill] sm:$0xff]  ;;  %v2400_v44 = vmul.f32 %v6693_v24, %v6653_v57  ;;  %v2363_v28 = vmul.f32 %v2339_v45, %v8300_v5 }
 0x550   : > { %8295 = vst [vmem:[#allocation30_spill] sm:$0xff] %v6898_v16  ;;  %v8296_v12 = vld [vmem:[#allocation5_spill] sm:$0xff]  ;;  %v2351_v7 = vsub.f32 %v8297_v29, %v6620_v60  ;;  %v2357_v62 = vmul.f32 %v2333_v41, %v8298_v13  ;;  %vm8306_vm8 = vcmask 551936  }
 0x551   : > { %v2345_v19 = vsub.f32 %v8296_v12, %v6620_v60  ;;  %v2380_v12 = vmul.f32 %v6833_v52, %v6393_v25  ;;  %2973 = vst [vmem:[#allocation1] ss:$2 sm:$0xff] %v6787_v56  ;;  %v8301_v29 = vld [vmem:[#allocation33_spill] sm:$0xff]  ;;  %v2387_v11 = vmul.f32 %v2363_v28, %v2339_v45  ;;  %v2409_v25 = vadd.f32 %v2408_v40, %v6713_v32  ;;  %v8302_v32 = vld [vmem:[#allocation43_spill] sm:$0xff]  ;;  %vm8307_vm13 = vmmov %vm8306_vm8 }
 0x552   : > { %v6907_v30 = vld.sshfl [vmem:[#allocation1 + $0x20] sm:$0xff pattern:$0x75316420]  ;;  %v6909_v63 = vld.sshfl [vmem:[#allocation1 + $0x28] sm:$0xff pattern:$0x75316420]  ;;  %v2375_v24 = vmul.f32 %v2351_v7, %v6336_v47  ;;  %v2381_v53 = vmul.f32 %v2357_v62, %v2333_v41  ;;  %v2336_v40 = vsub.f32 %v8302_v32, %v6739_v18  ;;  %vm8308_vm11 = vmmov %vm8306_vm8 }
 0x553   : > { %8299 = vst [vmem:[#allocation23_spill] sm:$0xff] %v6909_v63  ;;  %v6918_v60 = vld.sshfl [vmem:[#allocation1 + $0x10] sm:$0xff pattern:$0x75316420]  ;;  %v2369_v57 = vmul.f32 %v2345_v19, %v8301_v29  ;;  %v2424_v63 = vsel %vm640_vm12, %v2386_v27, 0.0  ;;  %v2404_v21 = vmul.f32 %v2380_v12, %v6833_v52  ;;  %v2425_v56 = vsel %vm640_vm12, %v6851_v38, 0.0  ;;  %vm8309_vm14 = vmmov %vm8306_vm8 }
 0x554   : > { %2978 = vst [vmem:[#allocation1 + $0x20] ss:$2 sm:$0xff] %v6791_v48  ;;  %v6924_v51 = vld.sshfl [vmem:[#allocation1 + $0x30] sm:$0xff pattern:$0x75316420]  ;;  %v2399_v54 = vmul.f32 %v2375_v24, %v2351_v7  ;;  %v2426_v16 = vadd.f32 %v2425_v56, %v2424_v63  ;;  %v2427_v41 = vsel %vm640_vm12, %v2398_v4, 0.0  ;;  %v2405_v48 = vadd.f32 %v2387_v11, %v2381_v53  ;;  %vm8310_vm7 = vmmov %vm8306_vm8 }
 0x555   : > { %2974 = vst [vmem:[#allocation1 + $0x10] ss:$2 sm:$0xff] %v6789_v8  ;;  %v2393_v37 = vmul.f32 %v2369_v57, %v2345_v19  ;;  %v2410_v27 = vadd.f32 %v2409_v25, %v2400_v44  ;;  %v2429_v45 = vsel %vm640_vm12, %v2404_v21, 0.0  ;;  %v8303_v62 = vld [vmem:[#allocation45_spill] sm:$0xff]  ;;  %v8304_v8 = vld [vmem:[#allocation46_spill] sm:$0xff]  ;;  %v2354_v7 = vsub.f32 %v6483_v31, %v6739_v18  ;;  %v6955_v31 = vld [vmem:[%s7962_s6 + $0x78] sm:$0xff] }
 0x556   : > { %2979 = vst [vmem:[#allocation1 + $0x30] ss:$2 sm:$0xff] %v6812_v6  ;;  %v2428_v52 = vadd.f32 %v2427_v41, %v2426_v16  ;;  %v2342_v38 = vsub.f32 %v8303_v62, %v6739_v18  ;;  %v2348_v19 = vsub.f32 %v8304_v8, %v6739_v18  ;;  %v2360_v53 = vmul.f32 %v2336_v40, %v8298_v13  ;;  %vm8311_vm9 = vmmov %vm8310_vm7 }
 0x557   : > { %v2406_v4 = vadd.f32 %v2405_v48, %v2393_v37  ;;  %2476 = vmatmul.f32.vlgmr.msra.gmra.mxu2 %v2410_v27  ;;  %v2349_v6 = vsub.f32 %v6476_v42, %v6717_v14  ;;  %v2355_v44 = vsub.f32 %v6492_v26, %v6717_v14  ;;  %v2378_v12 = vmul.f32 %v2354_v7, %v6336_v47  ;;  %vm8315_vm6 = vmmov %vm8310_vm7 }
 0x558   : > { %v2430_v16 = vadd.f32 %v2429_v45, %v2428_v52  ;;  %v2366_v63 = vmul.f32 %v2342_v38, %v8300_v5  ;;  %v2372_v28 = vmul.f32 %v2348_v19, %v8301_v29  ;;  %v2975_v57 = vld.sshfl [vmem:[#allocation1] sm:$0xff pattern:$0x75316420]  ;;  %v6950_v24 = vld.sshfl [vmem:[#allocation1 + $0x8] sm:$0xff pattern:$0x75316420]  ;;  %3366 = vmatpush.msra.mxu2 %v6955_v31  ;;  %v2384_v18 = vmul.f32 %v2360_v53, %v2336_v40  ;;  %vm8321_vm4 = vmmov %vm8315_vm6 }
 0x559   : > { %v2407_v42 = vadd.f32 %v2406_v4, %v2399_v54  ;;  %v2361_v26 = vmul.f32 %v6839_v46, %v6313_v0  ;;  %v2367_v14 = vmul.f32 %v6843_v15, %v6331_v58  ;;  %v2402_v11 = vmul.f32 %v2378_v12, %v2354_v7  ;;  %2983 = vst [vmem:[#allocation1] ss:$2 sm:$0xff] %v6819_v34  ;;  %v6987_v34 = vld [vmem:[%s7962_s6 + $0x70] sm:$0xff]  ;;  %v4309_v4 = vld [vmem:[%s7960_s4 + $0xe8] sm:$0xff]  ;;  %v7019_v53 = vld [vmem:[%s7962_s6 + $0x60] sm:$0xff] }
 0x55a   : > { %4073 = vmatmul.msk.f32.gmra.mxu1 %vm640_vm12, %v2430_v16  ;;  %v2390_v5 = vmul.f32 %v2366_v63, %v2342_v38  ;;  %v2396_v29 = vmul.f32 %v2372_v28, %v2348_v19  ;;  %v2373_v25 = vmul.f32 %v2349_v6, %v6333_v50  ;;  %v8305_v56 = vperm.slane %v6805_v59, 1  ;;  %3367 = vmatpush.msra.mxu2 %v6987_v34  ;;  %v4307_v52 = vld [vmem:[%s7960_s4 + $0xf0] sm:$0xff] }
 0x55b   : > { %v2980_v13 = vld.sshfl [vmem:[#allocation1 + $0x20] sm:$0xff pattern:$0x75316420]  ;;  %v6962_v47 = vld.sshfl [vmem:[#allocation1 + $0x28] sm:$0xff pattern:$0x75316420]  ;;  %2453 = vmatmul.f32.vlgmr.msra.gmra.mxu3 %v2407_v42  ;;  %v2379_v0 = vmul.f32 %v2355_v44, %v6348_v55  ;;  %v2385_v58 = vmul.f32 %v2361_v26, %v6839_v46  ;;  %v2391_v54 = vmul.f32 %v2367_v14, %v6843_v15  ;;  %v2902_v63 = vmul.f32 %v6883_v22, %v6883_v22 }
 0x55c   : > { %v2977_v21 = vld.sshfl [vmem:[#allocation1 + $0x10] sm:$0xff pattern:$0x75316420]  ;;  %v6968_v37 = vrot.slane %v8305_v56, 4  ;;  %v2418_v48 = vadd.f32 %v2390_v5, %v2384_v18  ;;  %2988 = vst [vmem:[#allocation1 + $0x20] ss:$2 sm:$0xff] %v6823_v1  ;;  %v2397_v1 = vmul.f32 %v2373_v25, %v2349_v6  ;;  %v2904_v22 = vmul.f32 %v6889_v2, %v6889_v2 }
 0x55d   : > { %v2982_v41 = vld.sshfl [vmem:[#allocation1 + $0x30] sm:$0xff pattern:$0x75316420]  ;;  %v3081_v50 = vsel %vm617_vm0, %v6817_v3, 0.0  ;;  %v3082_v27 = vsel %vm617_vm0, %v6845_v10, 0.0  ;;  %v3084_v45 = vsel %vm617_vm0, %v6896_v33, 0.0  ;;  %v2403_v3 = vmul.f32 %v2379_v0, %v2355_v44 }
 0x55e   : > { %v4305_v55 = vld [vmem:[%s7960_s4 + $0xf8] sm:$0xff]  ;;  %v2421_v46 = vadd.f32 %v2391_v54, %v2385_v58  ;;  %v3083_v15 = vadd.f32 %v3082_v27, %v3081_v50  ;;  %2984 = vst [vmem:[#allocation1 + $0x10] ss:$2 sm:$0xff] %v6821_v43  ;;  %v2419_v10 = vadd.f32 %v2418_v48, %v2396_v29  ;;  %v3086_v33 = vsel %vm617_vm0, %v6907_v30, 0.0  ;;  %v7003_v43 = vld [vmem:[%s7962_s6 + $0x68] sm:$0xff]  ;;  %v4311_v42 = vld [vmem:[%s7960_s4 + $0xe0] sm:$0xff] }
 0x55f   : > { %3218 = vmatpush.msra.mxu3 %v4305_v55  ;;  %v3088_v32 = vsel %vm617_vm0, %v2975_v57, 0.0  ;;  %2989 = vst [vmem:[#allocation1 + $0x30] ss:$2 sm:$0xff] %v6825_v39  ;;  %v3143_v40 = vsel %vm8306_vm8, %v6829_v36, 0.0  ;;  %3368 = vmatpush.msra.mxu2 %v7003_v43  ;;  %v3144_v39 = vsel %vm8307_vm13, %v6855_v61, 0.0  ;;  %v3146_v36 = vsel %vm8308_vm11, %v6918_v60, 0.0  ;;  %vm8325_vm8 = vmmov %vm8321_vm4 }
 0x560   : > { %v2422_v30 = vadd.f32 %v2421_v46, %v2397_v1  ;;  %v3085_v62 = vadd.f32 %v3084_v45, %v3083_v15  ;;  %v2420_v38 = vadd.f32 %v2419_v10, %v2402_v11  ;;  %v3090_v8 = vsel %vm617_vm0, %v2980_v13, 0.0  ;;  %v2985_v28 = vld.sshfl [vmem:[#allocation1] sm:$0xff pattern:$0x75316420]  ;;  %v7036_v18 = vld [vmem:[%s7962_s6 + $0x58] sm:$0xff]  ;;  %v7056_v25 = vld [vmem:[%s7962_s6 + $0x50] sm:$0xff] }
 0x561   : > { %3219 = vmatpush.msra.mxu3 %v4307_v52  ;;  %v3145_v19 = vadd.f32 %v3144_v39, %v3143_v40  ;;  %v3148_v7 = vsel %vm8309_vm14, %v6924_v51, 0.0  ;;  %3369 = vmatpush.msra.mxu2 %v7019_v53  ;;  %v3150_v6 = vsel %vm8310_vm7, %v2977_v21, 0.0  ;;  %v3152_v44 = vsel %vm8311_vm9, %v2982_v41, 0.0  ;;  %v2986_v12 = vld.sshfl [vmem:[#allocation1 + $0x8] sm:$0xff pattern:$0x75316420]  ;;  %vm8326_vm13 = vmmov %vm8321_vm4 }
 0x562   : > { %v2423_v61 = vadd.f32 %v2422_v30, %v2403_v3  ;;  %v3087_v60 = vadd.f32 %v3086_v33, %v3085_v62  ;;  %v8312_v51 = vperm.slane %v6803_v17, 0  ;;  %2993 = vst [vmem:[#allocation1] ss:$2 sm:$0xff] %v2902_v63  ;;  %v3092_v5 = vsel %vm617_vm0, %v2985_v28, 0.0  ;;  %v4313_v2 = vld [vmem:[%s7960_s4 + $0xd8] sm:$0xff]  ;;  %v8314_v41 = vld [vmem:[#allocation22_spill] sm:$0xff]  ;;  %vm8334_vm11 = vmmov %vm8321_vm4 }
 0x563   : > { %3220 = vmatpush.msra.mxu3 %v4309_v4  ;;  %v3147_v57 = vadd.f32 %v3146_v36, %v3145_v19  ;;  %3370 = vmatpush.msra.mxu2 %v7036_v18  ;;  %v2990_v26 = vld.sshfl [vmem:[#allocation1 + $0x20] sm:$0xff pattern:$0x75316420]  ;;  %v7043_v14 = vld.sshfl [vmem:[#allocation1 + $0x28] sm:$0xff pattern:$0x75316420]  ;;  %v2905_v21 = vmul.f32 %v6892_v9, %v6892_v9  ;;  %vm8335_vm14 = vmmov %vm8321_vm4 }
 0x564   : > { %v2833_v16 = vsel %vm617_vm0, %v8312_v51, %v6877_v49  ;;  %v2903_v49 = vmul.f32 %v6886_v35, %v6886_v35  ;;  %2456 = vmatmul.f32.gmra.mxu3 %v2420_v38  ;;  %2479 = vmatmul.f32.gmra.mxu2 %v2423_v61  ;;  %v3089_v13 = vadd.f32 %v3088_v32, %v3087_v60  ;;  %v3112_v11 = vsel %vm617_vm0, %v6827_v23, 0.0  ;;  %v4315_v54 = vld [vmem:[%s5282_s22 + $0x78] sm:$0xff]  ;;  %v4316_v9 = vld [vmem:[%s7960_s4 + $0xd0] sm:$0xff]  ;;  %v7072_v55 = vld [vmem:[%s7962_s6 + $0x48] sm:$0xff] }
 0x565   : > { %3221 = vmatpush.msra.mxu3 %v4311_v42  ;;  %v3149_v29 = vadd.f32 %v3148_v7, %v3147_v57  ;;  %v3113_v35 = vsel %vm617_vm0, %v6847_v20, 0.0  ;;  %3371 = vmatpush.msra.mxu2 %v7056_v25  ;;  %2998 = vst [vmem:[#allocation1 + $0x20] ss:$2 sm:$0xff] %v2904_v22  ;;  %v2987_v56 = vld.sshfl [vmem:[#allocation1 + $0x10] sm:$0xff pattern:$0x75316420]  ;;  %v2874_v48 = vsub.f32 %v4315_v54, %v8314_v41  ;;  %vm8336_vm7 = vmmov %vm8321_vm4 }
 0x566   : > { %v3091_v23 = vadd.f32 %v3090_v8, %v3089_v13  ;;  %v3114_v0 = vadd.f32 %v3113_v35, %v3112_v11  ;;  %v8313_v20 = vld [vmem:[#allocation30_spill] sm:$0xff]  ;;  %v3094_v50 = vsel %vm617_vm0, %v2990_v26, 0.0  ;;  %2994 = vst [vmem:[#allocation1 + $0x10] ss:$2 sm:$0xff] %v2903_v49  ;;  %v3154_v3 = vsel %vm8315_vm6, %v2987_v56, 0.0  ;;  %v8316_v15 = vld [vmem:[#allocation23_spill] sm:$0xff]  ;;  %vm8337_vm9 = vmmov %vm8321_vm4 }
 0x567   : > { %3222 = vmatpush.msra.mxu3 %v4313_v2  ;;  %v3115_v58 = vsel %vm617_vm0, %v8313_v20, 0.0  ;;  %v2992_v27 = vld.sshfl [vmem:[#allocation1 + $0x30] sm:$0xff pattern:$0x75316420]  ;;  %v3151_v45 = vadd.f32 %v3150_v6, %v3149_v29  ;;  %3372 = vmatpush.msra.mxu2 %v7072_v55  ;;  %v3117_v10 = vsel %vm617_vm0, %v8316_v15, 0.0  ;;  %v8317_v33 = vld [vmem:[#allocation17_spill] sm:$0xff]  ;;  %vm8339_vm6 = vmmov %vm8321_vm4 }
 0x568   : > { %v3093_v1 = vadd.f32 %v3092_v5, %v3091_v23  ;;  %2999 = vst [vmem:[#allocation1 + $0x30] ss:$2 sm:$0xff] %v2905_v21  ;;  %v3116_v46 = vadd.f32 %v3115_v58, %v3114_v0  ;;  %v8318_v32 = vperm.slane %v8317_v33, 1  ;;  %v4318_v52 = vld [vmem:[%s5282_s22 + $0x84] sm:$0xff]  ;;  %v3119_v39 = vsel %vm617_vm0, %v6950_v24, 0.0  ;;  %v7108_v42 = vld [vmem:[%s7962_s6 + $0x38] sm:$0xff] }
 0x569   : > { %3223 = vmatpush.msra.mxu3 %v4316_v9  ;;  %v2876_v30 = vsub.f32 %v4318_v52, %v2833_v16  ;;  %v3153_v62 = vadd.f32 %v3152_v44, %v3151_v45  ;;  %v4319_v36 = vld [vmem:[%s7960_s4 + $0xc8] sm:$0xff]  ;;  %v7089_v38 = vld [vmem:[%s7962_s6 + $0x40] sm:$0xff]  ;;  %v3156_v60 = vsel %vm8321_vm4, %v2992_v27, 0.0  ;;  %v8322_v44 = vperm.slane %v6803_v17, 2  ;;  %v4325_v21 = vld [vmem:[%s7960_s4 + $0xb8] sm:$0xff] }
 0x56a   : > { %v2819_v40 = vrot.slane %v8318_v32, 4  ;;  %3373 = vmatpush.msra.mxu2 %v7089_v38  ;;  %v4321_v8 = vld [vmem:[%s5282_s22 + $0x80] sm:$0xf]  ;;  %v3095_v61 = vadd.f32 %v3094_v50, %v3093_v1  ;;  %v3118_v24 = vadd.f32 %v3117_v10, %v3116_v46  ;;  %v4322_v6 = vld [vmem:[%s5282_s22 + $0x8c] sm:$0xf]  ;;  %v3121_v63 = vsel %vm617_vm0, %v6962_v47, 0.0 }
 0x56b   : > { %3224 = vmatpush.msra.mxu3 %v4319_v36  ;;  %v8319_v19 = vld [vmem:[#allocation20_spill] sm:$0xff]  ;;  %v2877_v51 = vsub.f32 %v4322_v6, %v8322_v44  ;;  %v3155_v16 = vadd.f32 %v3154_v3, %v3153_v62  ;;  %v3123_v28 = vsel %vm617_vm0, %v2986_v12, 0.0  ;;  %v8323_v17 = vperm.slane %v6805_v59, 0  ;;  %v2996_v12 = vld.sshfl [vmem:[#allocation1 + $0x8] sm:$0xff pattern:$0x75316420] }
 0x56c   : > { %v8320_v7 = vperm.slane %v8319_v19, 2  ;;  %v4323_v57 = vld [vmem:[%s7960_s4 + $0xc0] sm:$0xff]  ;;  %3374 = vmatpush.msra.mxu2 %v7108_v42  ;;  %v2906_v47 = vmul.f32 %v2874_v48, %v2874_v48  ;;  %v3120_v26 = vadd.f32 %v3119_v39, %v3118_v24  ;;  %v8324_v13 = vperm.slane %v8317_v33, 0  ;;  %v3001_v35 = vld.sshfl [vmem:[#allocation1 + $0x28] sm:$0xff pattern:$0x75316420] }
 0x56d   : > { %3225 = vmatpush.msra.mxu3 %v4323_v57  ;;  %v2834_v49 = vsel %vm617_vm0, %v8323_v17, %v6968_v37  ;;  %v2995_v22 = vld.sshfl [vmem:[#allocation1] sm:$0xff pattern:$0x75316420]  ;;  %v2908_v29 = vmul.f32 %v2876_v30, %v2876_v30  ;;  %v3157_v2 = vadd.f32 %v3156_v60, %v3155_v16  ;;  %v7124_v37 = vld [vmem:[%s7962_s6 + $0x30] sm:$0xff]  ;;  %v2909_v58 = vmul.f32 %v2877_v51, %v2877_v51  ;;  %v7137_v27 = vld [vmem:[%s7962_s6 + $0x28] sm:$0xff] }
 0x56e   : > { %v2875_v4 = vsub.f32 %v4321_v8, %v8320_v7  ;;  %v2835_v5 = vsel %vm617_vm0, %v8324_v13, %v2819_v40  ;;  %v3000_v11 = vld.sshfl [vmem:[#allocation1 + $0x20] sm:$0xff pattern:$0x75316420]  ;;  %3375 = vmatpush.msra.mxu2 %v7124_v37  ;;  %3003 = vst [vmem:[#allocation1] ss:$2 sm:$0xff] %v2906_v47  ;;  %v3096_v56 = vsel %vm617_vm0, %v2995_v22, 0.0  ;;  %v3122_v20 = vadd.f32 %v3121_v63, %v3120_v26 }
 0x56f   : > { %3226 = vmatpush.msra.mxu3 %v4325_v21  ;;  %v3098_v0 = vsel %vm617_vm0, %v3000_v11, 0.0  ;;  %3008 = vst [vmem:[#allocation1 + $0x20] ss:$2 sm:$0xff] %v2908_v29  ;;  %v3097_v54 = vadd.f32 %v3096_v56, %v3095_v61  ;;  %v2997_v41 = vld.sshfl [vmem:[#allocation1 + $0x10] sm:$0xff pattern:$0x75316420] }
 0x570   : > { %v2907_v23 = vmul.f32 %v2875_v4, %v2875_v4  ;;  %v3125_v48 = vsel %vm617_vm0, %v7043_v14, 0.0  ;;  %v4327_v50 = vld [vmem:[%s7960_s4 + $0xb0] sm:$0xff]  ;;  %3376 = vmatpush.msra.mxu2 %v7137_v27  ;;  %v3158_v14 = vsel %vm8325_vm8, %v2997_v41, 0.0  ;;  %v3124_v3 = vadd.f32 %v3123_v28, %v3122_v20  ;;  %v4330_v40 = vld [vmem:[%s7960_s4 + $0xa8] sm:$0xff]  ;;  %v7150_v52 = vld [vmem:[%s7962_s6 + $0x20] sm:$0xff] }
 0x571   : > { %3227 = vmatpush.msra.mxu3 %v4327_v50  ;;  %v4329_v45 = vld [vmem:[%s5282_s22 + $0x90] sm:$0xff]  ;;  %v3099_v46 = vadd.f32 %v3098_v0, %v3097_v54  ;;  %v3159_v15 = vadd.f32 %v3158_v14, %v3157_v2  ;;  %v3127_v32 = vsel %vm617_vm0, %v2996_v12, 0.0  ;;  %v8327_v30 = vld [vmem:[#allocation24_spill] sm:$0xff]  ;;  %v4332_v36 = vld [vmem:[%s5282_s22 + $0x98] sm:$0xf]  ;;  %v8329_v8 = vperm.slane %v6805_v59, 2 }
 0x572   : > { %v2878_v9 = vsub.f32 %v4329_v45, %v2834_v49  ;;  %v3002_v1 = vld.sshfl [vmem:[#allocation1 + $0x30] sm:$0xff pattern:$0x75316420]  ;;  %3004 = vst [vmem:[#allocation1 + $0x10] ss:$2 sm:$0xff] %v2907_v23  ;;  %3377 = vmatpush.msra.mxu2 %v7150_v52  ;;  %v8328_v62 = vperm.slane %v8327_v30, 1  ;;  %v3126_v61 = vadd.f32 %v3125_v48, %v3124_v3 }
 0x573   : > { %3009 = vst [vmem:[#allocation1 + $0x30] ss:$2 sm:$0xff] %v2909_v58  ;;  %v3160_v10 = vsel %vm8326_vm13, %v3002_v1, 0.0  ;;  %3228 = vmatpush.msra.mxu3 %v4330_v40  ;;  %v2879_v19 = vsub.f32 %v4332_v36, %v8329_v8  ;;  %v4333_v7 = vld [vmem:[%s5282_s22 + $0x9c] sm:$0xff]  ;;  %v2786_v60 = vperm.slane %v8327_v30, 2  ;;  %v8330_v24 = vld [vmem:[#allocation26_spill] sm:$0xff] }
 0x574   : > { %v2820_v39 = vrot.slane %v8328_v62, 4  ;;  %v2880_v4 = vsub.f32 %v4333_v7, %v2835_v5  ;;  %v2787_v6 = vperm.slane %v8330_v24, 0  ;;  %v3161_v44 = vadd.f32 %v3160_v10, %v3159_v15  ;;  %v4334_v16 = vld [vmem:[%s7960_s4 + $0xa0] sm:$0xff]  ;;  %v7168_v59 = vld [vmem:[%s7962_s6 + $0x18] sm:$0xff]  ;;  %v7183_v29 = vld [vmem:[%s7962_s6 + $0x10] sm:$0xff] }
 0x575   : > { %v3129_v51 = vsel %vm617_vm0, %v3001_v35, 0.0  ;;  %3229 = vmatpush.msra.mxu3 %v4334_v16  ;;  %3378 = vmatpush.msra.mxu2 %v7168_v59  ;;  %v2789_v63 = vperm.slane %v8330_v24, 2  ;;  %v8331_v28 = vperm.slane %v8330_v24, 1  ;;  %v4336_v17 = vld [vmem:[%s5282_s22 + $0xa4] sm:$0xf]  ;;  %v8332_v49 = vperm.slane %v8317_v33, 2 }
 0x576   : > { %v3128_v22 = vadd.f32 %v3127_v32, %v3126_v61  ;;  %v2910_v12 = vmul.f32 %v2878_v9, %v2878_v9  ;;  %v3005_v26 = vld.sshfl [vmem:[#allocation1] sm:$0xff pattern:$0x75316420]  ;;  %v3006_v13 = vld.sshfl [vmem:[#allocation1 + $0x8] sm:$0xff pattern:$0x75316420]  ;;  %v2911_v35 = vmul.f32 %v2879_v19, %v2879_v19  ;;  %v2912_v2 = vmul.f32 %v2880_v4, %v2880_v4 }
 0x577   : > { %v2821_v57 = vrot.slane %v8331_v28, 4  ;;  %v2881_v47 = vsub.f32 %v4336_v17, %v8332_v49  ;;  %v4337_v5 = vld [vmem:[%s7960_s4 + $0x98] sm:$0xff]  ;;  %3379 = vmatpush.msra.mxu2 %v7183_v29  ;;  %v8333_v11 = vperm.slane %v8327_v30, 0  ;;  %v3010_v21 = vld.sshfl [vmem:[#allocation1 + $0x20] sm:$0xff pattern:$0x75316420] }
 0x578   : > { %3230 = vmatpush.msra.mxu3 %v4337_v5  ;;  %v3011_v23 = vld.sshfl [vmem:[#allocation1 + $0x28] sm:$0xff pattern:$0x75316420]  ;;  %v3130_v56 = vadd.f32 %v3129_v51, %v3128_v22  ;;  %3013 = vst [vmem:[#allocation1] ss:$2 sm:$0xff] %v2910_v12  ;;  %v3100_v0 = vsel %vm617_vm0, %v3005_v26, 0.0 }
 0x579   : > { %v2836_v33 = vsel %vm617_vm0, %v8333_v11, %v2820_v39  ;;  %v3102_v20 = vsel %vm617_vm0, %v3010_v21, 0.0  ;;  %v3131_v58 = vsel %vm617_vm0, %v3006_v13, 0.0  ;;  %v3133_v54 = vsel %vm617_vm0, %v3011_v23, 0.0  ;;  %v4339_v41 = vld [vmem:[%s7960_s4 + $0x90] sm:$0xff]  ;;  %v7199_v48 = vld [vmem:[%s7962_s6 + $0x8] sm:$0xff]  ;;  %v4346_v61 = vld [vmem:[%s7960_s4 + $0x80] sm:$0xff] }
 0x57a   : > { %3231 = vmatpush.msra.mxu3 %v4339_v41  ;;  %3380 = vmatpush.msra.mxu2 %v7199_v48  ;;  %v2837_v50 = vsel %vm617_vm0, %v2787_v6, %v2821_v57  ;;  %v2913_v45 = vmul.f32 %v2881_v47, %v2881_v47  ;;  %3018 = vst [vmem:[#allocation1 + $0x20] ss:$2 sm:$0xff] %v2912_v2  ;;  %v3007_v1 = vld.sshfl [vmem:[#allocation1 + $0x10] sm:$0xff pattern:$0x75316420]  ;;  %v4341_v3 = vld [vmem:[%s5282_s22 + $0xa8] sm:$0xff] }
 0x57b   : > { %v3101_v9 = vadd.f32 %v3100_v0, %v3099_v46  ;;  %v3132_v14 = vadd.f32 %v3131_v58, %v3130_v56  ;;  %v2882_v15 = vsub.f32 %v4341_v3, %v2836_v33  ;;  %v3012_v10 = vld.sshfl [vmem:[#allocation1 + $0x30] sm:$0xff pattern:$0x75316420]  ;;  %3014 = vst [vmem:[#allocation1 + $0x10] ss:$2 sm:$0xff] %v2911_v35  ;;  %v3162_v32 = vsel %vm8334_vm11, %v3007_v1, 0.0 }
 0x57c   : > { %v4342_v40 = vld [vmem:[%s7960_s4 + $0x88] sm:$0xff]  ;;  %v7211_v46 = vld [vmem:[%s7962_s6] sm:$0xff]  ;;  %3019 = vst [vmem:[#allocation1 + $0x30] ss:$2 sm:$0xff] %v2913_v45  ;;  %v3163_v62 = vadd.f32 %v3162_v32, %v3161_v44  ;;  %v3164_v39 = vsel %vm8335_vm14, %v3012_v10, 0.0  ;;  %v4345_v7 = vld [vmem:[%s5282_s22 + $0xb4] sm:$0xff] }
 0x57d   : > { %3232 = vmatpush.msra.mxu3 %v4342_v40  ;;  %3381 = vmatpush.msra.mxu2 %v7211_v46  ;;  %v3103_v30 = vadd.f32 %v3102_v20, %v3101_v9  ;;  %v3134_v36 = vadd.f32 %v3133_v54, %v3132_v14  ;;  %v4344_v8 = vld [vmem:[%s5282_s22 + $0xb0] sm:$0xf]  ;;  %v2884_v4 = vsub.f32 %v4345_v7, %v2837_v50  ;;  %v4347_v6 = vld [vmem:[%s5282_s22 + $0xbc] sm:$0xf]  ;;  %v8340_v3 = vld [vmem:[#allocation8_spill] sm:$0xff]  ;;  %vm8344_vm4 = vcmask 293888  }
 0x57e   : > { %v2883_v19 = vsub.f32 %v4344_v8, %v2786_v60  ;;  %v3165_v24 = vadd.f32 %v3164_v39, %v3163_v62  ;;  %v2885_v51 = vsub.f32 %v4347_v6, %v2789_v63  ;;  %v2914_v16 = vmul.f32 %v2882_v15, %v2882_v15  ;;  %v8338_v1 = vld [vmem:[#allocation7_spill] sm:$0xff]  ;;  %v8341_v39 = vld [vmem:[#allocation44_spill] sm:$0xff]  ;;  %vm8345_vm8 = vmmov %vm8344_vm4 }
 0x57f   : > { %3233 = vmatpush.msra.mxu3 %v4346_v61  ;;  %v3015_v28 = vld.sshfl [vmem:[#allocation1] sm:$0xff pattern:$0x75316420]  ;;  %v3016_v57 = vld.sshfl [vmem:[#allocation1 + $0x8] sm:$0xff pattern:$0x75316420]  ;;  %v2916_v44 = vmul.f32 %v2884_v4, %v2884_v4  ;;  %vm8346_vm13 = vmmov %vm8344_vm4 }
 0x580   : > { %v2915_v17 = vmul.f32 %v2883_v19, %v2883_v19  ;;  %3023 = vst [vmem:[#allocation1] ss:$2 sm:$0xff] %v2914_v16  ;;  %v3104_v60 = vsel %vm617_vm0, %v3015_v28, 0.0  ;;  %v3135_v12 = vsel %vm617_vm0, %v3016_v57, 0.0  ;;  %v2917_v13 = vmul.f32 %v2885_v51, %v2885_v51  ;;  %v8342_v57 = vld [vmem:[#allocation10_spill] sm:$0xff]  ;;  %vm8347_vm11 = vmmov %vm8344_vm4 }
 0x581   : > { %v3020_v49 = vld.sshfl [vmem:[#allocation1 + $0x20] sm:$0xff pattern:$0x75316420]  ;;  %v3021_v47 = vld.sshfl [vmem:[#allocation1 + $0x28] sm:$0xff pattern:$0x75316420]  ;;  %v3105_v5 = vadd.f32 %v3104_v60, %v3103_v30  ;;  %v3136_v11 = vadd.f32 %v3135_v12, %v3134_v36  ;;  %vm8348_vm14 = vmmov %vm8344_vm4 }
 0x582   : > { %v3106_v22 = vsel %vm617_vm0, %v3020_v49, 0.0  ;;  %v3137_v26 = vsel %vm617_vm0, %v3021_v47, 0.0  ;;  %3028 = vst [vmem:[#allocation1 + $0x20] ss:$2 sm:$0xff] %v2916_v44  ;;  %v8343_v49 = vld [vmem:[#allocation31_spill] sm:$0xff] }
 0x583   : > { %v3017_v63 = vld.sshfl [vmem:[#allocation1 + $0x10] sm:$0xff pattern:$0x75316420]  ;;  %v3107_v2 = vadd.f32 %v3106_v22, %v3105_v5  ;;  %v3138_v56 = vadd.f32 %v3137_v26, %v3136_v11  ;;  %v2516_v47 = vperm.slane %v8343_v49, 0  ;;  %v4361_v49 = vld [vmem:[%s7960_s4 + $0x138] sm:$0xff] }
 0x584   : > { %v3022_v33 = vld.sshfl [vmem:[#allocation1 + $0x30] sm:$0xff pattern:$0x75316420]  ;;  %3024 = vst [vmem:[#allocation1 + $0x10] ss:$2 sm:$0xff] %v2915_v17  ;;  %v3166_v35 = vsel %vm8336_vm7, %v3017_v63, 0.0  ;;  %vm8349_vm7 = vmmov %vm8344_vm4 }
 0x585   : > { %3029 = vst [vmem:[#allocation1 + $0x30] ss:$2 sm:$0xff] %v2917_v13  ;;  %v3167_v21 = vadd.f32 %v3166_v35, %v3165_v24  ;;  %v3168_v23 = vsel %vm8337_vm9, %v3022_v33, 0.0  ;;  %vm8351_vm9 = vmmov %vm8344_vm4 }
 0x587   : > { %v3169_v0 = vadd.f32 %v3168_v23, %v3167_v21  ;;  %v3025_v20 = vld.sshfl [vmem:[#allocation1] sm:$0xff pattern:$0x75316420]  ;;  %v3026_v58 = vld.sshfl [vmem:[#allocation1 + $0x8] sm:$0xff pattern:$0x75316420] }
 0x588   : > { %v3108_v54 = vsel %vm617_vm0, %v3025_v20, 0.0  ;;  %v3139_v41 = vsel %vm617_vm0, %v3026_v58, 0.0  ;;  %3327 = vst [vmem:[#allocation1] ss:$2 sm:$0xff] %v8338_v1 }
 0x589   : > { %v7229_v50 = vadd.f32 %v3108_v54, %v3107_v2  ;;  %v7231_v9 = vadd.f32 %v3139_v41, %v3138_v56 }
 0x58b   : > { %v3027_v45 = vld.sshfl [vmem:[#allocation1 + $0x10] sm:$0xff pattern:$0x75316420] }
 0x58c   : > { %v3170_v14 = vsel %vm8339_vm6, %v3027_v45, 0.0  ;;  %3329 = vst [vmem:[#allocation1 + $0x10] ss:$2 sm:$0xff] %v8340_v3 }
 0x58d   : > { %v7236_v15 = vadd.f32 %v3170_v14, %v3169_v0 }
 0x5b6   : > { %v2500_v32 = vpop.f32.mrf.mxu1 }
 0x5d7   : > { %v2503_v61 = vpop.f32.mrf.mxu1 }
 0x5da   : > { %v2477_v10 = vpop.f32.mrf.mxu2 }
 0x5de   : > { %v2454_v40 = vpop.f32.mrf.mxu3 }
 0x5df   : > { %v2478_v30 = vadd.f32 %v2477_v10, %v2454_v40 }
 0x5e1   : > { %v2501_v62 = vadd.f32 %v2500_v32, %v2478_v30  ;;  %v4348_v32 = vld [vmem:[%s7959_s3] sm:$0x1]  ;;  %v7255_v30 = vld [vmem:[%s7963_s7 + $0x68] sm:$0xf] }
 0x5e3   : > { %v2506_v36 = vmul.f32 %v2501_v62, %v8341_v39  ;;  %v4350_v62 = vld [vmem:[%s7961_s5 + $0x90] sm:$0x1] }
 0x5e5   : > { %v2508_v8 = vmax.f32 %v2506_v36, 0.01 }
 0x5e7   : > { %v2457_v19 = vpop.f32.mrf.mxu3  ;;  %v2480_v7 = vpop.f32.mrf.mxu2  ;;  %4161 = vlog2.f32 %v2508_v8  ;;  %v7267_v8 = vld [vmem:[%s7963_s7 + $0x50] sm:$0xff] }
 0x5e8   : > { %v2481_v4 = vadd.f32 %v2480_v7, %v2457_v19  ;;  %v4352_v19 = vld [vmem:[%s7961_s5 + $0x78] sm:$0xff] }
 0x5ea   : > { %v2504_v24 = vadd.f32 %v2503_v61, %v2481_v4  ;;  %v7276_v4 = vld [vmem:[%s7963_s7 + $0x38] sm:$0xff]  ;;  %v4354_v61 = vld [vmem:[%s7961_s5 + $0x60] sm:$0xff] }
 0x5ec   : > { %v2507_v6 = vmul.f32 %v2504_v24, %v8341_v39  ;;  %v8350_v39 = vld [vmem:[#allocation11_spill] sm:$0xff]  ;;  %v7285_v24 = vld [vmem:[%s7963_s7 + $0x20] sm:$0xff] }
 0x5ed   : > { %v4162_v51 = vpop.eup %4161 }
 0x5ee   : > { %v2509_v16 = vmax.f32 %v2507_v6, 0.01  ;;  %v2511_v28 = vmul.f32 0.6931472, %v4162_v51  ;;  %v4356_v6 = vld [vmem:[%s7961_s5 + $0x48] sm:$0xff] }
 0x5ef   : > { %v7295_v51 = vld [vmem:[%s7963_s7 + $0x8] sm:$0xff] }
 0x5f0   : > { %4163 = vlog2.f32 %v2509_v16  ;;  %v2514_v17 = vadd.f32 %v2511_v28, %v8342_v57  ;;  %v2549_v12 = vsel %vm8344_vm4, %v2511_v28, 0.0  ;;  %v4358_v16 = vld [vmem:[%s7961_s5 + $0x30] sm:$0xff]  ;;  %v4359_v28 = vld [vmem:[%s7960_s4 + $0x140] sm:$0xf] }
 0x5f2   : > { %v2517_v22 = vmul.f32 %v2516_v47, %v2514_v17  ;;  %v4360_v17 = vld [vmem:[%s7961_s5 + $0x18] sm:$0xff] }
 0x5f4   : > { %v2519_v33 = vsel %vm8346_vm13, %v2517_v22, 0.0  ;;  %v4363_v22 = vld [vmem:[%s7960_s4 + $0x130] sm:$0xff] }
 0x5f6   : > { %v4164_v44 = vpop.eup %4163 }
 0x5f7   : > { %v2513_v60 = vmul.f32 0.6931472, %v4164_v44 }
 0x5f9   : > { %v2515_v26 = vadd.f32 %v2513_v60, %v8342_v57  ;;  %v2550_v13 = vsel %vm8345_vm8, %v2513_v60, 0.0  ;;  %v4362_v60 = vld [vmem:[%s7961_s5] sm:$0xff] }
 0x5fa   : > { %v2551_v5 = vadd.f32 %v2550_v13, %v2549_v12  ;;  %v4364_v12 = vld [vmem:[%s7960_s4 + $0x128] sm:$0xff]  ;;  %v4366_v13 = vld [vmem:[%s7960_s4 + $0x118] sm:$0xff] }
 0x5fb   : > { %v2518_v63 = vmul.f32 %v2516_v47, %v2515_v26  ;;  %v4365_v26 = vld [vmem:[%s7960_s4 + $0x120] sm:$0xff] }
 0x5fc   : > { %v2552_v11 = vrot.slane %v2551_v5, 4 }
 0x5fd   : > { %v2520_v35 = vsel %vm8347_vm11, %v2518_v63, 0.0  ;;  %vm8352_vm11 = vmmov %vm8349_vm7 }
 0x5fe   : > { %v2521_v2 = vadd.f32 %v2520_v35, %v2519_v33  ;;  %v2553_v21 = vadd.f32 %v2552_v11, %v2551_v5  ;;  %v4367_v11 = vld [vmem:[%s7960_s4 + $0x110] sm:$0xff]  ;;  %v4368_v35 = vld [vmem:[%s7960_s4 + $0x108] sm:$0xff] }
 0x600   : > { %v2522_v23 = vrot.slane %v2521_v2, 4  ;;  %v2554_v56 = vrot.slane %v2553_v21, 2 }
 0x602   : > { %v2523_v0 = vadd.f32 %v2522_v23, %v2521_v2  ;;  %v2555_v20 = vadd.f32 %v2554_v56, %v2553_v21  ;;  %v4369_v56 = vld [vmem:[%s7960_s4 + $0x100] sm:$0xff] }
 0x604   : > { %v2524_v58 = vrot.slane %v2523_v0, 2  ;;  %v2556_v54 = vrot.slane %v2555_v20, 1 }
 0x606   : > { %v2525_v41 = vadd.f32 %v2524_v58, %v2523_v0  ;;  %v2557_v45 = vadd.f32 %v2556_v54, %v2555_v20 }
 0x608   : > { %v2526_v1 = vrot.slane %v2525_v41, 1  ;;  %v2558_v14 = vadd.f32 29.406033, %v2557_v45  ;;  %v4371_v45 = vld [vmem:[%s7961_s5 + $0xa0] sm:$0x1] }
 0x60a   : > { %v2527_v3 = vadd.f32 %v2526_v1, %v2525_v41  ;;  %v2559_v10 = vmul.f32 0.5, %v2558_v14  ;;  %v4370_v41 = vld [vmem:[%s7961_s5 + $0x98] sm:$0x1]  ;;  %v4373_v14 = vld [vmem:[%s7961_s5 + $0x80] sm:$0xff] }
 0x60b   : > { %v7349_v1 = vld [vmem:[%s7962_s6 + $0xf8] sm:$0xff] }
 0x60c   : > { %v2528_v40 = vsub.f32 %v4348_v32, %v2527_v3  ;;  %4076 = vmatmul.msk.f32.vlgmr.msrb.gmra.mxu0 %vm8348_vm14, %v2559_v10  ;;  %4080 = vmatmul.msk.f32.vlgmr.msrb.gmra.mxu1 %vm8349_vm7, %v2559_v10  ;;  %vm8353_vm14 = vmmov %vm8349_vm7  ;;  %v4374_v3 = vld [vmem:[%s7961_s5 + $0x88] sm:$0xff] }
 0x60d   : > { %4083 = vmatpush.msk.msrb.mxu0 %vm617_vm0, %v7255_v30  ;;  %4089 = vmatpush.msk.msrb.mxu1 %vm711_vm2, %v4350_v62  ;;  %v4376_v32 = vld [vmem:[%s7961_s5 + $0x68] sm:$0xff] }
 0x60e   : > { %v2529_v36 = vmul.f32 %v2528_v40, %v8350_v39  ;;  %v4377_v40 = vld [vmem:[%s7961_s5 + $0x70] sm:$0xff]  ;;  %v7373_v62 = vld [vmem:[%s7962_s6 + $0xe8] sm:$0xff] }
 0x60f   : > { %2658 = vmatpush.msrb.mxu0 %v7267_v8  ;;  %3271 = vmatpush.msrb.mxu1 %v4352_v19  ;;  %v4380_v19 = vld [vmem:[%s7961_s5 + $0x58] sm:$0xff] }
 0x610   : > { %v4074_v7 = vmul.f32 -1.442695, %v2529_v36  ;;  %v4379_v36 = vld [vmem:[%s7961_s5 + $0x50] sm:$0xff] }
 0x611   : > { %2659 = vmatpush.msrb.mxu0 %v7276_v4  ;;  %3272 = vmatpush.msrb.mxu1 %v4354_v61  ;;  %v4382_v61 = vld [vmem:[%s7961_s5 + $0x38] sm:$0xff] }
 0x612   : > { %4165 = vpow2.f32 %v4074_v7  ;;  %v7385_v7 = vld [vmem:[%s7962_s6 + $0xe0] sm:$0xff] }
 0x613   : > { %2660 = vmatpush.msrb.mxu0 %v7285_v24  ;;  %3273 = vmatpush.msrb.mxu1 %v4356_v6  ;;  %v4383_v6 = vld [vmem:[%s7961_s5 + $0x40] sm:$0xff] }
 0x614   : > { %4078 = vmatmul.msk.f32.vlgmr.msra.gmra.mxu0 %vm8351_vm9, %v2559_v10  ;;  %v7361_v10 = vld [vmem:[%s7962_s6 + $0xf0] sm:$0xff]  ;;  %vm8354_vm9 = vcmask 551936  }
 0x615   : > { %2661 = vmatpush.msrb.mxu0 %v7295_v51  ;;  %3274 = vmatpush.msrb.mxu1 %v4358_v16  ;;  %v7397_v16 = vld [vmem:[%s7962_s6 + $0xd8] sm:$0xff] }
 0x617   : > { %4087 = vmatpush.msk.msra.mxu0 %vm617_vm0, %v4359_v28  ;;  %3275 = vmatpush.msrb.mxu1 %v4360_v17  ;;  %v4385_v28 = vld [vmem:[%s7961_s5 + $0x20] sm:$0xff]  ;;  %v4386_v17 = vld [vmem:[%s7961_s5 + $0x28] sm:$0xff] }
 0x618   : > { %v4166_v44 = vpop.eup %4165 }
 0x619   : > { %3246 = vmatpush.msra.mxu0 %v4361_v49  ;;  %v2533_v47 = vadd.f32 1.0, %v4166_v44  ;;  %3276 = vmatpush.msrb.mxu1 %v4362_v60  ;;  %v7409_v44 = vld [vmem:[%s7962_s6 + $0xd0] sm:$0xff]  ;;  %v4388_v49 = vld [vmem:[%s7961_s5 + $0x8] sm:$0xff] }
 0x61a   : > { %v7421_v60 = vld [vmem:[%s7962_s6 + $0xc8] sm:$0xff] }
 0x61b   : > { %3247 = vmatpush.msra.mxu0 %v4363_v22  ;;  %4167 = vrcp.f32 %v2533_v47  ;;  %v2545_v2 = vand.u32 2147483648, %v2533_v47  ;;  %v2543_v23 = vand.u32 2147483647, %v2533_v47  ;;  %vm2539_vm4 = vweird.f32 %v2533_v47  ;;  %v7427_v22 = vld [vmem:[%s7962_s6 + $0xc0] sm:$0xff] }
 0x61d   : > { %3248 = vmatpush.msra.mxu0 %v4364_v12  ;;  %v2546_v20 = vor.u32 1.1754944e-38, %v2545_v2  ;;  %vm2544_vm13 = vcmp.eq.f32.partialorder %v2543_v23, 8.507059e+37  ;;  %v7433_v12 = vld [vmem:[%s7962_s6 + $0xb8] sm:$0xff]  ;;  %v3032_v23 = vld.sshfl [vmem:[#allocation1 + $0x30] sm:$0xff pattern:$0x75316420] }
 0x61f   : > { %3249 = vmatpush.msra.mxu0 %v4365_v26  ;;  %v7439_v26 = vld [vmem:[%s7962_s6 + $0xb0] sm:$0xff] }
 0x621   : > { %3250 = vmatpush.msra.mxu0 %v4366_v13  ;;  %v4168_v5 = vpop.eup %4167  ;;  %v7445_v13 = vld [vmem:[%s7962_s6 + $0xa8] sm:$0xff] }
 0x622   : > { %v2535_v63 = vmul.f32 %v4168_v5, %v2533_v47  ;;  %vm2540_vm6 = vweird.f32 %v4168_v5  ;;  %v4389_v47 = vld [vmem:[%s7961_s5 + $0x10] sm:$0xff] }
 0x623   : > { %3251 = vmatpush.msra.mxu0 %v4367_v11  ;;  %vm2541_vm8 = vmor %vm2539_vm4, %vm2540_vm6  ;;  %v7463_v11 = vld [vmem:[%s7962_s6 + $0x90] sm:$0xff]  ;;  %vm8356_vm6 = vcmask 1041408   ;;  %vm8357_vm4 = vcmask 1042433  }
 0x624   : > { %v2536_v33 = vsub.f32 1.0, %v2535_v63  ;;  %v7457_v63 = vld [vmem:[%s7962_s6 + $0x98] sm:$0xff] }
 0x625   : > { %3252 = vmatpush.msra.mxu0 %v4368_v35  ;;  %v7475_v35 = vld [vmem:[%s7962_s6 + $0x80] sm:$0xff] }
 0x626   : > { %v2537_v21 = vmul.f32 %v4168_v5, %v2536_v33  ;;  %v7469_v33 = vld [vmem:[%s7962_s6 + $0x88] sm:$0xff] }
 0x627   : > { %3253 = vmatpush.msra.mxu0 %v4369_v56 }
 0x628   : > { %v2538_v0 = vadd.f32 %v4168_v5, %v2537_v21  ;;  %v3031_v21 = vld.sshfl [vmem:[#allocation1 + $0x28] sm:$0xff pattern:$0x75316420] }
 0x629   : > { %v3141_v56 = vsel %vm617_vm0, %v3031_v21, 0.0 }
 0x62a   : > { %v2542_v58 = vsel %vm2541_vm8, %v4168_v5, %v2538_v0  ;;  %v7451_v5 = vld [vmem:[%s7962_s6 + $0xa0] sm:$0xff]  ;;  %v3172_v0 = vsel %vm8354_vm9, %v3032_v23, 0.0  ;;  %vm8358_vm8 = vcmask 1043458  }
 0x62b   : > { %v2547_v54 = vsel %vm2544_vm13, %v2546_v20, %v2542_v58  ;;  %v3030_v58 = vld.sshfl [vmem:[#allocation1 + $0x20] sm:$0xff pattern:$0x75316420] }
 0x62c   : > { %4082 = vmatmul.msk.f32.vlgmr.msrb.gmra.mxu3 %vm8352_vm11, %v2547_v54  ;;  %4084 = vmatmul.msk.f32.vlgmr.msrb.gmra.mxu0 %vm8353_vm14, %v2547_v54 }
 0x62d   : > { %4086 = vmatmul.msk.f32.vlgmr.msra.gmra.mxu1 %vm8349_vm7, %v2547_v54  ;;  %4091 = vmatpush.msk.msrb.mxu0 %vm711_vm2, %v4370_v41  ;;  %v3142_v41 = vadd.f32 %v3141_v56, %v7231_v9 }
 0x62e   : > { %4093 = vmatpush.msk.msra.mxu1 %vm711_vm2, %v4371_v45  ;;  %3386 = vmatpush.msrb.mxu3 %v7349_v1  ;;  %v3173_v45 = vadd.f32 %v3172_v0, %v7236_v15 }
 0x62f   : > { %3291 = vmatpush.msrb.mxu0 %v4373_v14 }
 0x630   : > { %3311 = vmatpush.msra.mxu1 %v4374_v3  ;;  %3387 = vmatpush.msrb.mxu3 %v7361_v10  ;;  %v3110_v3 = vsel %vm617_vm0, %v3030_v58, 0.0 }
 0x631   : > { %3292 = vmatpush.msrb.mxu0 %v4376_v32 }
 0x632   : > { %3312 = vmatpush.msra.mxu1 %v4377_v40  ;;  %3388 = vmatpush.msrb.mxu3 %v7373_v62  ;;  %v3175_v40 = vsub.f32 0.0, %v3142_v41  ;;  %v4400_v41 = vld [vmem:[%s7963_s7 + $0x60] sm:$0xf] }
 0x633   : > { %3293 = vmatpush.msrb.mxu0 %v4379_v36  ;;  %v3176_v36 = vsub.f32 0.0, %v3173_v45 }
 0x634   : > { %3313 = vmatpush.msra.mxu1 %v4380_v19  ;;  %3389 = vmatpush.msrb.mxu3 %v7385_v7  ;;  %v3111_v19 = vadd.f32 %v3110_v3, %v7229_v50 }
 0x635   : > { %3294 = vmatpush.msrb.mxu0 %v4382_v61 }
 0x636   : > { %3314 = vmatpush.msra.mxu1 %v4383_v6  ;;  %3390 = vmatpush.msrb.mxu3 %v7397_v16 }
 0x637   : > { %3295 = vmatpush.msrb.mxu0 %v4385_v28 }
 0x638   : > { %3315 = vmatpush.msra.mxu1 %v4386_v17  ;;  %3391 = vmatpush.msrb.mxu3 %v7409_v44  ;;  %v3174_v17 = vsub.f32 0.0, %v3111_v19  ;;  %v4404_v19 = vld [vmem:[%s7963_s7 + $0x30] sm:$0xff] }
 0x639   : > { %3296 = vmatpush.msrb.mxu0 %v4388_v49 }
 0x63a   : > { %3316 = vmatpush.msra.mxu1 %v4389_v47  ;;  %3392 = vmatpush.msrb.mxu3 %v7421_v60 }
 0x63c   : > { %3393 = vmatpush.msrb.mxu3 %v7427_v22 }
 0x63e   : > { %3394 = vmatpush.msrb.mxu3 %v7433_v12 }
 0x640   : > { %3395 = vmatpush.msrb.mxu3 %v7439_v26 }
 0x642   : > { %3396 = vmatpush.msrb.mxu3 %v7445_v13 }
 0x644   : > { %3397 = vmatpush.msrb.mxu3 %v7451_v5 }
 0x646   : > { %3398 = vmatpush.msrb.mxu3 %v7457_v63 }
 0x648   : > { %3399 = vmatpush.msrb.mxu3 %v7463_v11 }
 0x64a   : > { %3400 = vmatpush.msrb.mxu3 %v7469_v33 }
 0x64c   : > { %3401 = vmatpush.msrb.mxu3 %v7475_v35 }
 0x689   : > { %v2580_v2 = vpop.f32.mrf.mxu0  ;;  %v2620_v54 = vpop.f32.mrf.mxu1 }
 0x68a   : > { %v3179_v32 = vperm.slane %v2620_v54, 0  ;;  %v3177_v28 = vperm.slane %v2580_v2, 0 }
 0x68c   : > { %v3182_v6 = vsub.f32 %v3176_v36, %v3179_v32  ;;  %v3180_v21 = vsub.f32 %v3174_v17, %v3177_v28  ;;  %v4402_v32 = vld [vmem:[%s7963_s7 + $0x48] sm:$0xff]  ;;  %v7510_v36 = vld [vmem:[%s7962_s6 + $0x138] sm:$0xff]  ;;  %v4408_v17 = vld [vmem:[%s7963_s7] sm:$0xff] }
 0x68d   : > { %v7531_v28 = vld [vmem:[%s7962_s6 + $0x128] sm:$0xff] }
 0x68e   : > { %v3187_v47 = vmul.f32 1.442695, %v3182_v6  ;;  %v3183_v9 = vmul.f32 1.442695, %v3180_v21  ;;  %v4406_v6 = vld [vmem:[%s7963_s7 + $0x18] sm:$0xff]  ;;  %v7555_v21 = vld [vmem:[%s7962_s6 + $0x110] sm:$0xff] }
 0x691   : > { %v2600_v20 = vpop.f32.mrf.mxu0 }
 0x692   : > { %v3178_v14 = vperm.slane %v2600_v20, 0 }
 0x694   : > { %v3181_v61 = vsub.f32 %v3175_v40, %v3178_v14  ;;  %v7498_v14 = vld [vmem:[%s7962_s6 + $0x140] sm:$0xf] }
 0x696   : > { %v3185_v49 = vmul.f32 1.442695, %v3181_v61  ;;  %v7520_v61 = vld [vmem:[%s7962_s6 + $0x130] sm:$0xff] }
 0x698   : > { %4169 = vpow2.f32 %v3185_v49  ;;  %v7541_v49 = vld [vmem:[%s7962_s6 + $0x120] sm:$0xff] }
 0x699   : > { %4171 = vpow2.f32 %v3187_v47  ;;  %v7548_v47 = vld [vmem:[%s7962_s6 + $0x118] sm:$0xff] }
 0x69a   : > { %4173 = vpow2.f32 %v3183_v9  ;;  %v7562_v9 = vld [vmem:[%s7962_s6 + $0x108] sm:$0xff] }
 0x69e   : > { %v4170_v0 = vpop.eup %4169 }
 0x69f   : > { %v4172_v58 = vpop.eup %4171 }
 0x6a0   : > { %v4174_v3 = vpop.eup %4173 }
 0x6a9   : > { %v2663_v23 = vpop.f32.mrf.mxu0 }
 0x6aa   : > { %v3190_v15 = vperm.slane %v2663_v23, 0  ;;  %v2683_v56 = vpop.f32.mrf.mxu1  ;;  %v7569_v23 = vld [vmem:[%s7962_s6 + $0x100] sm:$0xff] }
 0x6ab   : > { %v3191_v20 = vperm.slane %v2683_v56, 0 }
 0x6ac   : > { %v7484_v54 = vmul.f32 %v4170_v0, %v3190_v15 }
 0x6ad   : > { %v7486_v50 = vmul.f32 %v4172_v58, %v3191_v20 }
 0x6ae   : > { %3234 = vmatmul.f32.vlgmr.msra.gmra.mxu3 %v7484_v54 }
 0x6af   : > { %4088 = vmatmul.msk.f32.vlgmr.msra.gmra.mxu0 %vm640_vm12, %v7486_v50  ;;  %v2643_v2 = vpop.f32.mrf.mxu3  ;;  %4100 = vmatpush.msk.msra.mxu3 %vm617_vm0, %v4400_v41 }
 0x6b0   : > { %v3189_v45 = vperm.slane %v2643_v2, 0  ;;  %4095 = vmatpush.msk.msra.mxu0 %vm617_vm0, %v7498_v14 }
 0x6b1   : > { %3613 = vmatpush.msra.mxu3 %v4402_v32 }
 0x6b2   : > { %v7505_v40 = vmul.f32 %v4174_v3, %v3189_v45  ;;  %3414 = vmatpush.msra.mxu0 %v7510_v36  ;;  %v3332_v45 = vld.sshfl [vmem:[#allocation1 + $0x10] sm:$0xff pattern:$0x75316420] }
 0x6b3   : > { %3614 = vmatpush.msra.mxu3 %v4404_v19 }
 0x6b4   : > { %3214 = vmatmul.f32.vlgmr.msrb.gmra.mxu2 %v7505_v40  ;;  %3415 = vmatpush.msra.mxu0 %v7520_v61 }
 0x6b5   : > { %4097 = vmatpush.msk.msrb.mxu2 %vm617_vm0, %v7498_v14  ;;  %3615 = vmatpush.msra.mxu3 %v4406_v6 }
 0x6b6   : > { %3416 = vmatpush.msra.mxu0 %v7531_v28 }
 0x6b7   : > { %3577 = vmatpush.msrb.mxu2 %v7510_v36  ;;  %3616 = vmatpush.msra.mxu3 %v4408_v17 }
 0x6b8   : > { %3417 = vmatpush.msra.mxu0 %v7541_v49 }
 0x6b9   : > { %3578 = vmatpush.msrb.mxu2 %v7520_v61 }
 0x6ba   : > { %3418 = vmatpush.msra.mxu0 %v7548_v47 }
 0x6bb   : > { %3579 = vmatpush.msrb.mxu2 %v7531_v28 }
 0x6bc   : > { %3419 = vmatpush.msra.mxu0 %v7555_v21 }
 0x6bd   : > { %3580 = vmatpush.msrb.mxu2 %v7541_v49 }
 0x6be   : > { %3420 = vmatpush.msra.mxu0 %v7562_v9 }
 0x6bf   : > { %3581 = vmatpush.msrb.mxu2 %v7548_v47 }
 0x6c0   : > { %3421 = vmatpush.msra.mxu0 %v7569_v23 }
 0x6c1   : > { %3582 = vmatpush.msrb.mxu2 %v7555_v21 }
 0x6c3   : > { %3583 = vmatpush.msrb.mxu2 %v7562_v9 }
 0x6c5   : > { %3584 = vmatpush.msrb.mxu2 %v7569_v23 }
 0x72c   : > { %v3255_v20 = vpop.f32.mrf.mxu0 }
 0x731   : > { %v3235_v15 = vpop.f32.mrf.mxu3 }
 0x737   : > { %v3215_v56 = vpop.f32.mrf.mxu2 }
 0x738   : > { %v3236_v0 = vadd.f32 %v3235_v15, %v3215_v56 }
 0x73a   : > { %v3256_v58 = vadd.f32 %v3255_v20, %v3236_v0 }
 0x73c   : > { %4090 = vmatmul.msk.f32.vlgmr.msrb.gmra.mxu1 %vm1909_vm15, %v3256_v58  ;;  %4092 = vmatmul.msk.f32.vlgmr.msrb.gmra.mxu0 %vm1909_vm15, %v3256_v58 }
 0x73d   : > { %3523 = vmatpush.msrb.mxu1 %v6955_v31  ;;  %3546 = vmatpush.msrb.mxu0 %v7349_v1 }
 0x73f   : > { %3524 = vmatpush.msrb.mxu1 %v6987_v34  ;;  %3547 = vmatpush.msrb.mxu0 %v7361_v10 }
 0x741   : > { %3525 = vmatpush.msrb.mxu1 %v7003_v43  ;;  %3548 = vmatpush.msrb.mxu0 %v7373_v62 }
 0x743   : > { %3526 = vmatpush.msrb.mxu1 %v7019_v53  ;;  %3549 = vmatpush.msrb.mxu0 %v7385_v7  ;;  %v3330_v53 = vld.sshfl [vmem:[#allocation1] sm:$0xff pattern:$0x75316420] }
 0x744   : > { %4094 = vmatmul.msk.f32.vlgmr.msra.gmra.mxu1 %vm1909_vm15, %v3256_v58  ;;  %vm8355_vm15 = vmmov %vm8354_vm9 }
 0x745   : > { %3527 = vmatpush.msrb.mxu1 %v7036_v18  ;;  %3550 = vmatpush.msrb.mxu0 %v7397_v16 }
 0x747   : > { %3528 = vmatpush.msrb.mxu1 %v7056_v25  ;;  %3551 = vmatpush.msrb.mxu0 %v7409_v44 }
 0x749   : > { %3529 = vmatpush.msrb.mxu1 %v7072_v55  ;;  %3552 = vmatpush.msrb.mxu0 %v7421_v60  ;;  %v3331_v55 = vld.sshfl [vmem:[#allocation1 + $0x8] sm:$0xff pattern:$0x75316420] }
 0x74b   : > { %3530 = vmatpush.msrb.mxu1 %v7089_v38  ;;  %3553 = vmatpush.msrb.mxu0 %v7427_v22 }
 0x74d   : > { %3531 = vmatpush.msrb.mxu1 %v7108_v42  ;;  %3554 = vmatpush.msrb.mxu0 %v7433_v12 }
 0x74f   : > { %3532 = vmatpush.msrb.mxu1 %v7124_v37  ;;  %3555 = vmatpush.msrb.mxu0 %v7439_v26 }
 0x751   : > { %3533 = vmatpush.msrb.mxu1 %v7137_v27  ;;  %3556 = vmatpush.msrb.mxu0 %v7445_v13 }
 0x753   : > { %3534 = vmatpush.msrb.mxu1 %v7150_v52  ;;  %3557 = vmatpush.msrb.mxu0 %v7451_v5 }
 0x755   : > { %3535 = vmatpush.msrb.mxu1 %v7168_v59  ;;  %3558 = vmatpush.msrb.mxu0 %v7457_v63 }
 0x757   : > { %3536 = vmatpush.msrb.mxu1 %v7183_v29  ;;  %3559 = vmatpush.msrb.mxu0 %v7463_v11 }
 0x759   : > { %3537 = vmatpush.msrb.mxu1 %v7199_v48  ;;  %3560 = vmatpush.msrb.mxu0 %v7469_v33 }
 0x75b   : > { %3538 = vmatpush.msrb.mxu1 %v7211_v46  ;;  %3561 = vmatpush.msrb.mxu0 %v7475_v35 }
 0x75d   : > { %4103 = vmatpush.msk.msra.mxu1 %vm617_vm0, %v7255_v30 }
 0x75f   : > { %3636 = vmatpush.msra.mxu1 %v7267_v8 }
 0x761   : > { %3637 = vmatpush.msra.mxu1 %v7276_v4 }
 0x763   : > { %3638 = vmatpush.msra.mxu1 %v7285_v24 }
 0x765   : > { %3639 = vmatpush.msra.mxu1 %v7295_v51 }
 0x7b9   : > { %v3278_v31 = vpop.f32.mrf.mxu1  ;;  %v3298_v34 = vpop.f32.mrf.mxu0 }
 0x7ba   : > { %4175 = vrcp.f32 %v3278_v31 }
 0x7bb   : > { %4177 = vrcp.f32 %v3298_v34 }
 0x7c0   : > { %v4176_v43 = vpop.eup %4175 }
 0x7c1   : > { %v4178_v18 = vpop.eup %4177  ;;  %v3324_v25 = vmul.f32 %v4176_v43, %v7505_v40  ;;  %v3318_v38 = vpop.f32.mrf.mxu1 }
 0x7c2   : > { %v3325_v42 = vmul.f32 %v4178_v18, %v7484_v54  ;;  %4179 = vrcp.f32 %v3318_v38 }
 0x7c3   : > { %v3336_v30 = vmul.f32 %v3330_v53, %v3324_v25 }
 0x7c4   : > { %v3337_v8 = vmul.f32 %v3331_v55, %v3325_v42 }
 0x7c5   : > { %v3339_v4 = vmax.f32 %v3336_v30, 0.01 }
 0x7c6   : > { %v3340_v24 = vmax.f32 %v3337_v8, 0.01 }
 0x7c7   : > { %v3342_v51 = vsel %vm617_vm0, %v3339_v4, 0.0 }
 0x7c8   : > { %v4180_v2 = vpop.eup %4179  ;;  %v3349_v41 = vsel %vm617_vm0, %v3340_v24, 0.0  ;;  %v3343_v3 = vrot.slane %v3342_v51, 4  ;;  %v3430_v40 = vrot.slane %v3340_v24, 7 }
 0x7c9   : > { %v3350_v32 = vrot.slane %v3349_v41, 4  ;;  %v3326_v19 = vmul.f32 %v4180_v2, %v7486_v50 }
 0x7ca   : > { %v3344_v17 = vadd.f32 %v3343_v3, %v3342_v51  ;;  %v3432_v20 = vsel %vm711_vm2, %v3339_v4, %v3430_v40  ;;  %v3434_v53 = vsel %vm717_vm1, %v3339_v4, %v3430_v40  ;;  %v3437_v18 = vsel %vm713_vm3, %v3339_v4, %v3430_v40 }
 0x7cb   : > { %v3338_v6 = vmul.f32 %v3332_v45, %v3326_v19  ;;  %v3351_v15 = vadd.f32 %v3350_v32, %v3349_v41  ;;  %v3440_v50 = vsel %vm719_vm5, %v3339_v4, %v3430_v40 }
 0x7cc   : > { %v3345_v56 = vrot.slane %v3344_v17, 2 }
 0x7cd   : > { %v3341_v54 = vmax.f32 %v3338_v6, 0.01  ;;  %v3352_v0 = vrot.slane %v3351_v15, 2 }
 0x7ce   : > { %v3346_v34 = vadd.f32 %v3345_v56, %v3344_v17 }
 0x7cf   : > { %v3356_v58 = vsel %vm8355_vm15, %v3341_v54, 0.0  ;;  %v3431_v31 = vrot.slane %v3341_v54, 6  ;;  %v3353_v43 = vadd.f32 %v3352_v0, %v3351_v15 }
 0x7d0   : > { %v3357_v25 = vrot.slane %v3356_v58, 4  ;;  %v3347_v45 = vrot.slane %v3346_v34, 1 }
 0x7d1   : > { %v3433_v55 = vsel %vm8356_vm6, %v3432_v20, %v3431_v31  ;;  %v3435_v38 = vsel %vm8357_vm4, %v3434_v53, %v3431_v31  ;;  %v3438_v42 = vsel %vm8358_vm8, %v3437_v18, %v3431_v31  ;;  %v3441_v30 = vsel %vm733_vm10, %v3440_v50, %v3431_v31  ;;  %v7645_v20 = vld [vmem:[%s4747_s30] sm:$0xff]  ;;  %v7650_v31 = vld [vmem:[%s4747_s30 + $0x30] sm:$0xff] }
 0x7d2   : > { %v3358_v8 = vadd.f32 %v3357_v25, %v3356_v58  ;;  %v3436_v24 = vrot.slane %v3435_v38, 1  ;;  %v3439_v51 = vrot.slane %v3438_v42, 2  ;;  %v3442_v2 = vrot.slane %v3441_v30, 3  ;;  %8361 = vst [vmem:[#allocation27_spill] sm:$0xff] %v7645_v20  ;;  %v7662_v50 = vld [vmem:[%s4747_s30 + $0x10] sm:$0xff] }
 0x7d3   : > { %v7630_v41 = vperm.slane %v3433_v55, 2  ;;  %v3354_v3 = vrot.slane %v3353_v43, 1  ;;  %v7632_v4 = vperm.slane %v3433_v55, 0  ;;  %v3348_v17 = vadd.f32 %v3347_v45, %v3346_v34  ;;  %8362 = vst [vmem:[#allocation25_spill] sm:$0xff] %v7650_v31  ;;  %v7657_v34 = vld [vmem:[%s4747_s30 + $0x60] sm:$0xff] }
 0x7d4   : > { %v3359_v32 = vrot.slane %v3358_v8, 2  ;;  %v7634_v19 = vperm.slane %v3436_v24, 2  ;;  %v7636_v40 = vperm.slane %v3439_v51, 2  ;;  %v7638_v6 = vperm.slane %v3436_v24, 0  ;;  %8363 = vst [vmem:[#allocation29_spill] sm:$0xff] %v7657_v34 }
 0x7d5   : > { %8359 = vst [vmem:[#allocation32_spill] sm:$0xff] %v7632_v4  ;;  %v3355_v15 = vadd.f32 %v3354_v3, %v3353_v43  ;;  %v7640_v54 = vperm.slane %v3439_v51, 0  ;;  %v7642_v56 = vperm.slane %v3442_v2, 0  ;;  %v3467_v58 = vmul.f32 %v7645_v20, %v7632_v4  ;;  %3382 = vmatmul.f32.vlgmr.msra.gmra.mxu2 %v3348_v17  ;;  %v7674_v3 = vld [vmem:[%s4747_s30 + $0x70] sm:$0xff]  ;;  %v7761_v20 = vld [vmem:[%s4747_s30 + $0x88] sm:$0xff] }
 0x7d6   : > { %8360 = vst [vmem:[#allocation28_spill] sm:$0xff] %v7638_v6  ;;  %v3360_v0 = vadd.f32 %v3359_v32, %v3358_v8  ;;  %v3473_v53 = vmul.f32 %v7650_v31, %v7638_v6  ;;  %v7654_v18 = vperm.slane %v3442_v2, 2  ;;  %v3469_v25 = vmul.f32 %v7662_v50, %v7630_v41  ;;  %v7669_v8 = vld [vmem:[%s4747_s30 + $0x40] sm:$0xff]  ;;  %v4420_v17 = vld [vmem:[%s7963_s7 + $0x70] sm:$0xf] }
 0x7d7   : > { %3402 = vmatmul.f32.vlgmr.msrb.gmra.mxu3 %v3355_v15  ;;  %v3479_v43 = vmul.f32 %v7657_v34, %v7640_v54  ;;  %8364 = vst [vmem:[#allocation12_spill] sm:$0xff] %v7662_v50  ;;  %v7666_v38 = vperm.slane %v3433_v55, 1  ;;  %v3475_v45 = vmul.f32 %v7669_v8, %v7634_v19  ;;  %v3481_v32 = vmul.f32 %v7674_v3, %v7636_v40  ;;  %v4421_v55 = vld [vmem:[%s7962_s6 + $0x78] sm:$0xff]  ;;  %v7686_v15 = vld [vmem:[%s4747_s30 + $0x90] sm:$0xff] }
 0x7d8   : > { %v3361_v42 = vrot.slane %v3360_v0, 1  ;;  %v3491_v30 = vadd.f32 %v3473_v53, %v3467_v58  ;;  %8365 = vst [vmem:[#allocation13_spill] sm:$0xff] %v7669_v8  ;;  %4106 = vmatpush.msk.msra.mxu2 %vm617_vm0, %v4420_v17  ;;  %3774 = vmatpush.msrb.mxu3 %v4421_v55  ;;  %v3485_v58 = vmul.f32 %v7686_v15, %v7642_v56  ;;  %v7691_v53 = vld [vmem:[%s4747_s30 + $0xa0] sm:$0xff]  ;;  %v7695_v57 = vperm.slane %v3436_v24, 1  ;;  %v4425_v24 = vld [vmem:[%s7962_s6 + $0x70] sm:$0xff]  ;;  %v7751_v34 = vld [vmem:[%s4747_s30 + $0x58] sm:$0xff] }
 0x7d9   : > { %8366 = vst [vmem:[#allocation16_spill] sm:$0xff] %v7674_v3  ;;  %v3487_v39 = vmul.f32 %v7691_v53, %v7654_v18  ;;  %v7697_v3 = vperm.slane %v3439_v51, 1  ;;  %v3497_v55 = vsel %vm640_vm12, %v3469_v25, 0.0  ;;  %v3498_v50 = vsel %vm640_vm12, %v3475_v45, 0.0 }
 0x7da   : > { %8367 = vst [vmem:[#allocation21_spill] sm:$0xff] %v7686_v15  ;;  %v3362_v17 = vadd.f32 %v3361_v42, %v3360_v0  ;;  %v3492_v8 = vadd.f32 %v3491_v30, %v3479_v43  ;;  %v4424_v15 = vld [vmem:[%s7963_s7 + $0x58] sm:$0xff]  ;;  %3775 = vmatpush.msrb.mxu3 %v4425_v24  ;;  %v3499_v51 = vadd.f32 %v3498_v50, %v3497_v55  ;;  %v3500_v0 = vsel %vm640_vm12, %v3481_v32, 0.0  ;;  %v7713_v30 = vld [vmem:[%s4747_s30 + $0x8] sm:$0xff]  ;;  %v4431_v24 = vld [vmem:[%s7963_s7 + $0x40] sm:$0xff] }
 0x7db   : > { %8368 = vst [vmem:[#allocation14_spill] sm:$0xff] %v7691_v53  ;;  %3659 = vmatpush.msra.mxu2 %v4424_v15  ;;  %v7708_v43 = vperm.slane %v3442_v2, 1  ;;  %v3502_v42 = vsel %vm640_vm12, %v3487_v39, 0.0  ;;  %v3468_v45 = vmul.f32 %v7713_v30, %v7666_v38  ;;  %v7718_v15 = vld [vmem:[%s4747_s30 + $0x38] sm:$0xff]  ;;  %v7723_v32 = vld [vmem:[%s4747_s30 + $0x68] sm:$0xff]  ;;  %vm3888_vm6 = vcmask 286720  }
 0x7dc   : > { %4096 = vmatmul.msk.f32.vlgmr.msra.gmra.mxu0 %vm640_vm12, %v3362_v17  ;;  %v3493_v25 = vadd.f32 %v3492_v8, %v3485_v58  ;;  %v3474_v50 = vmul.f32 %v7718_v15, %v7695_v57  ;;  %v3501_v2 = vadd.f32 %v3500_v0, %v3499_v51  ;;  %v3480_v8 = vmul.f32 %v7723_v32, %v7697_v3  ;;  %v7728_v39 = vld [vmem:[%s4747_s30 + $0x18] sm:$0xff]  ;;  %v7733_v17 = vld [vmem:[%s4747_s30 + $0x48] sm:$0xff] }
 0x7dd   : > { %8369 = vst [vmem:[#allocation18_spill] sm:$0xff] %v7728_v39  ;;  %v3470_v58 = vmul.f32 %v7728_v39, %v7632_v4  ;;  %v3476_v55 = vmul.f32 %v7733_v17, %v7638_v6  ;;  %3660 = vmatpush.msra.mxu2 %v4431_v24  ;;  %v7741_v51 = vld [vmem:[%s4747_s30 + $0x98] sm:$0xff]  ;;  %v7746_v39 = vld [vmem:[%s4747_s30 + $0x28] sm:$0xff]  ;;  %4109 = vmatpush.msk.msra.mxu0 %vm617_vm0, %v7498_v14  ;;  %v4444_v14 = vld [vmem:[%s7962_s6 + $0x60] sm:$0xff] }
 0x7de   : > { %8370 = vst [vmem:[#allocation19_spill] sm:$0xff] %v7733_v17  ;;  %3539 = vmatmul.f32.vlgmr.msrb.gmra.mxu1 %v3493_v25  ;;  %v3486_v0 = vmul.f32 %v7741_v51, %v7708_v43  ;;  %v3494_v53 = vadd.f32 %v3474_v50, %v3468_v45  ;;  %v3472_v4 = vmul.f32 %v7746_v39, %v7630_v41  ;;  %v7756_v24 = vld [vmem:[%s4747_s30 + $0x78] sm:$0xff]  ;;  %v4437_v50 = vld [vmem:[%s7963_s7 + $0x28] sm:$0xff]  ;;  %vm8374_vm0 = vmmov %vm8349_vm7 }
 0x7df   : > { %8371 = vst [vmem:[#allocation15_spill] sm:$0xff] %v7746_v39  ;;  %v3478_v17 = vmul.f32 %v7751_v34, %v7634_v19  ;;  %v3503_v6 = vadd.f32 %v3502_v42, %v3501_v2  ;;  %v3482_v25 = vmul.f32 %v7756_v24, %v7640_v54  ;;  %v3504_v31 = vadd.f32 %v3476_v55, %v3470_v58  ;;  %v7769_v42 = vld [vmem:[%s4747_s30 + $0xa8] sm:$0xff]  ;;  %vm8375_vm1 = vmmov %vm8374_vm0 }
 0x7e0   : > { %8372 = vst [vmem:[#allocation41_spill] sm:$0xff] %v7756_v24  ;;  %v3484_v45 = vmul.f32 %v7761_v20, %v7636_v40  ;;  %3661 = vmatpush.msra.mxu2 %v4437_v50  ;;  %v3495_v39 = vadd.f32 %v3494_v53, %v3480_v8  ;;  %v3488_v2 = vmul.f32 %v7769_v42, %v7642_v56  ;;  %v3510_v58 = vsel %vm640_vm12, %v3472_v4, 0.0  ;;  %v4439_v24 = vld [vmem:[%s7962_s6 + $0x68] sm:$0xff]  ;;  %v7781_v8 = vld [vmem:[%s4747_s30 + $0xb8] sm:$0xff]  ;;  %vm8376_vm2 = vmmov %vm8374_vm0 }
 0x7e1   : > { %8373 = vst [vmem:[#allocation42_spill] sm:$0xff] %v7769_v42  ;;  %v3511_v55 = vsel %vm640_vm12, %v3478_v17, 0.0  ;;  %3797 = vmatpush.msrb.mxu1 %v7349_v1  ;;  %3776 = vmatpush.msrb.mxu3 %v4439_v24  ;;  %v3505_v53 = vadd.f32 %v3504_v31, %v3482_v25  ;;  %v3490_v50 = vmul.f32 %v7781_v8, %v7654_v18  ;;  %v7789_v17 = vld [vmem:[%s4747_s30 + $0x20] sm:$0xff]  ;;  %v4443_v25 = vld [vmem:[%s7963_s7 + $0x10] sm:$0xff]  ;;  %vm8377_vm3 = vmmov %vm8374_vm0 }
 0x7e2   : > { %4098 = vmatmul.msk.f32.vlgmr.msrb.gmra.mxu2 %vm640_vm12, %v3503_v6  ;;  %v3512_v42 = vadd.f32 %v3511_v55, %v3510_v58  ;;  %v3496_v4 = vadd.f32 %v3495_v39, %v3486_v0  ;;  %v3513_v1 = vsel %vm640_vm12, %v3484_v45, 0.0  ;;  %v3471_v24 = vmul.f32 %v7789_v17, %v7666_v38  ;;  %v7794_v6 = vld [vmem:[%s4747_s30 + $0x50] sm:$0xff]  ;;  %v7806_v0 = vld [vmem:[%s4747_s30 + $0x80] sm:$0xff]  ;;  %3828 = vmatpush.msra.mxu0 %v7510_v36  ;;  %vm8378_vm5 = vmmov %vm8374_vm0 }
 0x7e3   : > { %v3477_v31 = vmul.f32 %v7794_v6, %v7695_v57  ;;  %3662 = vmatpush.msra.mxu2 %v4443_v25  ;;  %3798 = vmatpush.msrb.mxu1 %v7361_v10  ;;  %v3506_v39 = vadd.f32 %v3505_v53, %v3488_v2  ;;  %v3483_v45 = vmul.f32 %v7806_v0, %v7697_v3  ;;  %v4446_v10 = vld [vmem:[%s7962_s6 + $0x58] sm:$0xff]  ;;  %v4447_v53 = vld [vmem:[%s7962_s6 + $0x50] sm:$0xff]  ;;  %vm8379_vm10 = vmmov %vm8374_vm0 }
 0x7e4   : > { %v3514_v58 = vadd.f32 %v3513_v1, %v3512_v42  ;;  %3777 = vmatpush.msrb.mxu3 %v4444_v14  ;;  %3562 = vmatmul.f32.vlgmr.msrb.gmra.mxu0 %v3496_v4  ;;  %v3515_v42 = vsel %vm640_vm12, %v3490_v50, 0.0  ;;  %v4450_v50 = vld [vmem:[%s7962_s6 + $0x40] sm:$0xff]  ;;  %vm8380_vm13 = vmmov %vm8374_vm0 }
 0x7e5   : > { %v3507_v55 = vadd.f32 %v3477_v31, %v3471_v24  ;;  %3799 = vmatpush.msrb.mxu1 %v7373_v62  ;;  %v7821_v62 = vld [vmem:[%s4747_s30 + $0xb0] sm:$0xff]  ;;  %3829 = vmatpush.msra.mxu0 %v7520_v61  ;;  %vm8381_vm11 = vmmov %vm8374_vm0 }
 0x7e6   : > { %3778 = vmatpush.msrb.mxu3 %v4446_v10  ;;  %3542 = vmatmul.f32.gmra.mxu1 %v3506_v39  ;;  %v3516_v2 = vadd.f32 %v3515_v42, %v3514_v58  ;;  %v3489_v4 = vmul.f32 %v7821_v62, %v7708_v43  ;;  %vm8399_vm14 = vmmov %vm8374_vm0 }
 0x7e7   : > { %v3508_v1 = vadd.f32 %v3507_v55, %v3483_v45  ;;  %3800 = vmatpush.msrb.mxu1 %v7385_v7  ;;  %v4449_v7 = vld [vmem:[%s7962_s6 + $0x48] sm:$0xff]  ;;  %3830 = vmatpush.msra.mxu0 %v7531_v28 }
 0x7e8   : > { %3779 = vmatpush.msrb.mxu3 %v4447_v53 }
 0x7e9   : > { %3801 = vmatpush.msrb.mxu1 %v7397_v16  ;;  %v3509_v36 = vadd.f32 %v3508_v1, %v3489_v4  ;;  %3831 = vmatpush.msra.mxu0 %v7541_v49  ;;  %v4451_v16 = vld [vmem:[%s7962_s6 + $0x38] sm:$0xff]  ;;  %v8386_v4 = vld [vmem:[#allocation12_spill] sm:$0xff] }
 0x7ea   : > { %4099 = vmatmul.msk.f32.gmra.mxu2 %vm640_vm12, %v3516_v2  ;;  %3780 = vmatpush.msrb.mxu3 %v4449_v7  ;;  %v8385_v2 = vld [vmem:[#allocation21_spill] sm:$0xff] }
 0x7eb   : > { %3802 = vmatpush.msrb.mxu1 %v7409_v44  ;;  %3832 = vmatpush.msra.mxu0 %v7548_v47  ;;  %v8387_v7 = vld [vmem:[#allocation13_spill] sm:$0xff] }
 0x7ec   : > { %3565 = vmatmul.f32.gmra.mxu0 %v3509_v36  ;;  %3781 = vmatpush.msrb.mxu3 %v4450_v50 }
 0x7ed   : > { %3803 = vmatpush.msrb.mxu1 %v7421_v60  ;;  %3833 = vmatpush.msra.mxu0 %v7555_v21 }
 0x7ee   : > { %3782 = vmatpush.msrb.mxu3 %v4451_v16  ;;  %v8388_v16 = vld [vmem:[#allocation16_spill] sm:$0xff] }
 0x7ef   : > { %3804 = vmatpush.msrb.mxu1 %v7427_v22  ;;  %3834 = vmatpush.msra.mxu0 %v7562_v9 }
 0x7f0   : > { %3783 = vmatpush.msrb.mxu3 %v7124_v37 }
 0x7f1   : > { %3805 = vmatpush.msrb.mxu1 %v7433_v12  ;;  %3835 = vmatpush.msra.mxu0 %v7569_v23 }
 0x7f2   : > { %3784 = vmatpush.msrb.mxu3 %v7137_v27 }
 0x7f3   : > { %3806 = vmatpush.msrb.mxu1 %v7439_v26 }
 0x7f4   : > { %3785 = vmatpush.msrb.mxu3 %v7150_v52 }
 0x7f5   : > { %3807 = vmatpush.msrb.mxu1 %v7445_v13 }
 0x7f6   : > { %3786 = vmatpush.msrb.mxu3 %v7168_v59 }
 0x7f7   : > { %3808 = vmatpush.msrb.mxu1 %v7451_v5 }
 0x7f8   : > { %3787 = vmatpush.msrb.mxu3 %v7183_v29 }
 0x7f9   : > { %3809 = vmatpush.msrb.mxu1 %v7457_v63 }
 0x7fa   : > { %3788 = vmatpush.msrb.mxu3 %v7199_v48 }
 0x7fb   : > { %3810 = vmatpush.msrb.mxu1 %v7463_v11 }
 0x7fc   : > { %3789 = vmatpush.msrb.mxu3 %v7211_v46 }
 0x7fd   : > { %3811 = vmatpush.msrb.mxu1 %v7469_v33 }
 0x7ff   : > { %3812 = vmatpush.msrb.mxu1 %v7475_v35 }
 0x858   : > { %v3383_v27 = vpop.f32.mrf.mxu2 }
 0x859   : > { %v3423_v37 = vpop.f32.mrf.mxu0 }
 0x85a   : > { %v3403_v52 = vpop.f32.mrf.mxu3 }
 0x85b   : > { %v3404_v59 = vadd.f32 %v3403_v52, %v3383_v27  ;;  %v3540_v29 = vpop.f32.mrf.mxu1  ;;  %v8389_v27 = vld [vmem:[#allocation32_spill] sm:$0xff] }
 0x85d   : > { %v7861_v44 = vadd.f32 %v3423_v37, %v3404_v59  ;;  %v8390_v59 = vld [vmem:[#allocation28_spill] sm:$0xff] }
 0x85f   : > { %4181 = vrcp.f32 %v7861_v44 }
 0x861   : > { %v3563_v60 = vpop.f32.mrf.mxu0 }
 0x862   : > { %v3564_v22 = vadd.f32 %v3563_v60, %v3540_v29 }
 0x863   : > { %v3543_v5 = vpop.f32.mrf.mxu1 }
 0x865   : > { %v3586_v48 = vpop.f32.mrf.mxu2  ;;  %v4182_v12 = vpop.eup %4181 }
 0x866   : > { %v3587_v26 = vadd.f32 %v3586_v48, %v3564_v22  ;;  %v7865_v46 = vperm.slane %v4182_v12, 0  ;;  %v8391_v22 = vld [vmem:[#allocation14_spill] sm:$0xff] }
 0x868   : > { %v3593_v13 = vmul.f32 %v7865_v46, %v3587_v26 }
 0x869   : > { %v3566_v63 = vpop.f32.mrf.mxu0 }
 0x86a   : > { %3886 = vst.msk [vmem:[%s419_s24] sm:$0xff] %vm8374_vm0, %v3593_v13  ;;  %4101 = vmatmul.msk.f32.vlgmr.msra.gmra.mxu3 %vm8375_vm1, %v3593_v13  ;;  %4104 = vmatmul.msk.f32.vlgmr.msra.gmra.mxu1 %vm8376_vm2, %v3593_v13  ;;  %v3567_v11 = vadd.f32 %v3566_v63, %v3543_v5 }
 0x86b   : > { %4107 = vmatmul.msk.f32.vlgmr.msra.gmra.mxu2 %vm8377_vm3, %v3593_v13 }
 0x86d   : > { %v3589_v33 = vpop.f32.mrf.mxu2 }
 0x86e   : > { %v3590_v35 = vadd.f32 %v3589_v33, %v3567_v11 }
 0x870   : > { %v3594_v61 = vmul.f32 %v7865_v46, %v3590_v35 }
 0x872   : > { %3887 = vst.msk [vmem:[%s419_s24 + $0x8] sm:$0xff] %vm8378_vm5, %v3594_v61  ;;  %4102 = vmatmul.msk.f32.gmra.mxu3 %vm8379_vm10, %v3594_v61  ;;  %4105 = vmatmul.msk.f32.gmra.mxu1 %vm8380_vm13, %v3594_v61 }
 0x873   : > { %4108 = vmatmul.msk.f32.gmra.mxu2 %vm8381_vm11, %v3594_v61 }
 0x8e7   : > { %v3641_v28 = vpop.f32.mrf.mxu1 }
 0x8e8   : > { %v3671_v49 = vsub.f32 %v7713_v30, %v3641_v28  ;;  %v3677_v47 = vsub.f32 %v7718_v15, %v3641_v28  ;;  %v3683_v21 = vsub.f32 %v7723_v32, %v3641_v28  ;;  %v3689_v9 = vsub.f32 %v7741_v51, %v3641_v28  ;;  %v8382_v30 = vld [vmem:[#allocation27_spill] sm:$0xff]  ;;  %v8383_v15 = vld [vmem:[#allocation25_spill] sm:$0xff] }
 0x8e9   : > { %v8384_v32 = vld [vmem:[#allocation29_spill] sm:$0xff] }
 0x8ea   : > { %v3695_v23 = vmul.f32 %v3671_v49, %v7666_v38  ;;  %v3701_v24 = vmul.f32 %v3677_v47, %v7695_v57  ;;  %v3707_v31 = vmul.f32 %v3683_v21, %v7697_v3  ;;  %v3713_v25 = vmul.f32 %v3689_v9, %v7708_v43 }
 0x8ec   : > { %v3719_v58 = vmul.f32 %v3695_v23, %v3671_v49  ;;  %v3725_v14 = vmul.f32 %v3701_v24, %v3677_v47  ;;  %v3731_v39 = vmul.f32 %v3707_v31, %v3683_v21  ;;  %v3737_v55 = vmul.f32 %v3713_v25, %v3689_v9 }
 0x8ed   : > { %v3618_v45 = vpop.f32.mrf.mxu3 }
 0x8ee   : > { %v3670_v10 = vsub.f32 %v8382_v30, %v3618_v45  ;;  %v3676_v42 = vsub.f32 %v8383_v15, %v3618_v45  ;;  %v3682_v1 = vsub.f32 %v8384_v32, %v3618_v45  ;;  %v3664_v51 = vpop.f32.mrf.mxu2  ;;  %v3688_v53 = vsub.f32 %v8385_v2, %v3618_v45 }
 0x8ef   : > { %v3672_v36 = vsub.f32 %v8386_v4, %v3664_v51  ;;  %v3678_v50 = vsub.f32 %v8387_v7, %v3664_v51  ;;  %v3684_v37 = vsub.f32 %v8388_v16, %v3664_v51  ;;  %v3690_v48 = vsub.f32 %v8391_v22, %v3664_v51  ;;  %v3644_v63 = vpop.f32.mrf.mxu1  ;;  %v8394_v7 = vld [vmem:[#allocation15_spill] sm:$0xff] }
 0x8f0   : > { %v3694_v52 = vmul.f32 %v3670_v10, %v8389_v27  ;;  %v3700_v29 = vmul.f32 %v3676_v42, %v8390_v59  ;;  %v3706_v60 = vmul.f32 %v3682_v1, %v7640_v54  ;;  %v3712_v12 = vmul.f32 %v3688_v53, %v7642_v56 }
 0x8f1   : > { %v3696_v26 = vmul.f32 %v3672_v36, %v7630_v41  ;;  %v3702_v13 = vmul.f32 %v3678_v50, %v7634_v19  ;;  %v3708_v5 = vmul.f32 %v3684_v37, %v7636_v40  ;;  %v3745_v11 = vadd.f32 %v3725_v14, %v3719_v58 }
 0x8f2   : > { %v3718_v33 = vmul.f32 %v3694_v52, %v3670_v10  ;;  %v3724_v35 = vmul.f32 %v3700_v29, %v3676_v42  ;;  %v3714_v61 = vmul.f32 %v3690_v48, %v7654_v18  ;;  %v3730_v28 = vmul.f32 %v3706_v60, %v3682_v1  ;;  %v8395_v29 = vld [vmem:[#allocation41_spill] sm:$0xff] }
 0x8f3   : > { %v3720_v49 = vmul.f32 %v3696_v26, %v3672_v36  ;;  %v3726_v47 = vmul.f32 %v3702_v13, %v3678_v50  ;;  %v3732_v21 = vmul.f32 %v3708_v5, %v3684_v37  ;;  %v3736_v9 = vmul.f32 %v3712_v12, %v3688_v53  ;;  %v8393_v53 = vld [vmem:[#allocation19_spill] sm:$0xff] }
 0x8f4   : > { %v3738_v23 = vmul.f32 %v3714_v61, %v3690_v48  ;;  %v3674_v24 = vsub.f32 %v7789_v17, %v3644_v63  ;;  %v3680_v31 = vsub.f32 %v7794_v6, %v3644_v63  ;;  %v3742_v25 = vadd.f32 %v3724_v35, %v3718_v33  ;;  %v8392_v6 = vld [vmem:[#allocation18_spill] sm:$0xff] }
 0x8f5   : > { %v3748_v45 = vsel %vm640_vm12, %v3720_v49, 0.0  ;;  %v3749_v30 = vsel %vm640_vm12, %v3726_v47, 0.0  ;;  %v3751_v58 = vsel %vm640_vm12, %v3732_v21, 0.0  ;;  %v3621_v14 = vpop.f32.mrf.mxu3  ;;  %v3686_v42 = vsub.f32 %v7806_v0, %v3644_v63 }
 0x8f6   : > { %v3750_v10 = vadd.f32 %v3749_v30, %v3748_v45  ;;  %v3753_v15 = vsel %vm640_vm12, %v3738_v23, 0.0  ;;  %v3698_v32 = vmul.f32 %v3674_v24, %v7666_v38  ;;  %v3667_v1 = vpop.f32.mrf.mxu2  ;;  %v3704_v17 = vmul.f32 %v3680_v31, %v7695_v57 }
 0x8f7   : > { %v3746_v51 = vadd.f32 %v3745_v11, %v3731_v39  ;;  %v3673_v2 = vsub.f32 %v8392_v6, %v3621_v14  ;;  %v3679_v4 = vsub.f32 %v8393_v53, %v3621_v14  ;;  %v3675_v50 = vsub.f32 %v8394_v7, %v3667_v1 }
 0x8f8   : > { %v3752_v36 = vadd.f32 %v3751_v58, %v3750_v10  ;;  %v3681_v16 = vsub.f32 %v7751_v34, %v3667_v1  ;;  %v3687_v37 = vsub.f32 %v7761_v20, %v3667_v1  ;;  %v3685_v0 = vsub.f32 %v8395_v29, %v3621_v14 }
 0x8f9   : > { %v3747_v52 = vadd.f32 %v3746_v51, %v3737_v55  ;;  %v3697_v38 = vmul.f32 %v3673_v2, %v8389_v27  ;;  %v3693_v60 = vsub.f32 %v7781_v8, %v3667_v1  ;;  %v3699_v39 = vmul.f32 %v3675_v50, %v7630_v41 }
 0x8fa   : > { %v3754_v57 = vadd.f32 %v3753_v15, %v3752_v36  ;;  %v3705_v22 = vmul.f32 %v3681_v16, %v7634_v19  ;;  %v3711_v48 = vmul.f32 %v3687_v37, %v7636_v40  ;;  %v3743_v34 = vadd.f32 %v3742_v25, %v3730_v28 }
 0x8fb   : > { %3813 = vmatmul.f32.vlgmr.msrb.gmra.mxu1 %v3747_v52  ;;  %v3717_v12 = vmul.f32 %v3693_v60, %v7654_v18  ;;  %v3692_v20 = vsub.f32 %v7821_v62, %v3644_v63  ;;  %v3710_v55 = vmul.f32 %v3686_v42, %v7697_v3  ;;  %v3703_v26 = vmul.f32 %v3679_v4, %v8390_v59  ;;  %v8396_v62 = vld [vmem:[#allocation42_spill] sm:$0xff] }
 0x8fc   : > { %v3723_v27 = vmul.f32 %v3699_v39, %v3675_v50  ;;  %v3729_v13 = vmul.f32 %v3705_v22, %v3681_v16  ;;  %4110 = vmatmul.msk.f32.vlgmr.msra.gmra.mxu0 %vm640_vm12, %v3754_v57  ;;  %v3722_v8 = vmul.f32 %v3698_v32, %v3674_v24  ;;  %v3735_v41 = vmul.f32 %v3711_v48, %v3687_v37  ;;  %v8397_v37 = vld [vmem:[#allocation10_spill] sm:$0xff] }
 0x8fd   : > { %v3744_v5 = vadd.f32 %v3743_v34, %v3736_v9  ;;  %v3716_v19 = vmul.f32 %v3692_v20, %v7708_v43  ;;  %v3728_v40 = vmul.f32 %v3704_v17, %v3680_v31  ;;  %v3741_v11 = vmul.f32 %v3717_v12, %v3693_v60 }
 0x8fe   : > { %v3761_v18 = vsel %vm640_vm12, %v3723_v27, 0.0  ;;  %v3762_v33 = vsel %vm640_vm12, %v3729_v13, 0.0  ;;  %v3691_v63 = vsub.f32 %v8396_v62, %v3621_v14  ;;  %v3734_v3 = vmul.f32 %v3710_v55, %v3686_v42 }
 0x8ff   : > { %3790 = vmatmul.f32.vlgmr.msrb.gmra.mxu3 %v3744_v5  ;;  %v3758_v59 = vadd.f32 %v3728_v40, %v3722_v8  ;;  %v3709_v35 = vmul.f32 %v3685_v0, %v7640_v54  ;;  %v3721_v61 = vmul.f32 %v3697_v38, %v3673_v2  ;;  %v3727_v49 = vmul.f32 %v3703_v26, %v3679_v4  ;;  %v8400_v8 = vld [vmem:[#allocation11_spill] sm:$0xff] }
 0x900   : > { %v3715_v28 = vmul.f32 %v3691_v63, %v7642_v56  ;;  %v3763_v47 = vadd.f32 %v3762_v33, %v3761_v18  ;;  %v3740_v21 = vmul.f32 %v3716_v19, %v3692_v20  ;;  %v3764_v9 = vsel %vm640_vm12, %v3735_v41, 0.0 }
 0x901   : > { %v3759_v43 = vadd.f32 %v3758_v59, %v3734_v3  ;;  %v3733_v23 = vmul.f32 %v3709_v35, %v3685_v0  ;;  %v3755_v24 = vadd.f32 %v3727_v49, %v3721_v61  ;;  %v3766_v45 = vsel %vm640_vm12, %v3741_v11, 0.0 }
 0x902   : > { %v3765_v31 = vadd.f32 %v3764_v9, %v3763_v47  ;;  %v3739_v30 = vmul.f32 %v3715_v28, %v3691_v63  ;;  %v3853_v0 = vperm.slane %v7861_v44, 0  ;;  %v4452_v44 = vld [vmem:[%s7959_s3] sm:$0x1] }
 0x903   : > { %v3760_v25 = vadd.f32 %v3759_v43, %v3740_v21  ;;  %v3756_v58 = vadd.f32 %v3755_v24, %v3733_v23 }
 0x904   : > { %v3767_v14 = vadd.f32 %v3766_v45, %v3765_v31 }
 0x905   : > { %3816 = vmatmul.f32.gmra.mxu1 %v3760_v25  ;;  %v3757_v54 = vadd.f32 %v3756_v58, %v3739_v30 }
 0x906   : > { %4111 = vmatmul.msk.f32.gmra.mxu0 %vm640_vm12, %v3767_v14  ;;  %vm8398_vm12 = vmmov %vm8374_vm0 }
 0x907   : > { %3793 = vmatmul.f32.gmra.mxu3 %v3757_v54 }
 0x978   : > { %v3814_v56 = vpop.f32.mrf.mxu1 }
 0x979   : > { %v3837_v15 = vpop.f32.mrf.mxu0 }
 0x982   : > { %v3791_v10 = vpop.f32.mrf.mxu3  ;;  %v3817_v51 = vpop.f32.mrf.mxu1 }
 0x983   : > { %v3815_v42 = vadd.f32 %v3814_v56, %v3791_v10  ;;  %v3840_v53 = vpop.f32.mrf.mxu0 }
 0x985   : > { %v3838_v32 = vadd.f32 %v3837_v15, %v3815_v42 }
 0x987   : > { %v3843_v1 = vmul.f32 %v3838_v32, %v7865_v46 }
 0x989   : > { %v3845_v17 = vmax.f32 %v3843_v1, 0.01 }
 0x98a   : > { %v3794_v6 = vpop.f32.mrf.mxu3 }
 0x98b   : > { %4183 = vlog2.f32 %v3845_v17  ;;  %v3818_v2 = vadd.f32 %v3817_v51, %v3794_v6 }
 0x98d   : > { %v3841_v4 = vadd.f32 %v3840_v53, %v3818_v2 }
 0x98f   : > { %v3844_v36 = vmul.f32 %v3841_v4, %v7865_v46 }
 0x991   : > { %v4184_v7 = vpop.eup %4183  ;;  %v3846_v50 = vmax.f32 %v3844_v36, 0.01 }
 0x992   : > { %v3848_v16 = vmul.f32 0.6931472, %v4184_v7 }
 0x993   : > { %4185 = vlog2.f32 %v3846_v50 }
 0x994   : > { %v3851_v52 = vadd.f32 %v3848_v16, %v8397_v37 }
 0x996   : > { %v3854_v60 = vmul.f32 %v3853_v0, %v3851_v52 }
 0x998   : > { %v3856_v22 = vsel %vm8398_vm12, %v3854_v60, 0.0 }
 0x999   : > { %v4186_v29 = vpop.eup %4185 }
 0x99a   : > { %v3850_v38 = vmul.f32 0.6931472, %v4186_v29 }
 0x99c   : > { %v3852_v57 = vadd.f32 %v3850_v38, %v8397_v37 }
 0x99e   : > { %v3855_v39 = vmul.f32 %v3853_v0, %v3852_v57 }
 0x9a0   : > { %v3857_v48 = vsel %vm8399_vm14, %v3855_v39, 0.0 }
 0x9a1   : > { %v3858_v12 = vadd.f32 %v3857_v48, %v3856_v22 }
 0x9a3   : > { %v3859_v46 = vrot.slane %v3858_v12, 4 }
 0x9a5   : > { %v3860_v34 = vadd.f32 %v3859_v46, %v3858_v12 }
 0x9a7   : > { %v3861_v20 = vrot.slane %v3860_v34, 2 }
 0x9a9   : > { %v3862_v55 = vadd.f32 %v3861_v20, %v3860_v34 }
 0x9ab   : > { %v3863_v26 = vrot.slane %v3862_v55, 1 }
 0x9ad   : > { %v3864_v27 = vadd.f32 %v3863_v26, %v3862_v55 }
 0x9af   : > { %v3865_v13 = vsub.f32 %v4452_v44, %v3864_v27 }
 0x9b1   : > { %v3866_v41 = vmul.f32 %v3865_v13, %v8400_v8 }
 0x9b3   : > { %v4112_v5 = vmul.f32 -1.442695, %v3866_v41 }
 0x9b5   : > { %4187 = vpow2.f32 %v4112_v5 }
 0x9bb   : > { %v4188_v19 = vpop.eup %4187 }
 0x9bc   : > { %v3870_v40 = vadd.f32 1.0, %v4188_v19 }
 0x9be   : > { %4189 = vrcp.f32 %v3870_v40  ;;  %v3882_v62 = vand.u32 2147483648, %v3870_v40  ;;  %v3880_v3 = vand.u32 2147483647, %v3870_v40  ;;  %vm3876_vm9 = vweird.f32 %v3870_v40 }
 0x9c0   : > { %v3883_v35 = vor.u32 1.1754944e-38, %v3882_v62  ;;  %vm3881_vm4 = vcmp.eq.f32.partialorder %v3880_v3, 8.507059e+37 }
 0x9c4   : > { %v4190_v11 = vpop.eup %4189 }
 0x9c5   : > { %v3872_v18 = vmul.f32 %v4190_v11, %v3870_v40  ;;  %vm3877_vm7 = vweird.f32 %v4190_v11 }
 0x9c6   : > { %vm3878_vm15 = vmor %vm3876_vm9, %vm3877_vm7 }
 0x9c7   : > { %v3873_v33 = vsub.f32 1.0, %v3872_v18 }
 0x9c9   : > { %v3874_v63 = vmul.f32 %v4190_v11, %v3873_v33 }
 0x9cb   : > { %v3875_v59 = vadd.f32 %v4190_v11, %v3874_v63 }
 0x9cd   : > { %v3879_v61 = vsel %vm3878_vm15, %v4190_v11, %v3875_v59 }
 0x9ce   : > { %v3884_v28 = vsel %vm3881_vm4, %v3883_v35, %v3879_v61 }
 0x9cf   : > { %3889 = vst.msk [vmem:[%s422_s25] sm:$0x1] %vm3888_vm6, %v3884_v28 }
 0x9d0 PF: > { %s22_s13 = sadd.s32 1, %s4478_s13  }
 0x9d1   : > { %p19_p7 = scmp.ge.s32.totalorder %s22_s13, 4  }
 0x9d3   :  { %21 = sbr.rel (!%p19_p7) target bundleno = 1 (0x1), region = 118 }
 0x9d8   :  { %3923 = vsyncpa [#allocation3], 1 }
 0x9d9   :  { %3925 = vsyncpa [#allocation3 + $0x1], 1 }

</bundles_post_ra>
